<compile_context>
chip_gen: v7x
topology: tpu7x:2x2x1
jax: 0.10.0
libtpu: 0.0.40
codegen_flags: <defaults>
</compile_context>

<pallas_src>
import functools

import jax
import jax.numpy as jnp
from jax.experimental import pallas as pl
from jax.experimental.pallas import tpu as pltpu

K = 16                      # conv kernel size (all three conv layers)
POOLS = (2, 2, 6)           # max-pool sizes (fixed by the module)


def _rup(x, m):
    return (x + m - 1) // m * m


def _pick_b_blk(B, S):
    """Largest divisor of B keeping >=2 grid steps and M = b_blk*S <= 8192."""
    cap = max(1, min(16, 8192 // S))
    target = max(1, min(cap, B // 2))
    for cand in range(target, 0, -1):
        if B % cand == 0:
            return cand
    return 1


def _pick_chunk(M):
    """Column-chunk width for the conv matmuls (bounds vreg pressure)."""
    for tc in (512, 256, 128):
        if M >= tc and M % tc == 0:
            return tc
    return M


def cellcnn_kernel(x_ref, w1_ref, b1_ref, w2_ref, b2_ref, w3_ref, b3_ref,
                   wl_ref, bl_ref, out_ref,
                   xe_ref, y1e_ref, y2e_ref, y3e_ref, lhs_ref,
                   *, b_blk, S, TC, chans, pool3, stride3):
    """One batch block.  All activations: (channels, b_blk*S [+128]) with
    channels on sublanes and (never-decimated) positions on lanes."""
    C0, C1, C2, C3 = chans
    M = b_blk * S

    # ---- stage 0: input block -> lane-extended scratch (zeroed tail) -------
    xe_ref[:, :M] = x_ref[...]
    xe_ref[:, M:] = jnp.zeros((C0, 128), jnp.float32)

    # ---- conv1 + ReLU (+ eval-mode dropout identity); lane stride 1 --------
    for c in range(0, M, TC):
        for k in range(K):
            lhs_ref[k * C0:(k + 1) * C0, :] = xe_ref[:, c + k:c + k + TC]
        y = jnp.dot(w1_ref[...], lhs_ref[0:K * C0, :],
                    preferred_element_type=jnp.float32)
        y1e_ref[:, c:c + TC] = jnp.maximum(y + b1_ref[...], 0.0)
    y1e_ref[:, M:] = jnp.zeros((C1, 128), jnp.float32)

    # ---- maxpool(2) fused into conv2 im2col; conv2 lives at lane stride 2 --
    for c in range(0, M, TC):
        for k in range(K):
            lhs_ref[k * C1:(k + 1) * C1, :] = jnp.maximum(
                y1e_ref[:, c + 2 * k:c + 2 * k + TC],
                y1e_ref[:, c + 2 * k + 1:c + 2 * k + 1 + TC])
        y = jnp.dot(w2_ref[...], lhs_ref[0:K * C1, :],
                    preferred_element_type=jnp.float32)
        y2e_ref[:, c:c + TC] = jnp.maximum(y + b2_ref[...], 0.0)
    y2e_ref[:, M:] = jnp.zeros((C2, 128), jnp.float32)

    # ---- maxpool(2) fused into conv3 im2col; conv3 lives at lane stride 4 --
    for c in range(0, M, TC):
        for k in range(K):
            lhs_ref[k * C2:(k + 1) * C2, :] = jnp.maximum(
                y2e_ref[:, c + 4 * k:c + 4 * k + TC],
                y2e_ref[:, c + 4 * k + 2:c + 4 * k + 2 + TC])
        y = jnp.dot(w3_ref[...], lhs_ref[...],
                    preferred_element_type=jnp.float32)
        y3e_ref[:, c:c + TC] = jnp.maximum(y + b3_ref[...], 0.0)
    y3e_ref[:, M:] = jnp.zeros((C3, 128), jnp.float32)

    # ---- maxpool(6) + linear head: one 128-lane output window per sample ---
    # Pooled position i of sample b ends up at output-window lane 24*i.
    for b in range(b_blk):
        base = b * S
        win = y3e_ref[:, base:base + 128]
        for u in range(1, pool3):
            win = jnp.maximum(
                win, y3e_ref[:, base + stride3 * u:base + stride3 * u + 128])
        z = jnp.dot(wl_ref[...], win, preferred_element_type=jnp.float32)
        out_ref[:, b * 128:(b + 1) * 128] = z + bl_ref[...]


def cellcnn_forward(x, params, feat_dim):
    """x: (B, L, Cin) float32 -> (B, P3, feat_dim) float32 (eval mode)."""
    B, L, Cin = x.shape
    w1, b1, w2, b2, w3, b3, wl, bl = params
    C1, C2, C3 = w1.shape[2], w2.shape[2], w3.shape[2]
    C0 = _rup(max(Cin, 1), 8)                       # conv1 in-channels, padded

    L1 = L - K + 1;  P1 = (L1 - POOLS[0]) // POOLS[0] + 1
    L2 = P1 - K + 1; P2 = (L2 - POOLS[1]) // POOLS[1] + 1
    L3 = P2 - K + 1; P3 = (L3 - POOLS[2]) // POOLS[2] + 1
    assert L3 >= 1 and P3 >= 1, "sequence too short for CellCNN"

    stride3 = POOLS[0] * POOLS[1]          # spread lane stride of conv3 output
    out_stride = stride3 * POOLS[2]        # spread lane stride of pooled output
    assert out_stride * (P3 - 1) + stride3 * (POOLS[2] - 1) < 128, \
        "sequence too long for 128-lane output window"
    # TODO(synk): widen the per-sample output window for longer sequences.

    S = _rup(L, 128)                       # per-sample lane slab
    b_blk = _pick_b_blk(B, S)
    num_blocks = B // b_blk
    M = b_blk * S
    TC = _pick_chunk(M)
    F_pad = _rup(feat_dim, 8)

    # ---- wrapper-side layout plumbing (plain XLA) ---------------------------
    # Transposed, channel-padded, length-padded input: (C0, B*S).
    xp = jnp.pad(x.astype(jnp.float32), ((0, 0), (0, S - L), (0, C0 - Cin)))
    x_t = jnp.transpose(xp, (2, 0, 1)).reshape(C0, B * S)

    # Conv weights -> (Cout, K*Cin) transposed im2col form; biases -> (C, 1).
    w1t = jnp.transpose(jnp.pad(w1, ((0, 0), (0, C0 - Cin), (0, 0))),
                        (2, 0, 1)).reshape(C1, K * C0)
    w2t = jnp.transpose(w2, (2, 0, 1)).reshape(C2, K * C1)
    w3t = jnp.transpose(w3, (2, 0, 1)).reshape(C3, K * C2)
    wlt = jnp.pad(jnp.transpose(wl, (1, 0)), ((0, F_pad - feat_dim), (0, 0)))
    b1t = b1.reshape(C1, 1)
    b2t = b2.reshape(C2, 1)
    b3t = b3.reshape(C3, 1)
    blt = jnp.pad(bl.reshape(feat_dim, 1), ((0, F_pad - feat_dim), (0, 0)))

    kern = functools.partial(cellcnn_kernel, b_blk=b_blk, S=S, TC=TC,
                             chans=(C0, C1, C2, C3), pool3=POOLS[2],
                             stride3=stride3)
    out = pl.pallas_call(
        kern,
        out_shape=jax.ShapeDtypeStruct((num_blocks * F_pad, b_blk * 128),
                                       jnp.float32),
        grid_spec=pltpu.PrefetchScalarGridSpec(
            num_scalar_prefetch=0,
            grid=(num_blocks,),
            in_specs=[
                pl.BlockSpec((C0, M), lambda i: (0, i)),
                pl.BlockSpec((C1, K * C0), lambda i: (0, 0)),
                pl.BlockSpec((C1, 1), lambda i: (0, 0)),
                pl.BlockSpec((C2, K * C1), lambda i: (0, 0)),
                pl.BlockSpec((C2, 1), lambda i: (0, 0)),
                pl.BlockSpec((C3, K * C2), lambda i: (0, 0)),
                pl.BlockSpec((C3, 1), lambda i: (0, 0)),
                pl.BlockSpec((F_pad, C3), lambda i: (0, 0)),
                pl.BlockSpec((F_pad, 1), lambda i: (0, 0)),
            ],
            out_specs=pl.BlockSpec((F_pad, b_blk * 128), lambda i: (i, 0)),
            scratch_shapes=[
                pltpu.VMEM((C0, M + 128), jnp.float32),   # extended input
                pltpu.VMEM((C1, M + 128), jnp.float32),   # conv1 output
                pltpu.VMEM((C2, M + 128), jnp.float32),   # conv2 output
                pltpu.VMEM((C3, M + 128), jnp.float32),   # conv3 output
                pltpu.VMEM((K * C2, TC), jnp.float32),    # shared im2col chunk
            ],
        ),
        compiler_params=pltpu.CompilerParams(
            dimension_semantics=("parallel",)),
    )(x_t, w1t, b1t, w2t, b2t, w3t, b3t, wlt, blt)

    # Gather valid pooled positions (lanes 0, 24, 48, ...) wrapper-side.
    out = out.reshape(num_blocks, F_pad, b_blk, 128)
    cols = out_stride * jnp.arange(P3)
    out = jnp.take(out, cols, axis=3)                    # (nb, F_pad, b_blk, P3)
    out = jnp.transpose(out, (0, 2, 3, 1)).reshape(B, P3, F_pad)
    return out[:, :, :feat_dim]


def ref_forward(x, params):
    """Plain-JAX mirror of the PyTorch forward (eval mode) for checking."""
    w1, b1, w2, b2, w3, b3, wl, bl = params
    hp = jax.lax.Precision.HIGHEST

    def conv_relu(a, w, b):                         # a:(B,L,Ci) w:(K,Ci,Co)
        Lc = a.shape[1] - w.shape[0] + 1
        acc = jnp.zeros((a.shape[0], Lc, w.shape[2]), jnp.float32)
        for k in range(w.shape[0]):
            acc = acc + jnp.einsum('blc,cd->bld', a[:, k:k + Lc, :], w[k],
                                   precision=hp)
        return jnp.maximum(acc + b, 0.0)

    def maxpool(a, p):
        Lp = (a.shape[1] - p) // p + 1
        r = a[:, 0:Lp * p:p, :]
        for j in range(1, p):
            r = jnp.maximum(r, a[:, j:Lp * p:p, :])
        return r

    a = maxpool(conv_relu(x, w1, b1), POOLS[0])
    a = maxpool(conv_relu(a, w2, b2), POOLS[1])
    a = maxpool(conv_relu(a, w3, b3), POOLS[2])
    return jnp.einsum('blc,cf->blf', a, wl, precision=hp) + bl


def init_params(key, feat_dim):
    ks = jax.random.split(key, 8)

    def xavier(k, shape, fan_in, fan_out):
        std = (2.0 / (fan_in + fan_out)) ** 0.5
        return std * jax.random.normal(k, shape, jnp.float32)

    # Conv weights stored as (K, Cin, Cout); linear as (Cin, feat_dim).
    w1 = xavier(ks[0], (K, 3, 8), 3 * K, 8 * K)
    b1 = 0.01 * jax.random.normal(ks[1], (1, 8), jnp.float32)
    w2 = xavier(ks[2], (K, 8, 16), 8 * K, 16 * K)
    b2 = 0.01 * jax.random.normal(ks[3], (1, 16), jnp.float32)
    w3 = xavier(ks[4], (K, 16, 32), 16 * K, 32 * K)
    b3 = 0.01 * jax.random.normal(ks[5], (1, 32), jnp.float32)
    wl = xavier(ks[6], (32, feat_dim), 32, feat_dim)
    bl = 0.01 * jax.random.normal(ks[7], (1, feat_dim), jnp.float32)
    return (w1, b1, w2, b2, w3, b3, wl, bl)


if __name__ == "__main__":
    B, L, Cin, feat_dim = 2, 192, 3, 16
    key = jax.random.PRNGKey(0)
    pkey, xkey = jax.random.split(key)
    params = init_params(pkey, feat_dim)
    x = jax.random.normal(xkey, (B, L, Cin), jnp.float32)

    out = jax.block_until_ready(cellcnn_forward(x, params, feat_dim))
    ref = jax.block_until_ready(ref_forward(x, params))

    assert out.shape == ref.shape == (B, 3, feat_dim), (out.shape, ref.shape)
    assert bool(jnp.all(jnp.isfinite(out)))
    err = float(jnp.max(jnp.abs(out - ref)))
    assert err < 2e-3, err
    print("KERNEL_OK")
</pallas_src>

<mosaic_0001>
module attributes {stable_mosaic.version = 11 : i64} {
  func.func @cellcnn_kernel(%arg0: i32, %arg1: memref<8x256xf32, #tpu.memory_space<vmem>>, %arg2: memref<8x128xf32, #tpu.memory_space<vmem>>, %arg3: memref<8x1xf32, #tpu.memory_space<vmem>>, %arg4: memref<16x128xf32, #tpu.memory_space<vmem>>, %arg5: memref<16x1xf32, #tpu.memory_space<vmem>>, %arg6: memref<32x256xf32, #tpu.memory_space<vmem>>, %arg7: memref<32x1xf32, #tpu.memory_space<vmem>>, %arg8: memref<16x32xf32, #tpu.memory_space<vmem>>, %arg9: memref<16x1xf32, #tpu.memory_space<vmem>>, %arg10: memref<16x128xf32, #tpu.memory_space<vmem>>, %arg11: memref<8x384xf32, #tpu.memory_space<vmem>>, %arg12: memref<8x384xf32, #tpu.memory_space<vmem>>, %arg13: memref<16x384xf32, #tpu.memory_space<vmem>>, %arg14: memref<32x384xf32, #tpu.memory_space<vmem>>, %arg15: memref<256x256xf32, #tpu.memory_space<vmem>>) attributes {dimension_semantics = [#tpu.dimension_semantics<parallel>], iteration_bounds = array<i64: 2>, scalar_prefetch = 0 : i64, scratch_operands = 5 : i64, tpu.core_type = #tpu.core_type<tc>, window_params = [{transform_indices = @transform_0, window_bounds = array<i64: 8, 256>}, {pipeline_mode = #tpu.pipeline_mode<synchronous>, transform_indices = @transform_1, window_bounds = array<i64: 8, 128>}, {pipeline_mode = #tpu.pipeline_mode<synchronous>, transform_indices = @transform_2, window_bounds = array<i64: 8, 1>}, {pipeline_mode = #tpu.pipeline_mode<synchronous>, transform_indices = @transform_3, window_bounds = array<i64: 16, 128>}, {pipeline_mode = #tpu.pipeline_mode<synchronous>, transform_indices = @transform_4, window_bounds = array<i64: 16, 1>}, {pipeline_mode = #tpu.pipeline_mode<synchronous>, transform_indices = @transform_5, window_bounds = array<i64: 32, 256>}, {pipeline_mode = #tpu.pipeline_mode<synchronous>, transform_indices = @transform_6, window_bounds = array<i64: 32, 1>}, {pipeline_mode = #tpu.pipeline_mode<synchronous>, transform_indices = @transform_7, window_bounds = array<i64: 16, 32>}, {pipeline_mode = #tpu.pipeline_mode<synchronous>, transform_indices = @transform_8, window_bounds = array<i64: 16, 1>}, {transform_indices = @transform_9, window_bounds = array<i64: 16, 128>}]} {
    %c0 = arith.constant 0 : index
    %c0_0 = arith.constant 0 : index
    %0 = vector.load %arg1[%c0, %c0_0] : memref<8x256xf32, #tpu.memory_space<vmem>>, vector<8x256xf32>
    %c0_1 = arith.constant 0 : index
    %c0_2 = arith.constant 0 : index
    %1 = vector.load %arg11[%c0_1, %c0_2] : memref<8x384xf32, #tpu.memory_space<vmem>>, vector<8x256xf32>
    tpu.vector_store %arg11[%c0_1, %c0_2], %0 {strides = array<i32>} : memref<8x384xf32, #tpu.memory_space<vmem>>, vector<8x256xf32>,
    %cst = arith.constant 0.000000e+00 : f32
    %2 = vector.broadcast %cst : f32 to vector<8x128xf32>
    %c0_3 = arith.constant 0 : index
    %c256 = arith.constant 256 : index
    %3 = vector.load %arg11[%c0_3, %c256] : memref<8x384xf32, #tpu.memory_space<vmem>>, vector<8x128xf32>
    tpu.vector_store %arg11[%c0_3, %c256], %2 {strides = array<i32>} : memref<8x384xf32, #tpu.memory_space<vmem>>, vector<8x128xf32>,
    %c0_4 = arith.constant 0 : index
    %c0_5 = arith.constant 0 : index
    %4 = vector.load %arg11[%c0_4, %c0_5] : memref<8x384xf32, #tpu.memory_space<vmem>>, vector<8x256xf32>
    %c0_6 = arith.constant 0 : index
    %c0_7 = arith.constant 0 : index
    %5 = vector.load %arg15[%c0_6, %c0_7] : memref<256x256xf32, #tpu.memory_space<vmem>>, vector<8x256xf32>
    tpu.vector_store %arg15[%c0_6, %c0_7], %4 {strides = array<i32>} : memref<256x256xf32, #tpu.memory_space<vmem>>, vector<8x256xf32>,
    %c0_8 = arith.constant 0 : index
    %c1 = arith.constant 1 : index
    %6 = vector.load %arg11[%c0_8, %c1] : memref<8x384xf32, #tpu.memory_space<vmem>>, vector<8x256xf32>
    %c8 = arith.constant 8 : index
    %c0_9 = arith.constant 0 : index
    %7 = vector.load %arg15[%c8, %c0_9] : memref<256x256xf32, #tpu.memory_space<vmem>>, vector<8x256xf32>
    tpu.vector_store %arg15[%c8, %c0_9], %6 {strides = array<i32>} : memref<256x256xf32, #tpu.memory_space<vmem>>, vector<8x256xf32>,
    %c0_10 = arith.constant 0 : index
    %c2 = arith.constant 2 : index
    %8 = vector.load %arg11[%c0_10, %c2] : memref<8x384xf32, #tpu.memory_space<vmem>>, vector<8x256xf32>
    %c16 = arith.constant 16 : index
    %c0_11 = arith.constant 0 : index
    %9 = vector.load %arg15[%c16, %c0_11] : memref<256x256xf32, #tpu.memory_space<vmem>>, vector<8x256xf32>
    tpu.vector_store %arg15[%c16, %c0_11], %8 {strides = array<i32>} : memref<256x256xf32, #tpu.memory_space<vmem>>, vector<8x256xf32>,
    %c0_12 = arith.constant 0 : index
    %c3 = arith.constant 3 : index
    %10 = vector.load %arg11[%c0_12, %c3] : memref<8x384xf32, #tpu.memory_space<vmem>>, vector<8x256xf32>
    %c24 = arith.constant 24 : index
    %c0_13 = arith.constant 0 : index
    %11 = vector.load %arg15[%c24, %c0_13] : memref<256x256xf32, #tpu.memory_space<vmem>>, vector<8x256xf32>
    tpu.vector_store %arg15[%c24, %c0_13], %10 {strides = array<i32>} : memref<256x256xf32, #tpu.memory_space<vmem>>, vector<8x256xf32>,
    %c0_14 = arith.constant 0 : index
    %c4 = arith.constant 4 : index
    %12 = vector.load %arg11[%c0_14, %c4] : memref<8x384xf32, #tpu.memory_space<vmem>>, vector<8x256xf32>
    %c32 = arith.constant 32 : index
    %c0_15 = arith.constant 0 : index
    %13 = vector.load %arg15[%c32, %c0_15] : memref<256x256xf32, #tpu.memory_space<vmem>>, vector<8x256xf32>
    tpu.vector_store %arg15[%c32, %c0_15], %12 {strides = array<i32>} : memref<256x256xf32, #tpu.memory_space<vmem>>, vector<8x256xf32>,
    %c0_16 = arith.constant 0 : index
    %c5 = arith.constant 5 : index
    %14 = vector.load %arg11[%c0_16, %c5] : memref<8x384xf32, #tpu.memory_space<vmem>>, vector<8x256xf32>
    %c40 = arith.constant 40 : index
    %c0_17 = arith.constant 0 : index
    %15 = vector.load %arg15[%c40, %c0_17] : memref<256x256xf32, #tpu.memory_space<vmem>>, vector<8x256xf32>
    tpu.vector_store %arg15[%c40, %c0_17], %14 {strides = array<i32>} : memref<256x256xf32, #tpu.memory_space<vmem>>, vector<8x256xf32>,
    %c0_18 = arith.constant 0 : index
    %c6 = arith.constant 6 : index
    %16 = vector.load %arg11[%c0_18, %c6] : memref<8x384xf32, #tpu.memory_space<vmem>>, vector<8x256xf32>
    %c48 = arith.constant 48 : index
    %c0_19 = arith.constant 0 : index
    %17 = vector.load %arg15[%c48, %c0_19] : memref<256x256xf32, #tpu.memory_space<vmem>>, vector<8x256xf32>
    tpu.vector_store %arg15[%c48, %c0_19], %16 {strides = array<i32>} : memref<256x256xf32, #tpu.memory_space<vmem>>, vector<8x256xf32>,
    %c0_20 = arith.constant 0 : index
    %c7 = arith.constant 7 : index
    %18 = vector.load %arg11[%c0_20, %c7] : memref<8x384xf32, #tpu.memory_space<vmem>>, vector<8x256xf32>
    %c56 = arith.constant 56 : index
    %c0_21 = arith.constant 0 : index
    %19 = vector.load %arg15[%c56, %c0_21] : memref<256x256xf32, #tpu.memory_space<vmem>>, vector<8x256xf32>
    tpu.vector_store %arg15[%c56, %c0_21], %18 {strides = array<i32>} : memref<256x256xf32, #tpu.memory_space<vmem>>, vector<8x256xf32>,
    %c0_22 = arith.constant 0 : index
    %c8_23 = arith.constant 8 : index
    %20 = vector.load %arg11[%c0_22, %c8_23] : memref<8x384xf32, #tpu.memory_space<vmem>>, vector<8x256xf32>
    %c64 = arith.constant 64 : index
    %c0_24 = arith.constant 0 : index
    %21 = vector.load %arg15[%c64, %c0_24] : memref<256x256xf32, #tpu.memory_space<vmem>>, vector<8x256xf32>
    tpu.vector_store %arg15[%c64, %c0_24], %20 {strides = array<i32>} : memref<256x256xf32, #tpu.memory_space<vmem>>, vector<8x256xf32>,
    %c0_25 = arith.constant 0 : index
    %c9 = arith.constant 9 : index
    %22 = vector.load %arg11[%c0_25, %c9] : memref<8x384xf32, #tpu.memory_space<vmem>>, vector<8x256xf32>
    %c72 = arith.constant 72 : index
    %c0_26 = arith.constant 0 : index
    %23 = vector.load %arg15[%c72, %c0_26] : memref<256x256xf32, #tpu.memory_space<vmem>>, vector<8x256xf32>
    tpu.vector_store %arg15[%c72, %c0_26], %22 {strides = array<i32>} : memref<256x256xf32, #tpu.memory_space<vmem>>, vector<8x256xf32>,
    %c0_27 = arith.constant 0 : index
    %c10 = arith.constant 10 : index
    %24 = vector.load %arg11[%c0_27, %c10] : memref<8x384xf32, #tpu.memory_space<vmem>>, vector<8x256xf32>
    %c80 = arith.constant 80 : index
    %c0_28 = arith.constant 0 : index
    %25 = vector.load %arg15[%c80, %c0_28] : memref<256x256xf32, #tpu.memory_space<vmem>>, vector<8x256xf32>
    tpu.vector_store %arg15[%c80, %c0_28], %24 {strides = array<i32>} : memref<256x256xf32, #tpu.memory_space<vmem>>, vector<8x256xf32>,
    %c0_29 = arith.constant 0 : index
    %c11 = arith.constant 11 : index
    %26 = vector.load %arg11[%c0_29, %c11] : memref<8x384xf32, #tpu.memory_space<vmem>>, vector<8x256xf32>
    %c88 = arith.constant 88 : index
    %c0_30 = arith.constant 0 : index
    %27 = vector.load %arg15[%c88, %c0_30] : memref<256x256xf32, #tpu.memory_space<vmem>>, vector<8x256xf32>
    tpu.vector_store %arg15[%c88, %c0_30], %26 {strides = array<i32>} : memref<256x256xf32, #tpu.memory_space<vmem>>, vector<8x256xf32>,
    %c0_31 = arith.constant 0 : index
    %c12 = arith.constant 12 : index
    %28 = vector.load %arg11[%c0_31, %c12] : memref<8x384xf32, #tpu.memory_space<vmem>>, vector<8x256xf32>
    %c96 = arith.constant 96 : index
    %c0_32 = arith.constant 0 : index
    %29 = vector.load %arg15[%c96, %c0_32] : memref<256x256xf32, #tpu.memory_space<vmem>>, vector<8x256xf32>
    tpu.vector_store %arg15[%c96, %c0_32], %28 {strides = array<i32>} : memref<256x256xf32, #tpu.memory_space<vmem>>, vector<8x256xf32>,
    %c0_33 = arith.constant 0 : index
    %c13 = arith.constant 13 : index
    %30 = vector.load %arg11[%c0_33, %c13] : memref<8x384xf32, #tpu.memory_space<vmem>>, vector<8x256xf32>
    %c104 = arith.constant 104 : index
    %c0_34 = arith.constant 0 : index
    %31 = vector.load %arg15[%c104, %c0_34] : memref<256x256xf32, #tpu.memory_space<vmem>>, vector<8x256xf32>
    tpu.vector_store %arg15[%c104, %c0_34], %30 {strides = array<i32>} : memref<256x256xf32, #tpu.memory_space<vmem>>, vector<8x256xf32>,
    %c0_35 = arith.constant 0 : index
    %c14 = arith.constant 14 : index
    %32 = vector.load %arg11[%c0_35, %c14] : memref<8x384xf32, #tpu.memory_space<vmem>>, vector<8x256xf32>
    %c112 = arith.constant 112 : index
    %c0_36 = arith.constant 0 : index
    %33 = vector.load %arg15[%c112, %c0_36] : memref<256x256xf32, #tpu.memory_space<vmem>>, vector<8x256xf32>
    tpu.vector_store %arg15[%c112, %c0_36], %32 {strides = array<i32>} : memref<256x256xf32, #tpu.memory_space<vmem>>, vector<8x256xf32>,
    %c0_37 = arith.constant 0 : index
    %c15 = arith.constant 15 : index
    %34 = vector.load %arg11[%c0_37, %c15] : memref<8x384xf32, #tpu.memory_space<vmem>>, vector<8x256xf32>
    %c120 = arith.constant 120 : index
    %c0_38 = arith.constant 0 : index
    %35 = vector.load %arg15[%c120, %c0_38] : memref<256x256xf32, #tpu.memory_space<vmem>>, vector<8x256xf32>
    tpu.vector_store %arg15[%c120, %c0_38], %34 {strides = array<i32>} : memref<256x256xf32, #tpu.memory_space<vmem>>, vector<8x256xf32>,
    %c0_39 = arith.constant 0 : index
    %c0_40 = arith.constant 0 : index
    %36 = vector.load %arg2[%c0_39, %c0_40] : memref<8x128xf32, #tpu.memory_space<vmem>>, vector<8x128xf32>
    %c0_41 = arith.constant 0 : index
    %c0_42 = arith.constant 0 : index
    %37 = vector.load %arg15[%c0_41, %c0_42] : memref<256x256xf32, #tpu.memory_space<vmem>>, vector<128x256xf32>
    %cst_43 = arith.constant dense<0.000000e+00> : vector<8x256xf32>
    %38 = tpu.matmul %36, %37, %cst_43 {dimension_numbers = #tpu.dot_dimension_numbers<[1], [0], [0], [1], [0, 0, 1, 1], [], []>} : vector<8x128xf32>, vector<128x256xf32>, vector<8x256xf32> -> vector<8x256xf32>
    %c0_44 = arith.constant 0 : index
    %c0_45 = arith.constant 0 : index
    %39 = vector.load %arg3[%c0_44, %c0_45] : memref<8x1xf32, #tpu.memory_space<vmem>>, vector<8x1xf32>
    %40 = vector.broadcast %39 : vector<8x1xf32> to vector<8x256xf32>
    %41 = arith.addf %38, %40 : vector<8x256xf32>
    %cst_46 = arith.constant 0.000000e+00 : f32
    %42 = vector.broadcast %cst_46 : f32 to vector<8x256xf32>
    %43 = arith.maximumf %41, %42 : vector<8x256xf32>
    %c0_47 = arith.constant 0 : index
    %c0_48 = arith.constant 0 : index
    %44 = vector.load %arg12[%c0_47, %c0_48] : memref<8x384xf32, #tpu.memory_space<vmem>>, vector<8x256xf32>
    tpu.vector_store %arg12[%c0_47, %c0_48], %43 {strides = array<i32>} : memref<8x384xf32, #tpu.memory_space<vmem>>, vector<8x256xf32>,
    %cst_49 = arith.constant 0.000000e+00 : f32
    %45 = vector.broadcast %cst_49 : f32 to vector<8x128xf32>
    %c0_50 = arith.constant 0 : index
    %c256_51 = arith.constant 256 : index
    %46 = vector.load %arg12[%c0_50, %c256_51] : memref<8x384xf32, #tpu.memory_space<vmem>>, vector<8x128xf32>
    tpu.vector_store %arg12[%c0_50, %c256_51], %45 {strides = array<i32>} : memref<8x384xf32, #tpu.memory_space<vmem>>, vector<8x128xf32>,
    %c0_52 = arith.constant 0 : index
    %c0_53 = arith.constant 0 : index
    %47 = vector.load %arg12[%c0_52, %c0_53] : memref<8x384xf32, #tpu.memory_space<vmem>>, vector<8x256xf32>
    %c0_54 = arith.constant 0 : index
    %c1_55 = arith.constant 1 : index
    %48 = vector.load %arg12[%c0_54, %c1_55] : memref<8x384xf32, #tpu.memory_space<vmem>>, vector<8x256xf32>
    %49 = arith.maximumf %47, %48 : vector<8x256xf32>
    %c0_56 = arith.constant 0 : index
    %c0_57 = arith.constant 0 : index
    %50 = vector.load %arg15[%c0_56, %c0_57] : memref<256x256xf32, #tpu.memory_space<vmem>>, vector<8x256xf32>
    tpu.vector_store %arg15[%c0_56, %c0_57], %49 {strides = array<i32>} : memref<256x256xf32, #tpu.memory_space<vmem>>, vector<8x256xf32>,
    %c0_58 = arith.constant 0 : index
    %c2_59 = arith.constant 2 : index
    %51 = vector.load %arg12[%c0_58, %c2_59] : memref<8x384xf32, #tpu.memory_space<vmem>>, vector<8x256xf32>
    %c0_60 = arith.constant 0 : index
    %c3_61 = arith.constant 3 : index
    %52 = vector.load %arg12[%c0_60, %c3_61] : memref<8x384xf32, #tpu.memory_space<vmem>>, vector<8x256xf32>
    %53 = arith.maximumf %51, %52 : vector<8x256xf32>
    %c8_62 = arith.constant 8 : index
    %c0_63 = arith.constant 0 : index
    %54 = vector.load %arg15[%c8_62, %c0_63] : memref<256x256xf32, #tpu.memory_space<vmem>>, vector<8x256xf32>
    tpu.vector_store %arg15[%c8_62, %c0_63], %53 {strides = array<i32>} : memref<256x256xf32, #tpu.memory_space<vmem>>, vector<8x256xf32>,
    %c0_64 = arith.constant 0 : index
    %c4_65 = arith.constant 4 : index
    %55 = vector.load %arg12[%c0_64, %c4_65] : memref<8x384xf32, #tpu.memory_space<vmem>>, vector<8x256xf32>
    %c0_66 = arith.constant 0 : index
    %c5_67 = arith.constant 5 : index
    %56 = vector.load %arg12[%c0_66, %c5_67] : memref<8x384xf32, #tpu.memory_space<vmem>>, vector<8x256xf32>
    %57 = arith.maximumf %55, %56 : vector<8x256xf32>
    %c16_68 = arith.constant 16 : index
    %c0_69 = arith.constant 0 : index
    %58 = vector.load %arg15[%c16_68, %c0_69] : memref<256x256xf32, #tpu.memory_space<vmem>>, vector<8x256xf32>
    tpu.vector_store %arg15[%c16_68, %c0_69], %57 {strides = array<i32>} : memref<256x256xf32, #tpu.memory_space<vmem>>, vector<8x256xf32>,
    %c0_70 = arith.constant 0 : index
    %c6_71 = arith.constant 6 : index
    %59 = vector.load %arg12[%c0_70, %c6_71] : memref<8x384xf32, #tpu.memory_space<vmem>>, vector<8x256xf32>
    %c0_72 = arith.constant 0 : index
    %c7_73 = arith.constant 7 : index
    %60 = vector.load %arg12[%c0_72, %c7_73] : memref<8x384xf32, #tpu.memory_space<vmem>>, vector<8x256xf32>
    %61 = arith.maximumf %59, %60 : vector<8x256xf32>
    %c24_74 = arith.constant 24 : index
    %c0_75 = arith.constant 0 : index
    %62 = vector.load %arg15[%c24_74, %c0_75] : memref<256x256xf32, #tpu.memory_space<vmem>>, vector<8x256xf32>
    tpu.vector_store %arg15[%c24_74, %c0_75], %61 {strides = array<i32>} : memref<256x256xf32, #tpu.memory_space<vmem>>, vector<8x256xf32>,
    %c0_76 = arith.constant 0 : index
    %c8_77 = arith.constant 8 : index
    %63 = vector.load %arg12[%c0_76, %c8_77] : memref<8x384xf32, #tpu.memory_space<vmem>>, vector<8x256xf32>
    %c0_78 = arith.constant 0 : index
    %c9_79 = arith.constant 9 : index
    %64 = vector.load %arg12[%c0_78, %c9_79] : memref<8x384xf32, #tpu.memory_space<vmem>>, vector<8x256xf32>
    %65 = arith.maximumf %63, %64 : vector<8x256xf32>
    %c32_80 = arith.constant 32 : index
    %c0_81 = arith.constant 0 : index
    %66 = vector.load %arg15[%c32_80, %c0_81] : memref<256x256xf32, #tpu.memory_space<vmem>>, vector<8x256xf32>
    tpu.vector_store %arg15[%c32_80, %c0_81], %65 {strides = array<i32>} : memref<256x256xf32, #tpu.memory_space<vmem>>, vector<8x256xf32>,
    %c0_82 = arith.constant 0 : index
    %c10_83 = arith.constant 10 : index
    %67 = vector.load %arg12[%c0_82, %c10_83] : memref<8x384xf32, #tpu.memory_space<vmem>>, vector<8x256xf32>
    %c0_84 = arith.constant 0 : index
    %c11_85 = arith.constant 11 : index
    %68 = vector.load %arg12[%c0_84, %c11_85] : memref<8x384xf32, #tpu.memory_space<vmem>>, vector<8x256xf32>
    %69 = arith.maximumf %67, %68 : vector<8x256xf32>
    %c40_86 = arith.constant 40 : index
    %c0_87 = arith.constant 0 : index
    %70 = vector.load %arg15[%c40_86, %c0_87] : memref<256x256xf32, #tpu.memory_space<vmem>>, vector<8x256xf32>
    tpu.vector_store %arg15[%c40_86, %c0_87], %69 {strides = array<i32>} : memref<256x256xf32, #tpu.memory_space<vmem>>, vector<8x256xf32>,
    %c0_88 = arith.constant 0 : index
    %c12_89 = arith.constant 12 : index
    %71 = vector.load %arg12[%c0_88, %c12_89] : memref<8x384xf32, #tpu.memory_space<vmem>>, vector<8x256xf32>
    %c0_90 = arith.constant 0 : index
    %c13_91 = arith.constant 13 : index
    %72 = vector.load %arg12[%c0_90, %c13_91] : memref<8x384xf32, #tpu.memory_space<vmem>>, vector<8x256xf32>
    %73 = arith.maximumf %71, %72 : vector<8x256xf32>
    %c48_92 = arith.constant 48 : index
    %c0_93 = arith.constant 0 : index
    %74 = vector.load %arg15[%c48_92, %c0_93] : memref<256x256xf32, #tpu.memory_space<vmem>>, vector<8x256xf32>
    tpu.vector_store %arg15[%c48_92, %c0_93], %73 {strides = array<i32>} : memref<256x256xf32, #tpu.memory_space<vmem>>, vector<8x256xf32>,
    %c0_94 = arith.constant 0 : index
    %c14_95 = arith.constant 14 : index
    %75 = vector.load %arg12[%c0_94, %c14_95] : memref<8x384xf32, #tpu.memory_space<vmem>>, vector<8x256xf32>
    %c0_96 = arith.constant 0 : index
    %c15_97 = arith.constant 15 : index
    %76 = vector.load %arg12[%c0_96, %c15_97] : memref<8x384xf32, #tpu.memory_space<vmem>>, vector<8x256xf32>
    %77 = arith.maximumf %75, %76 : vector<8x256xf32>
    %c56_98 = arith.constant 56 : index
    %c0_99 = arith.constant 0 : index
    %78 = vector.load %arg15[%c56_98, %c0_99] : memref<256x256xf32, #tpu.memory_space<vmem>>, vector<8x256xf32>
    tpu.vector_store %arg15[%c56_98, %c0_99], %77 {strides = array<i32>} : memref<256x256xf32, #tpu.memory_space<vmem>>, vector<8x256xf32>,
    %c0_100 = arith.constant 0 : index
    %c16_101 = arith.constant 16 : index
    %79 = vector.load %arg12[%c0_100, %c16_101] : memref<8x384xf32, #tpu.memory_space<vmem>>, vector<8x256xf32>
    %c0_102 = arith.constant 0 : index
    %c17 = arith.constant 17 : index
    %80 = vector.load %arg12[%c0_102, %c17] : memref<8x384xf32, #tpu.memory_space<vmem>>, vector<8x256xf32>
    %81 = arith.maximumf %79, %80 : vector<8x256xf32>
    %c64_103 = arith.constant 64 : index
    %c0_104 = arith.constant 0 : index
    %82 = vector.load %arg15[%c64_103, %c0_104] : memref<256x256xf32, #tpu.memory_space<vmem>>, vector<8x256xf32>
    tpu.vector_store %arg15[%c64_103, %c0_104], %81 {strides = array<i32>} : memref<256x256xf32, #tpu.memory_space<vmem>>, vector<8x256xf32>,
    %c0_105 = arith.constant 0 : index
    %c18 = arith.constant 18 : index
    %83 = vector.load %arg12[%c0_105, %c18] : memref<8x384xf32, #tpu.memory_space<vmem>>, vector<8x256xf32>
    %c0_106 = arith.constant 0 : index
    %c19 = arith.constant 19 : index
    %84 = vector.load %arg12[%c0_106, %c19] : memref<8x384xf32, #tpu.memory_space<vmem>>, vector<8x256xf32>
    %85 = arith.maximumf %83, %84 : vector<8x256xf32>
    %c72_107 = arith.constant 72 : index
    %c0_108 = arith.constant 0 : index
    %86 = vector.load %arg15[%c72_107, %c0_108] : memref<256x256xf32, #tpu.memory_space<vmem>>, vector<8x256xf32>
    tpu.vector_store %arg15[%c72_107, %c0_108], %85 {strides = array<i32>} : memref<256x256xf32, #tpu.memory_space<vmem>>, vector<8x256xf32>,
    %c0_109 = arith.constant 0 : index
    %c20 = arith.constant 20 : index
    %87 = vector.load %arg12[%c0_109, %c20] : memref<8x384xf32, #tpu.memory_space<vmem>>, vector<8x256xf32>
    %c0_110 = arith.constant 0 : index
    %c21 = arith.constant 21 : index
    %88 = vector.load %arg12[%c0_110, %c21] : memref<8x384xf32, #tpu.memory_space<vmem>>, vector<8x256xf32>
    %89 = arith.maximumf %87, %88 : vector<8x256xf32>
    %c80_111 = arith.constant 80 : index
    %c0_112 = arith.constant 0 : index
    %90 = vector.load %arg15[%c80_111, %c0_112] : memref<256x256xf32, #tpu.memory_space<vmem>>, vector<8x256xf32>
    tpu.vector_store %arg15[%c80_111, %c0_112], %89 {strides = array<i32>} : memref<256x256xf32, #tpu.memory_space<vmem>>, vector<8x256xf32>,
    %c0_113 = arith.constant 0 : index
    %c22 = arith.constant 22 : index
    %91 = vector.load %arg12[%c0_113, %c22] : memref<8x384xf32, #tpu.memory_space<vmem>>, vector<8x256xf32>
    %c0_114 = arith.constant 0 : index
    %c23 = arith.constant 23 : index
    %92 = vector.load %arg12[%c0_114, %c23] : memref<8x384xf32, #tpu.memory_space<vmem>>, vector<8x256xf32>
    %93 = arith.maximumf %91, %92 : vector<8x256xf32>
    %c88_115 = arith.constant 88 : index
    %c0_116 = arith.constant 0 : index
    %94 = vector.load %arg15[%c88_115, %c0_116] : memref<256x256xf32, #tpu.memory_space<vmem>>, vector<8x256xf32>
    tpu.vector_store %arg15[%c88_115, %c0_116], %93 {strides = array<i32>} : memref<256x256xf32, #tpu.memory_space<vmem>>, vector<8x256xf32>,
    %c0_117 = arith.constant 0 : index
    %c24_118 = arith.constant 24 : index
    %95 = vector.load %arg12[%c0_117, %c24_118] : memref<8x384xf32, #tpu.memory_space<vmem>>, vector<8x256xf32>
    %c0_119 = arith.constant 0 : index
    %c25 = arith.constant 25 : index
    %96 = vector.load %arg12[%c0_119, %c25] : memref<8x384xf32, #tpu.memory_space<vmem>>, vector<8x256xf32>
    %97 = arith.maximumf %95, %96 : vector<8x256xf32>
    %c96_120 = arith.constant 96 : index
    %c0_121 = arith.constant 0 : index
    %98 = vector.load %arg15[%c96_120, %c0_121] : memref<256x256xf32, #tpu.memory_space<vmem>>, vector<8x256xf32>
    tpu.vector_store %arg15[%c96_120, %c0_121], %97 {strides = array<i32>} : memref<256x256xf32, #tpu.memory_space<vmem>>, vector<8x256xf32>,
    %c0_122 = arith.constant 0 : index
    %c26 = arith.constant 26 : index
    %99 = vector.load %arg12[%c0_122, %c26] : memref<8x384xf32, #tpu.memory_space<vmem>>, vector<8x256xf32>
    %c0_123 = arith.constant 0 : index
    %c27 = arith.constant 27 : index
    %100 = vector.load %arg12[%c0_123, %c27] : memref<8x384xf32, #tpu.memory_space<vmem>>, vector<8x256xf32>
    %101 = arith.maximumf %99, %100 : vector<8x256xf32>
    %c104_124 = arith.constant 104 : index
    %c0_125 = arith.constant 0 : index
    %102 = vector.load %arg15[%c104_124, %c0_125] : memref<256x256xf32, #tpu.memory_space<vmem>>, vector<8x256xf32>
    tpu.vector_store %arg15[%c104_124, %c0_125], %101 {strides = array<i32>} : memref<256x256xf32, #tpu.memory_space<vmem>>, vector<8x256xf32>,
    %c0_126 = arith.constant 0 : index
    %c28 = arith.constant 28 : index
    %103 = vector.load %arg12[%c0_126, %c28] : memref<8x384xf32, #tpu.memory_space<vmem>>, vector<8x256xf32>
    %c0_127 = arith.constant 0 : index
    %c29 = arith.constant 29 : index
    %104 = vector.load %arg12[%c0_127, %c29] : memref<8x384xf32, #tpu.memory_space<vmem>>, vector<8x256xf32>
    %105 = arith.maximumf %103, %104 : vector<8x256xf32>
    %c112_128 = arith.constant 112 : index
    %c0_129 = arith.constant 0 : index
    %106 = vector.load %arg15[%c112_128, %c0_129] : memref<256x256xf32, #tpu.memory_space<vmem>>, vector<8x256xf32>
    tpu.vector_store %arg15[%c112_128, %c0_129], %105 {strides = array<i32>} : memref<256x256xf32, #tpu.memory_space<vmem>>, vector<8x256xf32>,
    %c0_130 = arith.constant 0 : index
    %c30 = arith.constant 30 : index
    %107 = vector.load %arg12[%c0_130, %c30] : memref<8x384xf32, #tpu.memory_space<vmem>>, vector<8x256xf32>
    %c0_131 = arith.constant 0 : index
    %c31 = arith.constant 31 : index
    %108 = vector.load %arg12[%c0_131, %c31] : memref<8x384xf32, #tpu.memory_space<vmem>>, vector<8x256xf32>
    %109 = arith.maximumf %107, %108 : vector<8x256xf32>
    %c120_132 = arith.constant 120 : index
    %c0_133 = arith.constant 0 : index
    %110 = vector.load %arg15[%c120_132, %c0_133] : memref<256x256xf32, #tpu.memory_space<vmem>>, vector<8x256xf32>
    tpu.vector_store %arg15[%c120_132, %c0_133], %109 {strides = array<i32>} : memref<256x256xf32, #tpu.memory_space<vmem>>, vector<8x256xf32>,
    %c0_134 = arith.constant 0 : index
    %c0_135 = arith.constant 0 : index
    %111 = vector.load %arg4[%c0_134, %c0_135] : memref<16x128xf32, #tpu.memory_space<vmem>>, vector<16x128xf32>
    %c0_136 = arith.constant 0 : index
    %c0_137 = arith.constant 0 : index
    %112 = vector.load %arg15[%c0_136, %c0_137] : memref<256x256xf32, #tpu.memory_space<vmem>>, vector<128x256xf32>
    %cst_138 = arith.constant dense<0.000000e+00> : vector<16x256xf32>
    %113 = tpu.matmul %111, %112, %cst_138 {dimension_numbers = #tpu.dot_dimension_numbers<[1], [0], [0], [1], [0, 0, 1, 1], [], []>} : vector<16x128xf32>, vector<128x256xf32>, vector<16x256xf32> -> vector<16x256xf32>
    %c0_139 = arith.constant 0 : index
    %c0_140 = arith.constant 0 : index
    %114 = vector.load %arg5[%c0_139, %c0_140] : memref<16x1xf32, #tpu.memory_space<vmem>>, vector<16x1xf32>
    %115 = vector.broadcast %114 : vector<16x1xf32> to vector<16x256xf32>
    %116 = arith.addf %113, %115 : vector<16x256xf32>
    %cst_141 = arith.constant 0.000000e+00 : f32
    %117 = vector.broadcast %cst_141 : f32 to vector<16x256xf32>
    %118 = arith.maximumf %116, %117 : vector<16x256xf32>
    %c0_142 = arith.constant 0 : index
    %c0_143 = arith.constant 0 : index
    %119 = vector.load %arg13[%c0_142, %c0_143] : memref<16x384xf32, #tpu.memory_space<vmem>>, vector<16x256xf32>
    tpu.vector_store %arg13[%c0_142, %c0_143], %118 {strides = array<i32>} : memref<16x384xf32, #tpu.memory_space<vmem>>, vector<16x256xf32>,
    %cst_144 = arith.constant 0.000000e+00 : f32
    %120 = vector.broadcast %cst_144 : f32 to vector<16x128xf32>
    %c0_145 = arith.constant 0 : index
    %c256_146 = arith.constant 256 : index
    %121 = vector.load %arg13[%c0_145, %c256_146] : memref<16x384xf32, #tpu.memory_space<vmem>>, vector<16x128xf32>
    tpu.vector_store %arg13[%c0_145, %c256_146], %120 {strides = array<i32>} : memref<16x384xf32, #tpu.memory_space<vmem>>, vector<16x128xf32>,
    %c0_147 = arith.constant 0 : index
    %c0_148 = arith.constant 0 : index
    %122 = vector.load %arg13[%c0_147, %c0_148] : memref<16x384xf32, #tpu.memory_space<vmem>>, vector<16x256xf32>
    %c0_149 = arith.constant 0 : index
    %c2_150 = arith.constant 2 : index
    %123 = vector.load %arg13[%c0_149, %c2_150] : memref<16x384xf32, #tpu.memory_space<vmem>>, vector<16x256xf32>
    %124 = arith.maximumf %122, %123 : vector<16x256xf32>
    %c0_151 = arith.constant 0 : index
    %c0_152 = arith.constant 0 : index
    %125 = vector.load %arg15[%c0_151, %c0_152] : memref<256x256xf32, #tpu.memory_space<vmem>>, vector<16x256xf32>
    tpu.vector_store %arg15[%c0_151, %c0_152], %124 {strides = array<i32>} : memref<256x256xf32, #tpu.memory_space<vmem>>, vector<16x256xf32>,
    %c0_153 = arith.constant 0 : index
    %c4_154 = arith.constant 4 : index
    %126 = vector.load %arg13[%c0_153, %c4_154] : memref<16x384xf32, #tpu.memory_space<vmem>>, vector<16x256xf32>
    %c0_155 = arith.constant 0 : index
    %c6_156 = arith.constant 6 : index
    %127 = vector.load %arg13[%c0_155, %c6_156] : memref<16x384xf32, #tpu.memory_space<vmem>>, vector<16x256xf32>
    %128 = arith.maximumf %126, %127 : vector<16x256xf32>
    %c16_157 = arith.constant 16 : index
    %c0_158 = arith.constant 0 : index
    %129 = vector.load %arg15[%c16_157, %c0_158] : memref<256x256xf32, #tpu.memory_space<vmem>>, vector<16x256xf32>
    tpu.vector_store %arg15[%c16_157, %c0_158], %128 {strides = array<i32>} : memref<256x256xf32, #tpu.memory_space<vmem>>, vector<16x256xf32>,
    %c0_159 = arith.constant 0 : index
    %c8_160 = arith.constant 8 : index
    %130 = vector.load %arg13[%c0_159, %c8_160] : memref<16x384xf32, #tpu.memory_space<vmem>>, vector<16x256xf32>
    %c0_161 = arith.constant 0 : index
    %c10_162 = arith.constant 10 : index
    %131 = vector.load %arg13[%c0_161, %c10_162] : memref<16x384xf32, #tpu.memory_space<vmem>>, vector<16x256xf32>
    %132 = arith.maximumf %130, %131 : vector<16x256xf32>
    %c32_163 = arith.constant 32 : index
    %c0_164 = arith.constant 0 : index
    %133 = vector.load %arg15[%c32_163, %c0_164] : memref<256x256xf32, #tpu.memory_space<vmem>>, vector<16x256xf32>
    tpu.vector_store %arg15[%c32_163, %c0_164], %132 {strides = array<i32>} : memref<256x256xf32, #tpu.memory_space<vmem>>, vector<16x256xf32>,
    %c0_165 = arith.constant 0 : index
    %c12_166 = arith.constant 12 : index
    %134 = vector.load %arg13[%c0_165, %c12_166] : memref<16x384xf32, #tpu.memory_space<vmem>>, vector<16x256xf32>
    %c0_167 = arith.constant 0 : index
    %c14_168 = arith.constant 14 : index
    %135 = vector.load %arg13[%c0_167, %c14_168] : memref<16x384xf32, #tpu.memory_space<vmem>>, vector<16x256xf32>
    %136 = arith.maximumf %134, %135 : vector<16x256xf32>
    %c48_169 = arith.constant 48 : index
    %c0_170 = arith.constant 0 : index
    %137 = vector.load %arg15[%c48_169, %c0_170] : memref<256x256xf32, #tpu.memory_space<vmem>>, vector<16x256xf32>
    tpu.vector_store %arg15[%c48_169, %c0_170], %136 {strides = array<i32>} : memref<256x256xf32, #tpu.memory_space<vmem>>, vector<16x256xf32>,
    %c0_171 = arith.constant 0 : index
    %c16_172 = arith.constant 16 : index
    %138 = vector.load %arg13[%c0_171, %c16_172] : memref<16x384xf32, #tpu.memory_space<vmem>>, vector<16x256xf32>
    %c0_173 = arith.constant 0 : index
    %c18_174 = arith.constant 18 : index
    %139 = vector.load %arg13[%c0_173, %c18_174] : memref<16x384xf32, #tpu.memory_space<vmem>>, vector<16x256xf32>
    %140 = arith.maximumf %138, %139 : vector<16x256xf32>
    %c64_175 = arith.constant 64 : index
    %c0_176 = arith.constant 0 : index
    %141 = vector.load %arg15[%c64_175, %c0_176] : memref<256x256xf32, #tpu.memory_space<vmem>>, vector<16x256xf32>
    tpu.vector_store %arg15[%c64_175, %c0_176], %140 {strides = array<i32>} : memref<256x256xf32, #tpu.memory_space<vmem>>, vector<16x256xf32>,
    %c0_177 = arith.constant 0 : index
    %c20_178 = arith.constant 20 : index
    %142 = vector.load %arg13[%c0_177, %c20_178] : memref<16x384xf32, #tpu.memory_space<vmem>>, vector<16x256xf32>
    %c0_179 = arith.constant 0 : index
    %c22_180 = arith.constant 22 : index
    %143 = vector.load %arg13[%c0_179, %c22_180] : memref<16x384xf32, #tpu.memory_space<vmem>>, vector<16x256xf32>
    %144 = arith.maximumf %142, %143 : vector<16x256xf32>
    %c80_181 = arith.constant 80 : index
    %c0_182 = arith.constant 0 : index
    %145 = vector.load %arg15[%c80_181, %c0_182] : memref<256x256xf32, #tpu.memory_space<vmem>>, vector<16x256xf32>
    tpu.vector_store %arg15[%c80_181, %c0_182], %144 {strides = array<i32>} : memref<256x256xf32, #tpu.memory_space<vmem>>, vector<16x256xf32>,
    %c0_183 = arith.constant 0 : index
    %c24_184 = arith.constant 24 : index
    %146 = vector.load %arg13[%c0_183, %c24_184] : memref<16x384xf32, #tpu.memory_space<vmem>>, vector<16x256xf32>
    %c0_185 = arith.constant 0 : index
    %c26_186 = arith.constant 26 : index
    %147 = vector.load %arg13[%c0_185, %c26_186] : memref<16x384xf32, #tpu.memory_space<vmem>>, vector<16x256xf32>
    %148 = arith.maximumf %146, %147 : vector<16x256xf32>
    %c96_187 = arith.constant 96 : index
    %c0_188 = arith.constant 0 : index
    %149 = vector.load %arg15[%c96_187, %c0_188] : memref<256x256xf32, #tpu.memory_space<vmem>>, vector<16x256xf32>
    tpu.vector_store %arg15[%c96_187, %c0_188], %148 {strides = array<i32>} : memref<256x256xf32, #tpu.memory_space<vmem>>, vector<16x256xf32>,
    %c0_189 = arith.constant 0 : index
    %c28_190 = arith.constant 28 : index
    %150 = vector.load %arg13[%c0_189, %c28_190] : memref<16x384xf32, #tpu.memory_space<vmem>>, vector<16x256xf32>
    %c0_191 = arith.constant 0 : index
    %c30_192 = arith.constant 30 : index
    %151 = vector.load %arg13[%c0_191, %c30_192] : memref<16x384xf32, #tpu.memory_space<vmem>>, vector<16x256xf32>
    %152 = arith.maximumf %150, %151 : vector<16x256xf32>
    %c112_193 = arith.constant 112 : index
    %c0_194 = arith.constant 0 : index
    %153 = vector.load %arg15[%c112_193, %c0_194] : memref<256x256xf32, #tpu.memory_space<vmem>>, vector<16x256xf32>
    tpu.vector_store %arg15[%c112_193, %c0_194], %152 {strides = array<i32>} : memref<256x256xf32, #tpu.memory_space<vmem>>, vector<16x256xf32>,
    %c0_195 = arith.constant 0 : index
    %c32_196 = arith.constant 32 : index
    %154 = vector.load %arg13[%c0_195, %c32_196] : memref<16x384xf32, #tpu.memory_space<vmem>>, vector<16x256xf32>
    %c0_197 = arith.constant 0 : index
    %c34 = arith.constant 34 : index
    %155 = vector.load %arg13[%c0_197, %c34] : memref<16x384xf32, #tpu.memory_space<vmem>>, vector<16x256xf32>
    %156 = arith.maximumf %154, %155 : vector<16x256xf32>
    %c128 = arith.constant 128 : index
    %c0_198 = arith.constant 0 : index
    %157 = vector.load %arg15[%c128, %c0_198] : memref<256x256xf32, #tpu.memory_space<vmem>>, vector<16x256xf32>
    tpu.vector_store %arg15[%c128, %c0_198], %156 {strides = array<i32>} : memref<256x256xf32, #tpu.memory_space<vmem>>, vector<16x256xf32>,
    %c0_199 = arith.constant 0 : index
    %c36 = arith.constant 36 : index
    %158 = vector.load %arg13[%c0_199, %c36] : memref<16x384xf32, #tpu.memory_space<vmem>>, vector<16x256xf32>
    %c0_200 = arith.constant 0 : index
    %c38 = arith.constant 38 : index
    %159 = vector.load %arg13[%c0_200, %c38] : memref<16x384xf32, #tpu.memory_space<vmem>>, vector<16x256xf32>
    %160 = arith.maximumf %158, %159 : vector<16x256xf32>
    %c144 = arith.constant 144 : index
    %c0_201 = arith.constant 0 : index
    %161 = vector.load %arg15[%c144, %c0_201] : memref<256x256xf32, #tpu.memory_space<vmem>>, vector<16x256xf32>
    tpu.vector_store %arg15[%c144, %c0_201], %160 {strides = array<i32>} : memref<256x256xf32, #tpu.memory_space<vmem>>, vector<16x256xf32>,
    %c0_202 = arith.constant 0 : index
    %c40_203 = arith.constant 40 : index
    %162 = vector.load %arg13[%c0_202, %c40_203] : memref<16x384xf32, #tpu.memory_space<vmem>>, vector<16x256xf32>
    %c0_204 = arith.constant 0 : index
    %c42 = arith.constant 42 : index
    %163 = vector.load %arg13[%c0_204, %c42] : memref<16x384xf32, #tpu.memory_space<vmem>>, vector<16x256xf32>
    %164 = arith.maximumf %162, %163 : vector<16x256xf32>
    %c160 = arith.constant 160 : index
    %c0_205 = arith.constant 0 : index
    %165 = vector.load %arg15[%c160, %c0_205] : memref<256x256xf32, #tpu.memory_space<vmem>>, vector<16x256xf32>
    tpu.vector_store %arg15[%c160, %c0_205], %164 {strides = array<i32>} : memref<256x256xf32, #tpu.memory_space<vmem>>, vector<16x256xf32>,
    %c0_206 = arith.constant 0 : index
    %c44 = arith.constant 44 : index
    %166 = vector.load %arg13[%c0_206, %c44] : memref<16x384xf32, #tpu.memory_space<vmem>>, vector<16x256xf32>
    %c0_207 = arith.constant 0 : index
    %c46 = arith.constant 46 : index
    %167 = vector.load %arg13[%c0_207, %c46] : memref<16x384xf32, #tpu.memory_space<vmem>>, vector<16x256xf32>
    %168 = arith.maximumf %166, %167 : vector<16x256xf32>
    %c176 = arith.constant 176 : index
    %c0_208 = arith.constant 0 : index
    %169 = vector.load %arg15[%c176, %c0_208] : memref<256x256xf32, #tpu.memory_space<vmem>>, vector<16x256xf32>
    tpu.vector_store %arg15[%c176, %c0_208], %168 {strides = array<i32>} : memref<256x256xf32, #tpu.memory_space<vmem>>, vector<16x256xf32>,
    %c0_209 = arith.constant 0 : index
    %c48_210 = arith.constant 48 : index
    %170 = vector.load %arg13[%c0_209, %c48_210] : memref<16x384xf32, #tpu.memory_space<vmem>>, vector<16x256xf32>
    %c0_211 = arith.constant 0 : index
    %c50 = arith.constant 50 : index
    %171 = vector.load %arg13[%c0_211, %c50] : memref<16x384xf32, #tpu.memory_space<vmem>>, vector<16x256xf32>
    %172 = arith.maximumf %170, %171 : vector<16x256xf32>
    %c192 = arith.constant 192 : index
    %c0_212 = arith.constant 0 : index
    %173 = vector.load %arg15[%c192, %c0_212] : memref<256x256xf32, #tpu.memory_space<vmem>>, vector<16x256xf32>
    tpu.vector_store %arg15[%c192, %c0_212], %172 {strides = array<i32>} : memref<256x256xf32, #tpu.memory_space<vmem>>, vector<16x256xf32>,
    %c0_213 = arith.constant 0 : index
    %c52 = arith.constant 52 : index
    %174 = vector.load %arg13[%c0_213, %c52] : memref<16x384xf32, #tpu.memory_space<vmem>>, vector<16x256xf32>
    %c0_214 = arith.constant 0 : index
    %c54 = arith.constant 54 : index
    %175 = vector.load %arg13[%c0_214, %c54] : memref<16x384xf32, #tpu.memory_space<vmem>>, vector<16x256xf32>
    %176 = arith.maximumf %174, %175 : vector<16x256xf32>
    %c208 = arith.constant 208 : index
    %c0_215 = arith.constant 0 : index
    %177 = vector.load %arg15[%c208, %c0_215] : memref<256x256xf32, #tpu.memory_space<vmem>>, vector<16x256xf32>
    tpu.vector_store %arg15[%c208, %c0_215], %176 {strides = array<i32>} : memref<256x256xf32, #tpu.memory_space<vmem>>, vector<16x256xf32>,
    %c0_216 = arith.constant 0 : index
    %c56_217 = arith.constant 56 : index
    %178 = vector.load %arg13[%c0_216, %c56_217] : memref<16x384xf32, #tpu.memory_space<vmem>>, vector<16x256xf32>
    %c0_218 = arith.constant 0 : index
    %c58 = arith.constant 58 : index
    %179 = vector.load %arg13[%c0_218, %c58] : memref<16x384xf32, #tpu.memory_space<vmem>>, vector<16x256xf32>
    %180 = arith.maximumf %178, %179 : vector<16x256xf32>
    %c224 = arith.constant 224 : index
    %c0_219 = arith.constant 0 : index
    %181 = vector.load %arg15[%c224, %c0_219] : memref<256x256xf32, #tpu.memory_space<vmem>>, vector<16x256xf32>
    tpu.vector_store %arg15[%c224, %c0_219], %180 {strides = array<i32>} : memref<256x256xf32, #tpu.memory_space<vmem>>, vector<16x256xf32>,
    %c0_220 = arith.constant 0 : index
    %c60 = arith.constant 60 : index
    %182 = vector.load %arg13[%c0_220, %c60] : memref<16x384xf32, #tpu.memory_space<vmem>>, vector<16x256xf32>
    %c0_221 = arith.constant 0 : index
    %c62 = arith.constant 62 : index
    %183 = vector.load %arg13[%c0_221, %c62] : memref<16x384xf32, #tpu.memory_space<vmem>>, vector<16x256xf32>
    %184 = arith.maximumf %182, %183 : vector<16x256xf32>
    %c240 = arith.constant 240 : index
    %c0_222 = arith.constant 0 : index
    %185 = vector.load %arg15[%c240, %c0_222] : memref<256x256xf32, #tpu.memory_space<vmem>>, vector<16x256xf32>
    tpu.vector_store %arg15[%c240, %c0_222], %184 {strides = array<i32>} : memref<256x256xf32, #tpu.memory_space<vmem>>, vector<16x256xf32>,
    %c0_223 = arith.constant 0 : index
    %c0_224 = arith.constant 0 : index
    %186 = vector.load %arg6[%c0_223, %c0_224] : memref<32x256xf32, #tpu.memory_space<vmem>>, vector<32x256xf32>
    %c0_225 = arith.constant 0 : index
    %c0_226 = arith.constant 0 : index
    %187 = vector.load %arg15[%c0_225, %c0_226] : memref<256x256xf32, #tpu.memory_space<vmem>>, vector<256x256xf32>
    %cst_227 = arith.constant dense<0.000000e+00> : vector<32x256xf32>
    %188 = tpu.matmul %186, %187, %cst_227 {dimension_numbers = #tpu.dot_dimension_numbers<[1], [0], [0], [1], [0, 0, 1, 1], [], []>} : vector<32x256xf32>, vector<256x256xf32>, vector<32x256xf32> -> vector<32x256xf32>
    %c0_228 = arith.constant 0 : index
    %c0_229 = arith.constant 0 : index
    %189 = vector.load %arg7[%c0_228, %c0_229] : memref<32x1xf32, #tpu.memory_space<vmem>>, vector<32x1xf32>
    %190 = vector.broadcast %189 : vector<32x1xf32> to vector<32x256xf32>
    %191 = arith.addf %188, %190 : vector<32x256xf32>
    %cst_230 = arith.constant 0.000000e+00 : f32
    %192 = vector.broadcast %cst_230 : f32 to vector<32x256xf32>
    %193 = arith.maximumf %191, %192 : vector<32x256xf32>
    %c0_231 = arith.constant 0 : index
    %c0_232 = arith.constant 0 : index
    %194 = vector.load %arg14[%c0_231, %c0_232] : memref<32x384xf32, #tpu.memory_space<vmem>>, vector<32x256xf32>
    tpu.vector_store %arg14[%c0_231, %c0_232], %193 {strides = array<i32>} : memref<32x384xf32, #tpu.memory_space<vmem>>, vector<32x256xf32>,
    %cst_233 = arith.constant 0.000000e+00 : f32
    %195 = vector.broadcast %cst_233 : f32 to vector<32x128xf32>
    %c0_234 = arith.constant 0 : index
    %c256_235 = arith.constant 256 : index
    %196 = vector.load %arg14[%c0_234, %c256_235] : memref<32x384xf32, #tpu.memory_space<vmem>>, vector<32x128xf32>
    tpu.vector_store %arg14[%c0_234, %c256_235], %195 {strides = array<i32>} : memref<32x384xf32, #tpu.memory_space<vmem>>, vector<32x128xf32>,
    %c0_236 = arith.constant 0 : index
    %c0_237 = arith.constant 0 : index
    %197 = vector.load %arg14[%c0_236, %c0_237] : memref<32x384xf32, #tpu.memory_space<vmem>>, vector<32x128xf32>
    %c0_238 = arith.constant 0 : index
    %c4_239 = arith.constant 4 : index
    %198 = vector.load %arg14[%c0_238, %c4_239] : memref<32x384xf32, #tpu.memory_space<vmem>>, vector<32x128xf32>
    %199 = arith.maximumf %197, %198 : vector<32x128xf32>
    %c0_240 = arith.constant 0 : index
    %c8_241 = arith.constant 8 : index
    %200 = vector.load %arg14[%c0_240, %c8_241] : memref<32x384xf32, #tpu.memory_space<vmem>>, vector<32x128xf32>
    %201 = arith.maximumf %199, %200 : vector<32x128xf32>
    %c0_242 = arith.constant 0 : index
    %c12_243 = arith.constant 12 : index
    %202 = vector.load %arg14[%c0_242, %c12_243] : memref<32x384xf32, #tpu.memory_space<vmem>>, vector<32x128xf32>
    %203 = arith.maximumf %201, %202 : vector<32x128xf32>
    %c0_244 = arith.constant 0 : index
    %c16_245 = arith.constant 16 : index
    %204 = vector.load %arg14[%c0_244, %c16_245] : memref<32x384xf32, #tpu.memory_space<vmem>>, vector<32x128xf32>
    %205 = arith.maximumf %203, %204 : vector<32x128xf32>
    %c0_246 = arith.constant 0 : index
    %c20_247 = arith.constant 20 : index
    %206 = vector.load %arg14[%c0_246, %c20_247] : memref<32x384xf32, #tpu.memory_space<vmem>>, vector<32x128xf32>
    %207 = arith.maximumf %205, %206 : vector<32x128xf32>
    %c0_248 = arith.constant 0 : index
    %c0_249 = arith.constant 0 : index
    %208 = vector.load %arg8[%c0_248, %c0_249] : memref<16x32xf32, #tpu.memory_space<vmem>>, vector<16x32xf32>
    %cst_250 = arith.constant dense<0.000000e+00> : vector<16x128xf32>
    %209 = tpu.matmul %208, %207, %cst_250 {dimension_numbers = #tpu.dot_dimension_numbers<[1], [0], [0], [1], [0, 0, 1, 1], [], []>} : vector<16x32xf32>, vector<32x128xf32>, vector<16x128xf32> -> vector<16x128xf32>
    %c0_251 = arith.constant 0 : index
    %c0_252 = arith.constant 0 : index
    %210 = vector.load %arg9[%c0_251, %c0_252] : memref<16x1xf32, #tpu.memory_space<vmem>>, vector<16x1xf32>
    %211 = vector.broadcast %210 : vector<16x1xf32> to vector<16x128xf32>
    %212 = arith.addf %209, %211 : vector<16x128xf32>
    %c0_253 = arith.constant 0 : index
    %c0_254 = arith.constant 0 : index
    %213 = vector.load %arg10[%c0_253, %c0_254] : memref<16x128xf32, #tpu.memory_space<vmem>>, vector<16x128xf32>
    tpu.vector_store %arg10[%c0_253, %c0_254], %212 {strides = array<i32>} : memref<16x128xf32, #tpu.memory_space<vmem>>, vector<16x128xf32>,
    return
  }
  func.func @transform_0(%arg0: i32) -> (i32, i32) {
    %c0_i32 = arith.constant 0 : i32
    %c0_i32_0 = arith.constant 0 : i32
    return %c0_i32, %arg0 : i32, i32
  }
  func.func @transform_1(%arg0: i32) -> (i32, i32) {
    %c0_i32 = arith.constant 0 : i32
    %c0_i32_0 = arith.constant 0 : i32
    %c0_i32_1 = arith.constant 0 : i32
    return %c0_i32, %c0_i32_0 : i32, i32
  }
  func.func @transform_2(%arg0: i32) -> (i32, i32) {
    %c0_i32 = arith.constant 0 : i32
    %c0_i32_0 = arith.constant 0 : i32
    %c0_i32_1 = arith.constant 0 : i32
    return %c0_i32, %c0_i32_0 : i32, i32
  }
  func.func @transform_3(%arg0: i32) -> (i32, i32) {
    %c0_i32 = arith.constant 0 : i32
    %c0_i32_0 = arith.constant 0 : i32
    %c0_i32_1 = arith.constant 0 : i32
    return %c0_i32, %c0_i32_0 : i32, i32
  }
  func.func @transform_4(%arg0: i32) -> (i32, i32) {
    %c0_i32 = arith.constant 0 : i32
    %c0_i32_0 = arith.constant 0 : i32
    %c0_i32_1 = arith.constant 0 : i32
    return %c0_i32, %c0_i32_0 : i32, i32
  }
  func.func @transform_5(%arg0: i32) -> (i32, i32) {
    %c0_i32 = arith.constant 0 : i32
    %c0_i32_0 = arith.constant 0 : i32
    %c0_i32_1 = arith.constant 0 : i32
    return %c0_i32, %c0_i32_0 : i32, i32
  }
  func.func @transform_6(%arg0: i32) -> (i32, i32) {
    %c0_i32 = arith.constant 0 : i32
    %c0_i32_0 = arith.constant 0 : i32
    %c0_i32_1 = arith.constant 0 : i32
    return %c0_i32, %c0_i32_0 : i32, i32
  }
  func.func @transform_7(%arg0: i32) -> (i32, i32) {
    %c0_i32 = arith.constant 0 : i32
    %c0_i32_0 = arith.constant 0 : i32
    %c0_i32_1 = arith.constant 0 : i32
    return %c0_i32, %c0_i32_0 : i32, i32
  }
  func.func @transform_8(%arg0: i32) -> (i32, i32) {
    %c0_i32 = arith.constant 0 : i32
    %c0_i32_0 = arith.constant 0 : i32
    %c0_i32_1 = arith.constant 0 : i32
    return %c0_i32, %c0_i32_0 : i32, i32
  }
  func.func @transform_9(%arg0: i32) -> (i32, i32) {
    %c0_i32 = arith.constant 0 : i32
    %c0_i32_0 = arith.constant 0 : i32
    return %arg0, %c0_i32 : i32, i32
  }
}

</mosaic_0001>

<bundles_post_ra>
// kernel: tpu_custom_call.1
= control target key start
LH: loop header
LB: loop body
LE: loop exit
PB: predicated region body
PF: predicated region fallthrough
CT: control target
= control target key end

     0   :  { %s5539_s0 = inlined_call_operand.hbm [shape: f32[8,512], index: 0, kind: input, shape index: {}]   ;;  %s5540_s1 = inlined_call_operand.hbm [shape: f32[8,128], index: 1, kind: input, shape index: {}]   ;;  %s5541_s2 = inlined_call_operand.vmem [shape: f32[8,1], index: 2, kind: input, shape index: {}]   ;;  %s5542_s3 = inlined_call_operand.vmem [shape: f32[16,128], index: 3, kind: input, shape index: {}]   ;;  %s5543_s4 = inlined_call_operand.vmem [shape: f32[16,1], index: 4, kind: input, shape index: {}]   ;;  %s5544_s5 = inlined_call_operand.vmem [shape: f32[32,256], index: 5, kind: input, shape index: {}]   ;;  %s5545_s6 = inlined_call_operand.vmem [shape: f32[32,1], index: 6, kind: input, shape index: {}]   ;;  %s5546_s7 = inlined_call_operand.vmem [shape: f32[16,32], index: 7, kind: input, shape index: {}]   ;;  %s5547_s8 = inlined_call_operand.vmem [shape: f32[16,1], index: 8, kind: input, shape index: {}]   ;;  %s5548_s9 = inlined_call_operand.hbm [shape: f32[32,128], index: 9, kind: output, shape index: {}]  }
   0x1   :  { %5566 = sst [smem:[#allocation16_spill]] %s5540_s1 }
   0x2   :  { %14 = vsyncpa [#allocation8], 0 }
   0x3   :  { %16 = vsyncpa [#allocation8 + $0x1], 0 }
   0x4   :  { %17 = vsyncpa [#allocation11], 0 }
   0x5   :  { %18 = vsyncpa [#allocation9], 0 }
   0x6   :  { %20 = vsyncpa [#allocation9 + $0x1], 0  ;;  %s4439_s30 = smov 0   ;;  %s4441_s10 = smov 0  }
   0x7   :  { %s4443_s11 = smov 0   ;;  %s4445_s12 = smov 0  }
   0x8 LB: > { %s4460_s13 = sadd.s32 4294967295, %s4349_s12   ;;  %s3119_s14 = sadd.s32 4294967294, %s4349_s12   ;;  %s4349_s12 = sphi %s4445_s12, %s5596_s12   ;;  %s4345_s11 = sphi %s4443_s11, %s5595_s11   ;;  %s4341_s10 = sphi %s4441_s10, %s5594_s10   ;;  %s4337_s30 = sphi %s4439_s30, %s5593_s30  }
   0x9   : > { %p46_p0 = scmp.ne.s32.totalorder %s4341_s10, %s4337_s30  ;;  %p5549_p1 = scmp.eq.s32.totalorder %s4460_s13, 0 }
   0xa   : > { %p244_p3 = scmp.eq.s32.totalorder %s3119_s14, 1  ;;  %p3120_p5 = scmp.ge.s32.totalorder %s4349_s12, 1 }
   0xb   : > { %p4469_p4 = por %p5549_p1, %p46_p0  ;;  %p251_p7 = scmp.lt.s32.totalorder %s4349_s12, 3 }
   0xc   : > { %p4474_p6 = por %p244_p3, %p46_p0  ;;  %s4351_s18 = smov [#allocation10]  }
   0xd   : > { %s5567_s15 = scalar_select %p4469_p4, 1, 0 }
   0xe   : > { %s5568_s16 = scalar_select %p4474_p6, 1, 0 }
   0xf   : > { %p4479_p8 = pnand %p3120_p5, %p251_p7  ;;  %s264_s19 = sshll.u32 %s4351_s18, 4  ;;  %s265_s19 = int_to_ptr.vmem [resolvable:$true] %s264_s19 }
  0x10   : > { %s4487_s20 = sadd.s32 1, %s4349_s12   ;;  %s33_s24 = sadd.s32 1, %s4345_s11 }
  0x11   : > { %s5569_s17 = scalar_select %p4479_p8, 1, 0 }
  0x12   : > { %p3300_p10 = pneg %p4479_p8  ;;  %s30_s22 = ssub.s32 %s4349_s12, %s4487_s20 }
  0x13   : > { %p4497_p12 = scmp.eq.s32.totalorder %s30_s22, 0  ;;  %s5572_s1 = sld [smem:[#allocation16_spill]] }
  0x14   : > { %p4491_p11 = pnand %p3300_p10, %p5549_p1 }
  0x15   : > { %s5571_s23 = scalar_select %p4497_p12, 1, 0 }
  0x16   : > { %p4223_p3 = pneg %p4491_p11 }
  0x19   : > { %s4221_s27 = scalar_lea.hbm %s5572_s1, 128 }
  0x1a   : > { %p4222_p0 = scmp.ne.s32.totalorder %s5572_s1, %s4221_s27  ;;  %p4228_p10 = scmp.lt.u32.totalorder %s4221_s27, %s5572_s1 }
  0x1c   : > { %p4224_p5 = pnand %p4223_p3, %p4222_p0 }
  0x1e   : > { %p4225_p7 = pneg %p4224_p5 }
  0x20   : > { %p4230_p9 = pnand %p4228_p10, %p4225_p7 }
  0x22   : > { %4233 = shalt.err (!%p4230_p9)
}
  0x23   : > { %s4234_s22 = scalar_lea.vmem %s265_s19, 128  ;;  %p4242_p6 = scmp.lt.s32.totalorder %s265_s19, %s265_s19 }
  0x24   : > { %p4235_p1 = scmp.ne.s32.totalorder %s265_s19, %s4234_s22  ;;  %p4243_p4 = scmp.lt.s32.totalorder %s4234_s22, %s4234_s22 }
  0x26   : > { %p4237_p2 = pnand %p4235_p1, %p4223_p3  ;;  %p4244_p8 = por %p4243_p4, %p4242_p6 }
  0x28   : > { %p4238_p13 = pneg %p4237_p2 }
  0x2a   : > { %p4245_p12 = pnand %p4244_p8, %p4238_p13 }
  0x2c   : > { %4248 = shalt.err (!%p4245_p12)
}
  0x2d   : > { %3303 = dma.hbm_to_vmem [thread:$0]  (!%p4491_p11), %s5572_s1, 128, %s265_s19, [#allocation11]  }
  0x2e   : > { %p5573_p1 = scmp.ne.s32.totalorder %s5571_s23, 0  ;;  %p41_p2 = scmp.eq.s32.totalorder %s4349_s12, 0 }
  0x2f   : > { %p5574_p4 = scmp.ne.s32.totalorder %s4345_s11, %s4341_s10  ;;  %p5575_p6 = scmp.eq.s32.totalorder %s4460_s13, 1 }
  0x30   : > { %s4523_s27 = scalar_select %p5573_p1, %s4345_s11, %s33_s24  }
  0x31   : > { %p4531_p8 = por %p5575_p6, %p5574_p4  ;;  %p3313_p9 = scmp.lt.s32.totalorder %s4349_s12, 2 }
  0x32   : > { %s296_s28 = sand.u32 1, %s4345_s11   ;;  %p5577_p12 = pmov %p5574_p4 }
  0x33   : > { %s3123_s29 = sshll.u32 %s296_s28, 4  ;;  %s3137_s14 = sshll.u32 %s4349_s12, 8 }
  0x34   : > { %p42_p13 = por %p41_p2, %p5577_p12  ;;  %s4544_s19 = scalar_lea.hbm %s5539_s0, %s3137_s14 }
  0x35   : > { %s300_s23 = scalar_lea.vmem [#allocation7], %s3123_s29  ;;  %s297_s26 = scalar_lea.sflag [#allocation8], %s296_s28 }
  0x36   : > { %s308_s24 = sshll.u32 %s300_s23, 4  ;;  %p4546_p11 = pnand %p3313_p9, %p42_p13  ;;  %s4550_s24 = int_to_ptr.vmem [resolvable:$true] %s308_s24 }
  0x37   : > { %s4249_s1 = scalar_lea.hbm %s4544_s19, 256  ;;  %s4254_s18 = scalar_lea.hbm %s5539_s0, 512 }
  0x38   : > { %p4250_p0 = scmp.ne.s32.totalorder %s4544_s19, %s4249_s1  ;;  %p4251_p3 = pneg %p4546_p11 }
  0x39   : > { %p4255_p10 = scmp.lt.u32.totalorder %s4544_s19, %s5539_s0  ;;  %p4256_p1 = scmp.lt.u32.totalorder %s4254_s18, %s4249_s1 }
  0x3a   : > { %p4252_p5 = pnand %p4251_p3, %p4250_p0  ;;  %p4258_p4 = scmp.lt.u32.totalorder %s4249_s1, %s4544_s19 }
  0x3b   : > { %p4257_p2 = por %p4256_p1, %p4255_p10 }
  0x3c   : > { %p4253_p7 = pneg %p4252_p5 }
  0x3d   : > { %p4259_p6 = por %p4258_p4, %p4257_p2 }
  0x3f   : > { %p4260_p9 = pnand %p4259_p6, %p4253_p7 }
  0x41   : > { %4263 = shalt.err (!%p4260_p9)
}
  0x42   : > { %s4264_s28 = scalar_lea.vmem %s4550_s24, 256  ;;  %s4352_s14 = smov [#allocation7]  }
  0x43   : > { %p4265_p12 = scmp.ne.s32.totalorder %s4550_s24, %s4264_s28  ;;  %s4269_s29 = sshll.u32 %s4352_s14, 4  ;;  %s4270_s29 = int_to_ptr.vmem [resolvable:$false] %s4269_s29 }
  0x44   : > { %s4271_s22 = scalar_lea.vmem %s4270_s29, 512  ;;  %p4272_p5 = scmp.lt.s32.totalorder %s4550_s24, %s4270_s29 }
  0x45   : > { %p4267_p13 = pnand %p4265_p12, %p4251_p3  ;;  %p4273_p10 = scmp.lt.s32.totalorder %s4271_s22, %s4264_s28 }
  0x47   : > { %p4268_p0 = pneg %p4267_p13  ;;  %p4274_p1 = por %p4273_p10, %p4272_p5 }
  0x49   : > { %p4275_p2 = pnand %p4274_p1, %p4268_p0 }
  0x4b   : > { %4278 = shalt.err (!%p4275_p2)
}
  0x4c   : > { %3307 = dma.hbm_to_vmem [thread:$0]  (!%p4546_p11), %s4544_s19, 256, %s4550_s24, %s297_s26  }
  0x4d   : > { %p5579_p7 = scmp.ne.s32.totalorder %s5569_s17, 0 }
  0x4e   : > { %s4580_s1 = sand.u32 (!%p5579_p7), 1, %s4341_s10   ;;  %p5580_p3 = scmp.ne.s32.totalorder (!%p5579_p7), %s5567_s15, 0 }
  0x4f   : > { %317 = sbr.rel (%p5579_p7) target bundleno = 2000 (0x7d0), region = 56  ;;  %s5552_s18 = sshll.u32 (!%p5579_p7), %s4580_s1, 4 }
  0x50   : > { %s320_s23 = scalar_lea.sflag (!%p5579_p7), [#allocation8], %s4580_s1  ;;  %s323_s28 = scalar_lea.vmem (!%p5579_p7), [#allocation7], %s5552_s18 }
  0x56   : > { %4324 = dma.done.wait (%p5580_p3), %s320_s23, 256  }
  0x57   : > { %4326 = vsyncadd (%p5580_p3), %s320_s23, 4294967040  ;;  %p5581_p11 = scmp.eq.s32.totalorder %s4460_s13, 0 }
  0x59   : > { %4328 = dma.done.wait (%p5581_p11), [#allocation11], 128   ;;  %p5582_p4 = pmov %p5581_p11 }
  0x5a   : > { %v4353_v0 = vmov 0.0   ;;  %v4595_v1 = vld [vmem:[%s323_s28 + $0x8] sm:$0xff]  ;;  %s4354_s17 = smov 126   ;;  %s4355_s19 = smov 127   ;;  %v4601_v3 = vld [vmem:[%s323_s28] sm:$0xff]  ;;  %v4367_v4 = vmov 0  }
  0x5b   : > { %4330 = vsyncadd (%p5582_p4), [#allocation11], 4294967168  ;;  %761 = vmatprep.mubr.f32.mxu1 %v4353_v0  ;;  %v3389_v2 = vpack.i.bf16 %v4353_v0, %v4595_v1  ;;  %s4356_s15 = smov 125   ;;  %s4357_s24 = smov 123   ;;  %3459 = vset.pattern.permute.xlu0 %v4367_v4  ;;  %v691_v5 = vld [vmem:[%s5541_s2] sm:$0xff]  ;;  %vm385_vm0 = vcmask 1039360  }
  0x5c   : > { %s4358_s25 = smov 124   ;;  %s4359_s26 = smov 121   ;;  %3655 = vset.pattern.permute.xlu1 %v4367_v4  ;;  %vm423_vm1 = vcmask 1022976   ;;  %vm404_vm2 = vcmask 1031168   ;;  %vm461_vm3 = vcmask 1006592   ;;  %vm442_vm4 = vcmask 1014784  }
  0x5d   : > { %3390 = vrot.lane.b32.xlu1 %v3389_v2, %s4354_s17  ;;  %3385 = vrot.lane.b32.xlu0 %v3389_v2, %s4355_s19  ;;  %s4360_s14 = smov 122   ;;  %s4361_s29 = smov 119   ;;  %vm499_vm5 = vcmask 990208   ;;  %vm480_vm6 = vcmask 998400   ;;  %vm537_vm7 = vcmask 973824   ;;  %vm518_vm8 = vcmask 982016  }
  0x5e   : > { %s5564_s22 = smov 120   ;;  %s4363_s23 = smov 117   ;;  %vm575_vm9 = vcmask 957440   ;;  %vm556_vm10 = vcmask 965632   ;;  %vm613_vm11 = vcmask 941056   ;;  %vm594_vm12 = vcmask 949248  }
  0x5f   : > { %s4364_s28 = smov 118   ;;  %vm651_vm13 = vcmask 924672   ;;  %vm632_vm14 = vcmask 932864   ;;  %s5560_s18 = smov 112   ;;  %vm1069_vm15 = vcmask 916480  }
  0x61   : > { %3395 = vrot.lane.b32.xlu1 %v3389_v2, %s4356_s15  ;;  %379 = vrot.lane.b32.xlu0 %v4601_v3, %s4355_s19 }
  0x65   : > { %417 = vrot.lane.b32.xlu1 %v4601_v3, %s4356_s15  ;;  %398 = vrot.lane.b32.xlu0 %v4601_v3, %s4354_s17  ;;  %s4365_s15 = smov 115  }
  0x69   : > { %3405 = vrot.lane.b32.xlu1 %v3389_v2, %s4357_s24  ;;  %3400 = vrot.lane.b32.xlu0 %v3389_v2, %s4358_s25 }
  0x6d   : > { %455 = vrot.lane.b32.xlu1 %v4601_v3, %s4357_s24  ;;  %436 = vrot.lane.b32.xlu0 %v4601_v3, %s4358_s25  ;;  %s5562_s24 = smov 116  }
  0x71   : > { %3415 = vrot.lane.b32.xlu1 %v3389_v2, %s4359_s26  ;;  %3410 = vrot.lane.b32.xlu0 %v3389_v2, %s4360_s14 }
  0x75   : > { %493 = vrot.lane.b32.xlu1 %v4601_v3, %s4359_s26  ;;  %474 = vrot.lane.b32.xlu0 %v4601_v3, %s4360_s14  ;;  %s4368_s26 = smov 113  }
  0x79   : > { %3425 = vrot.lane.b32.xlu1 %v3389_v2, %s4361_s29  ;;  %3420 = vrot.lane.b32.xlu0 %v3389_v2, %s5564_s22 }
  0x7d   : > { %531 = vrot.lane.b32.xlu1 %v4601_v3, %s4361_s29  ;;  %512 = vrot.lane.b32.xlu0 %v4601_v3, %s5564_s22  ;;  %s4369_s29 = smov 114  }
  0x81   : > { %3435 = vrot.lane.b32.xlu1 %v3389_v2, %s4363_s23  ;;  %3430 = vrot.lane.b32.xlu0 %v3389_v2, %s4364_s28 }
  0x85   : > { %569 = vrot.lane.b32.xlu1 %v4601_v3, %s4363_s23  ;;  %550 = vrot.lane.b32.xlu0 %v4601_v3, %s4364_s28  ;;  %s4377_s23 = smov 98  }
  0x89   : > { %3445 = vrot.lane.b32.xlu1 %v3389_v2, %s4365_s15  ;;  %3440 = vrot.lane.b32.xlu0 %v3389_v2, %s5562_s24 }
  0x8d   : > { %607 = vrot.lane.b32.xlu1 %v4601_v3, %s4365_s15  ;;  %588 = vrot.lane.b32.xlu0 %v4601_v3, %s5562_s24  ;;  %s4374_s15 = smov 104  }
  0x91   : > { %3455 = vrot.lane.b32.xlu1 %v3389_v2, %s4368_s26  ;;  %3450 = vrot.lane.b32.xlu0 %v3389_v2, %s4369_s29 }
  0x95   : > { %645 = vrot.lane.b32.xlu1 %v4601_v3, %s4368_s26  ;;  %626 = vrot.lane.b32.xlu0 %v4601_v3, %s4369_s29  ;;  %s4375_s26 = smov 102  }
  0x99   : > { %694 = vperm.xlu0 %3459, %v691_v5  }
  0xcf   : > { %v3391_v6 = vpop.permute.xlu1 %3390  ;;  %v3386_v7 = vpop.permute.xlu0 %3385 }
  0xd0   : > { %v3388_v8 = vunpack.i.h.bf16 %v3386_v7  ;;  %v3387_v9 = vunpack.i.l.bf16 %v3386_v7  ;;  %v3393_v10 = vunpack.i.h.bf16 %v3391_v6  ;;  %v3392_v11 = vunpack.i.l.bf16 %v3391_v6 }
  0xd2   : > { %v387_v12 = vsel %vm385_vm0, %v3387_v9, %v3388_v8  ;;  %v406_v20 = vsel %vm404_vm2, %v3392_v11, %v3393_v10 }
  0xd3   : > { %v3396_v13 = vpop.permute.xlu1 %3395  ;;  %v380_v14 = vpop.permute.xlu0 %379  ;;  %v3156_v15 = vpack.c.bf16 %v387_v12, %v4595_v1 }
  0xd4   : > { %v3398_v16 = vunpack.i.h.bf16 %v3396_v13  ;;  %v3397_v17 = vunpack.i.l.bf16 %v3396_v13  ;;  %v386_v18 = vsel %vm385_vm0, %v380_v14, %v3387_v9 }
  0xd5   : > { %3157 = vmatprep.subr.bf16.mxu1 %v3156_v15  ;;  %v3158_v19 = vpack.c.bf16 %v386_v18, %v4601_v3 }
  0xd6   : > { %v425_v21 = vsel %vm423_vm1, %v3397_v17, %v3398_v16 }
  0xd7   : > { %v418_v22 = vpop.permute.xlu1 %417  ;;  %3159 = vmatpush1.bf16.msra.mxu1 %v3158_v19  ;;  %v399_v23 = vpop.permute.xlu0 %398  ;;  %v3160_v24 = vpack.c.bf16 %v425_v21, %v406_v20 }
  0xd8   : > { %v424_v25 = vsel %vm423_vm1, %v418_v22, %v3397_v17  ;;  %v405_v26 = vsel %vm404_vm2, %v399_v23, %v3392_v11  ;;  %vm1141_vm1 = vcmask 883712  }
  0xd9   : > { %v3162_v27 = vpack.c.bf16 %v424_v25, %v405_v26  ;;  %3161 = vmatprep.subr.bf16.mxu1 %v3160_v24 }
  0xdb   : > { %v3406_v28 = vpop.permute.xlu1 %3405  ;;  %3163 = vmatpush1.bf16.msra.mxu1 %v3162_v27  ;;  %v3401_v29 = vpop.permute.xlu0 %3400 }
  0xdc   : > { %v3408_v30 = vunpack.i.h.bf16 %v3406_v28  ;;  %v3407_v31 = vunpack.i.l.bf16 %v3406_v28  ;;  %v3403_v32 = vunpack.i.h.bf16 %v3401_v29  ;;  %v3402_v33 = vunpack.i.l.bf16 %v3401_v29 }
  0xde   : > { %v444_v34 = vsel %vm442_vm4, %v3402_v33, %v3403_v32  ;;  %v463_v35 = vsel %vm461_vm3, %v3407_v31, %v3408_v30 }
  0xdf   : > { %v456_v36 = vpop.permute.xlu1 %455  ;;  %v437_v37 = vpop.permute.xlu0 %436  ;;  %v3164_v38 = vpack.c.bf16 %v463_v35, %v444_v34 }
  0xe0   : > { %v462_v39 = vsel %vm461_vm3, %v456_v36, %v3407_v31  ;;  %v443_v40 = vsel %vm442_vm4, %v437_v37, %v3402_v33  ;;  %vm1177_vm3 = vcmask 867328  }
  0xe1   : > { %v3166_v41 = vpack.c.bf16 %v462_v39, %v443_v40  ;;  %3165 = vmatprep.subr.bf16.mxu1 %v3164_v38 }
  0xe3   : > { %v3416_v42 = vpop.permute.xlu1 %3415  ;;  %v3411_v43 = vpop.permute.xlu0 %3410  ;;  %3167 = vmatpush1.bf16.msra.mxu1 %v3166_v41 }
  0xe4   : > { %v3418_v44 = vunpack.i.h.bf16 %v3416_v42  ;;  %v3417_v45 = vunpack.i.l.bf16 %v3416_v42  ;;  %v3413_v46 = vunpack.i.h.bf16 %v3411_v43  ;;  %v3412_v47 = vunpack.i.l.bf16 %v3411_v43 }
  0xe6   : > { %v482_v48 = vsel %vm480_vm6, %v3412_v47, %v3413_v46  ;;  %v501_v49 = vsel %vm499_vm5, %v3417_v45, %v3418_v44 }
  0xe7   : > { %v494_v50 = vpop.permute.xlu1 %493  ;;  %v475_v51 = vpop.permute.xlu0 %474  ;;  %v3168_v52 = vpack.c.bf16 %v501_v49, %v482_v48  ;;  %v658_v49 = vld [vmem:[#allocation10] sm:$0xff] }
  0xe8   : > { %v500_v53 = vsel %vm499_vm5, %v494_v50, %v3417_v45  ;;  %v481_v54 = vsel %vm480_vm6, %v475_v51, %v3412_v47  ;;  %vm1213_vm5 = vcmask 850944  }
  0xe9   : > { %v3170_v55 = vpack.c.bf16 %v500_v53, %v481_v54  ;;  %3169 = vmatprep.subr.bf16.mxu1 %v3168_v52 }
  0xeb   : > { %v3426_v56 = vpop.permute.xlu1 %3425  ;;  %v3421_v57 = vpop.permute.xlu0 %3420  ;;  %3171 = vmatpush1.bf16.msra.mxu1 %v3170_v55 }
  0xec   : > { %v3428_v58 = vunpack.i.h.bf16 %v3426_v56  ;;  %v3427_v59 = vunpack.i.l.bf16 %v3426_v56  ;;  %v3423_v60 = vunpack.i.h.bf16 %v3421_v57  ;;  %v3422_v61 = vunpack.i.l.bf16 %v3421_v57 }
  0xee   : > { %v520_v62 = vsel %vm518_vm8, %v3422_v61, %v3423_v60  ;;  %v539_v63 = vsel %vm537_vm7, %v3427_v59, %v3428_v58 }
  0xef   : > { %v532_v1 = vpop.permute.xlu1 %531  ;;  %v513_v2 = vpop.permute.xlu0 %512  ;;  %v3172_v3 = vpack.c.bf16 %v539_v63, %v520_v62 }
  0xf0   : > { %v538_v4 = vsel %vm537_vm7, %v532_v1, %v3427_v59  ;;  %v519_v5 = vsel %vm518_vm8, %v513_v2, %v3422_v61  ;;  %vm1285_vm7 = vcmask 818176  }
  0xf1   : > { %v3174_v6 = vpack.c.bf16 %v538_v4, %v519_v5  ;;  %3173 = vmatprep.subr.bf16.mxu1 %v3172_v3 }
  0xf3   : > { %v3436_v7 = vpop.permute.xlu1 %3435  ;;  %v3431_v8 = vpop.permute.xlu0 %3430  ;;  %3175 = vmatpush1.bf16.msra.mxu1 %v3174_v6 }
  0xf4   : > { %v3438_v9 = vunpack.i.h.bf16 %v3436_v7  ;;  %v3437_v10 = vunpack.i.l.bf16 %v3436_v7  ;;  %v3433_v11 = vunpack.i.h.bf16 %v3431_v8  ;;  %v3432_v12 = vunpack.i.l.bf16 %v3431_v8 }
  0xf6   : > { %v558_v13 = vsel %vm556_vm10, %v3432_v12, %v3433_v11  ;;  %v577_v14 = vsel %vm575_vm9, %v3437_v10, %v3438_v9 }
  0xf7   : > { %v570_v15 = vpop.permute.xlu1 %569  ;;  %v551_v16 = vpop.permute.xlu0 %550  ;;  %v3176_v17 = vpack.c.bf16 %v577_v14, %v558_v13 }
  0xf8   : > { %v576_v18 = vsel %vm575_vm9, %v570_v15, %v3437_v10  ;;  %v557_v19 = vsel %vm556_vm10, %v551_v16, %v3432_v12  ;;  %vm1321_vm9 = vcmask 801792  }
  0xf9   : > { %v3178_v20 = vpack.c.bf16 %v576_v18, %v557_v19  ;;  %3177 = vmatprep.subr.bf16.mxu1 %v3176_v17 }
  0xfb   : > { %v3446_v21 = vpop.permute.xlu1 %3445  ;;  %v3441_v22 = vpop.permute.xlu0 %3440  ;;  %3179 = vmatpush1.bf16.msra.mxu1 %v3178_v20 }
  0xfc   : > { %v3448_v23 = vunpack.i.h.bf16 %v3446_v21  ;;  %v3447_v24 = vunpack.i.l.bf16 %v3446_v21  ;;  %v3443_v25 = vunpack.i.h.bf16 %v3441_v22  ;;  %v3442_v26 = vunpack.i.l.bf16 %v3441_v22 }
  0xfe   : > { %v596_v27 = vsel %vm594_vm12, %v3442_v26, %v3443_v25  ;;  %v615_v28 = vsel %vm613_vm11, %v3447_v24, %v3448_v23 }
  0xff   : > { %v608_v29 = vpop.permute.xlu1 %607  ;;  %v589_v30 = vpop.permute.xlu0 %588  ;;  %v3180_v31 = vpack.c.bf16 %v615_v28, %v596_v27 }
 0x100   : > { %v614_v32 = vsel %vm613_vm11, %v608_v29, %v3447_v24  ;;  %v595_v33 = vsel %vm594_vm12, %v589_v30, %v3442_v26  ;;  %vm2195_vm11 = vcmask 719872  }
 0x101   : > { %v3182_v34 = vpack.c.bf16 %v614_v32, %v595_v33  ;;  %3181 = vmatprep.subr.bf16.mxu1 %v3180_v31 }
 0x103   : > { %v3456_v35 = vpop.permute.xlu1 %3455  ;;  %v3451_v36 = vpop.permute.xlu0 %3450  ;;  %3183 = vmatpush1.bf16.msra.mxu1 %v3182_v34 }
 0x104   : > { %v3458_v37 = vunpack.i.h.bf16 %v3456_v35  ;;  %v3457_v38 = vunpack.i.l.bf16 %v3456_v35  ;;  %v3453_v39 = vunpack.i.h.bf16 %v3451_v36  ;;  %v3452_v40 = vunpack.i.l.bf16 %v3451_v36 }
 0x106   : > { %v634_v41 = vsel %vm632_vm14, %v3452_v40, %v3453_v39  ;;  %v653_v42 = vsel %vm651_vm13, %v3457_v38, %v3458_v37 }
 0x107   : > { %v646_v43 = vpop.permute.xlu1 %645  ;;  %v627_v44 = vpop.permute.xlu0 %626  ;;  %v3184_v45 = vpack.c.bf16 %v653_v42, %v634_v41 }
 0x108   : > { %v652_v46 = vsel %vm651_vm13, %v646_v43, %v3457_v38  ;;  %v633_v47 = vsel %vm632_vm14, %v627_v44, %v3452_v40  ;;  %vm2266_vm13 = vcmask 687104  }
 0x109   : > { %v3186_v48 = vpack.c.bf16 %v652_v46, %v633_v47  ;;  %3185 = vmatprep.subr.bf16.mxu1 %v3184_v45 }
 0x10b   : > { %3187 = vmatpush1.bf16.msra.mxu1 %v3186_v48 }
 0x10e   : > { %762 = vmatmul.mubr.f32.vlgmr.msra.gmra.mrb[0].mxu1 %v658_v49 }
 0x10f   : > { %1438 = vmatprep.mubr.f32.mxu1 %v4353_v0 }
 0x118   : > { %v695_v50 = vpop.permute.xlu0 %694 }
 0x1e1   : > { %v763_v51 = vpop.f32.mrb[0].mxu1 }
 0x1e2   : > { %v764_v52 = vadd.f32 %v763_v51, %v695_v50  ;;  %v765_v53 = vpop.f32.mrb[1].mxu1 }
 0x1e3   : > { %v766_v56 = vadd.f32 %v765_v53, %v695_v50 }
 0x1e4   : > { %v4654_v54 = vmax.f32 %v764_v52, 0.0 }
 0x1e5   : > { %v4662_v57 = vmax.f32 %v766_v56, 0.0 }
 0x1e6   : > { %v3465_v55 = vpack.i.bf16 %v4654_v54, %v4353_v0 }
 0x1e7   : > { %v3500_v58 = vpack.i.bf16 %v4662_v57, %v4353_v0  ;;  %v3490_v59 = vpack.i.bf16 %v4353_v0, %v4662_v57  ;;  %v3505_v60 = vpack.i.bf16 %v4662_v57, %v4654_v54 }
 0x1e8   : > { %3466 = vrot.lane.b32.xlu0 %v3465_v55, %s4355_s19  ;;  %3461 = vrot.lane.b32.xlu1 %v3465_v55, %s4355_s19 }
 0x1ec   : > { %3476 = vrot.lane.b32.xlu0 %v3465_v55, %s4355_s19  ;;  %3471 = vrot.lane.b32.xlu1 %v3465_v55, %s4355_s19 }
 0x1f0   : > { %3486 = vrot.lane.b32.xlu0 %v3465_v55, %s4355_s19  ;;  %3481 = vrot.lane.b32.xlu1 %v3465_v55, %s4355_s19 }
 0x1f4   : > { %3501 = vrot.lane.b32.xlu0 %v3500_v58, %s4355_s19  ;;  %3491 = vrot.lane.b32.xlu1 %v3490_v59, %s4355_s19 }
 0x1f8   : > { %3506 = vrot.lane.b32.xlu0 %v3505_v60, %s4355_s19  ;;  %3496 = vrot.lane.b32.xlu1 %v3505_v60, %s4355_s19 }
 0x1fc   : > { %3521 = vrot.lane.b32.xlu0 %v3500_v58, %s4355_s19  ;;  %3511 = vrot.lane.b32.xlu1 %v3500_v58, %s4355_s19 }
 0x200   : > { %3526 = vrot.lane.b32.xlu0 %v3505_v60, %s4355_s19  ;;  %3516 = vrot.lane.b32.xlu1 %v3505_v60, %s4355_s19 }
 0x204   : > { %3541 = vrot.lane.b32.xlu0 %v3500_v58, %s4355_s19  ;;  %3531 = vrot.lane.b32.xlu1 %v3500_v58, %s4355_s19 }
 0x208   : > { %3546 = vrot.lane.b32.xlu0 %v3505_v60, %s4355_s19  ;;  %3536 = vrot.lane.b32.xlu1 %v3505_v60, %s4355_s19 }
 0x20c   : > { %3566 = vrot.lane.b32.xlu0 %v3500_v58, %s4355_s19  ;;  %3551 = vrot.lane.b32.xlu1 %v3500_v58, %s4355_s19 }
 0x210   : > { %3571 = vrot.lane.b32.xlu0 %v3505_v60, %s4355_s19  ;;  %3556 = vrot.lane.b32.xlu1 %v3505_v60, %s4355_s19 }
 0x214   : > { %3561 = vrot.lane.b32.xlu1 %v3465_v55, %s4355_s19 }
 0x218   : > { %3576 = vrot.lane.b32.xlu1 %v3465_v55, %s4355_s19  ;;  %s4371_s19 = smov 110  }
 0x25a   : > { %v4690_v61 = vpop.permute.xlu0 %3466  ;;  %v3462_v62 = vpop.permute.xlu1 %3461 }
 0x25b   : > { %v3463_v9 = vunpack.i.l.bf16 %v3462_v62  ;;  %v3464_v20 = vunpack.i.h.bf16 %v3462_v62  ;;  %v3468_v34 = vunpack.i.l.bf16 %v4690_v61  ;;  %v3469_v48 = vunpack.i.h.bf16 %v4690_v61 }
 0x25d   : > { %v884_v32 = vmax.f32 %v3463_v9, 0.0  ;;  %v954_v52 = vmax.f32 %v3468_v34, 0.0 }
 0x25e   : > { %v4692_v63 = vpop.permute.xlu0 %3476  ;;  %v4694_v1 = vpop.permute.xlu1 %3471 }
 0x25f   : > { %v3473_v55 = vunpack.i.l.bf16 %v4694_v1 }
 0x262   : > { %v4696_v2 = vpop.permute.xlu0 %3486  ;;  %v4698_v3 = vpop.permute.xlu1 %3481 }
 0x266   : > { %v3502_v4 = vpop.permute.xlu0 %3501  ;;  %v3492_v5 = vpop.permute.xlu1 %3491 }
 0x267   : > { %v3504_v6 = vunpack.i.h.bf16 %v3502_v4  ;;  %v3494_v7 = vunpack.i.h.bf16 %v3492_v5  ;;  %v3493_v8 = vunpack.i.l.bf16 %v3492_v5  ;;  %v3503_v12 = vunpack.i.l.bf16 %v3502_v4 }
 0x269   : > { %v814_v10 = vmax.f32 %v3494_v7, 0.0  ;;  %v808_v11 = vsel %vm385_vm0, %v3493_v8, %v3494_v7  ;;  %v878_v17 = vsel %vm385_vm0, %v3504_v6, %v3463_v9  ;;  %v849_v23 = vmax.f32 %v3503_v12, 0.0 }
 0x26a   : > { %v3497_v13 = vpop.permute.xlu1 %3496  ;;  %v813_v14 = vmax.f32 %v4662_v57, %v808_v11  ;;  %v3507_v18 = vpop.permute.xlu0 %3506  ;;  %v883_v27 = vmax.f32 %v4662_v57, %v878_v17  ;;  %v3474_v11 = vunpack.i.h.bf16 %v4694_v1  ;;  %v3478_v17 = vunpack.i.l.bf16 %v4692_v63 }
 0x26b   : > { %v3499_v15 = vunpack.i.h.bf16 %v3497_v13  ;;  %v3498_v16 = vunpack.i.l.bf16 %v3497_v13  ;;  %v3509_v28 = vunpack.i.h.bf16 %v3507_v18  ;;  %v3508_v29 = vunpack.i.l.bf16 %v3507_v18 }
 0x26c   : > { %v3580_v19 = vpack.i.bf16 %v814_v10, %v813_v14  ;;  %v3590_v38 = vpack.i.bf16 %v884_v32, %v883_v27 }
 0x26d   : > { %v807_v21 = vsel %vm385_vm0, %v3498_v16, %v3493_v8  ;;  %v843_v22 = vsel %vm385_vm0, %v3499_v15, %v3503_v12  ;;  %v842_v35 = vsel %vm385_vm0, %v3464_v20, %v3499_v15  ;;  %v877_v39 = vsel %vm385_vm0, %v3508_v29, %v3504_v6 }
 0x26e   : > { %v3512_v24 = vpop.permute.xlu1 %3511  ;;  %3581 = vrot.lane.b32.xlu0 %v3580_v19, %s4354_s17  ;;  %v812_v25 = vmax.f32 %v4654_v54, %v807_v21  ;;  %v848_v26 = vmax.f32 %v4662_v57, %v843_v22  ;;  %v3522_v41 = vpop.permute.xlu0 %3521  ;;  %v847_v43 = vmax.f32 %v4654_v54, %v842_v35  ;;  %v882_v46 = vmax.f32 %v4654_v54, %v877_v39 }
 0x26f   : > { %v3514_v30 = vunpack.i.h.bf16 %v3512_v24  ;;  %v3513_v31 = vunpack.i.l.bf16 %v3512_v24  ;;  %v3524_v49 = vunpack.i.h.bf16 %v3522_v41  ;;  %v3523_v50 = vunpack.i.l.bf16 %v3522_v41 }
 0x270   : > { %818 = vrot.lane.b32.xlu1 %v812_v25, %s4354_s17  ;;  %v3585_v33 = vpack.i.bf16 %v849_v23, %v848_v26  ;;  %v912_v56 = vsel %vm385_vm0, %v3469_v48, %v3509_v28  ;;  %v1024_v15 = vmax.f32 %v3473_v55, 0.0 }
 0x271   : > { %v913_v36 = vsel %vm385_vm0, %v3509_v28, %v3513_v31  ;;  %v948_v40 = vsel %vm385_vm0, %v3514_v30, %v3468_v34  ;;  %v919_v42 = vmax.f32 %v3513_v31, 0.0  ;;  %v1018_v61 = vsel %vm385_vm0, %v3524_v49, %v3473_v55 }
 0x272   : > { %v3517_v37 = vpop.permute.xlu1 %3516  ;;  %3586 = vrot.lane.b32.xlu0 %v3585_v33, %s4358_s25  ;;  %v918_v44 = vmax.f32 %v4662_v57, %v913_v36  ;;  %v953_v47 = vmax.f32 %v4662_v57, %v948_v40  ;;  %v3527_v4 = vpop.permute.xlu0 %3526  ;;  %v917_v5 = vmax.f32 %v4654_v54, %v912_v56  ;;  %v989_v8 = vmax.f32 %v3523_v50, 0.0 }
 0x273   : > { %v3519_v45 = vunpack.i.h.bf16 %v3517_v37  ;;  %v3518_v51 = vunpack.i.l.bf16 %v3517_v37  ;;  %v1023_v10 = vmax.f32 %v4662_v57, %v1018_v61  ;;  %v3529_v12 = vunpack.i.h.bf16 %v3527_v4 }
 0x274   : > { %3591 = vrot.lane.b32.xlu1 %v3590_v38, %s4360_s14  ;;  %v3595_v53 = vpack.i.bf16 %v919_v42, %v918_v44  ;;  %v3600_v60 = vpack.i.bf16 %v954_v52, %v953_v47  ;;  %v3528_v13 = vunpack.i.l.bf16 %v3527_v4  ;;  %v1095_v34 = vmax.f32 %v3478_v17, 0.0 }
 0x275   : > { %v983_v58 = vsel %vm385_vm0, %v3519_v45, %v3523_v50  ;;  %v947_v62 = vsel %vm385_vm0, %v3518_v51, %v3514_v30  ;;  %v982_v18 = vsel %vm385_vm0, %v3474_v11, %v3519_v45  ;;  %v3610_v21 = vpack.i.bf16 %v1024_v15, %v1023_v10 }
 0x276   : > { %853 = vrot.lane.b32.xlu0 %v847_v43, %s4358_s25  ;;  %v3532_v59 = vpop.permute.xlu1 %3531  ;;  %v988_v6 = vmax.f32 %v4662_v57, %v983_v58  ;;  %v952_v9 = vmax.f32 %v4654_v54, %v947_v62  ;;  %v1017_v22 = vsel %vm385_vm0, %v3528_v13, %v3524_v49  ;;  %v3542_v23 = vpop.permute.xlu0 %3541  ;;  %v987_v25 = vmax.f32 %v4654_v54, %v982_v18 }
 0x277   : > { %v3533_v7 = vunpack.i.l.bf16 %v3532_v59  ;;  %v3534_v14 = vunpack.i.h.bf16 %v3532_v59  ;;  %v1022_v28 = vmax.f32 %v4654_v54, %v1017_v22  ;;  %v3479_v30 = vunpack.i.h.bf16 %v4692_v63 }
 0x278   : > { %888 = vrot.lane.b32.xlu1 %v882_v46, %s4360_s14  ;;  %v3605_v16 = vpack.i.bf16 %v989_v8, %v988_v6  ;;  %v3544_v31 = vunpack.i.h.bf16 %v3542_v23  ;;  %v3543_v32 = vunpack.i.l.bf16 %v3542_v23  ;;  %v3483_v37 = vunpack.i.l.bf16 %v4698_v3  ;;  %s5553_s14 = smov 108  }
 0x279   : > { %v1053_v19 = vsel %vm385_vm0, %v3529_v12, %v3533_v7  ;;  %v1089_v1 = vsel %vm385_vm0, %v3534_v14, %v3478_v17  ;;  %v1059_v24 = vmax.f32 %v3533_v7, 0.0  ;;  %v1052_v38 = vsel %vm385_vm0, %v3479_v30, %v3529_v12 }
 0x27a   : > { %3596 = vrot.lane.b32.xlu0 %v3595_v53, %s5564_s22  ;;  %v3537_v20 = vpop.permute.xlu1 %3536  ;;  %v1058_v26 = vmax.f32 %v4662_v57, %v1053_v19  ;;  %v1094_v29 = vmax.f32 %v4662_v57, %v1089_v1  ;;  %v1161_v41 = vsel %vm385_vm0, %v3544_v31, %v3483_v37  ;;  %v3547_v42 = vpop.permute.xlu0 %3546  ;;  %v1057_v43 = vmax.f32 %v4654_v54, %v1052_v38  ;;  %v1363_v38 = vld [vmem:[%s5543_s4 + $0x8] sm:$0xff] }
 0x27b   : > { %v3539_v27 = vunpack.i.h.bf16 %v3537_v20  ;;  %v3538_v33 = vunpack.i.l.bf16 %v3537_v20  ;;  %v1131_v46 = vmax.f32 %v3543_v32, 0.0  ;;  %v1166_v49 = vmax.f32 %v4662_v57, %v1161_v41 }
 0x27c   : > { %3601 = vrot.lane.b32.xlu1 %v3600_v60, %s4364_s28  ;;  %v3615_v36 = vpack.i.bf16 %v1059_v24, %v1058_v26  ;;  %v3620_v40 = vpack.i.bf16 %v1095_v34, %v1094_v29  ;;  %v3484_v50 = vunpack.i.h.bf16 %v4698_v3  ;;  %v3549_v51 = vunpack.i.h.bf16 %v3547_v42 }
 0x27d   : > { %v1125_v39 = vsel %vm385_vm0, %v3539_v27, %v3543_v32  ;;  %v1088_v63 = vsel %vm385_vm0, %v3538_v33, %v3534_v14  ;;  %v3548_v52 = vunpack.i.l.bf16 %v3547_v42  ;;  %v1167_v55 = vmax.f32 %v3483_v37, 0.0  ;;  %v1362_v37 = vld [vmem:[%s5543_s4] sm:$0xff] }
 0x27e   : > { %923 = vrot.lane.b32.xlu0 %v917_v5, %s5564_s22  ;;  %v4751_v35 = vpop.permute.xlu1 %3551  ;;  %v1130_v44 = vmax.f32 %v4662_v57, %v1125_v39  ;;  %v1093_v48 = vmax.f32 %v4654_v54, %v1088_v63  ;;  %v3488_v58 = vunpack.i.l.bf16 %v4696_v2  ;;  %v1124_v59 = vsel %vm385_vm0, %v3484_v50, %v3539_v27  ;;  %v3567_v4 = vpop.permute.xlu0 %3566 }
 0x27f   : > { %v3553_v45 = vunpack.i.l.bf16 %v4751_v35  ;;  %v3554_v53 = vunpack.i.h.bf16 %v4751_v35  ;;  %v3630_v62 = vpack.i.bf16 %v1167_v55, %v1166_v49  ;;  %v1160_v61 = vsel %vm385_vm0, %v3548_v52, %v3544_v31 }
 0x280   : > { %958 = vrot.lane.b32.xlu1 %v952_v9, %s4364_s28  ;;  %v3625_v56 = vpack.i.bf16 %v1131_v46, %v1130_v44  ;;  %s4373_s28 = smov 106   ;;  %v1129_v7 = vmax.f32 %v4654_v54, %v1124_v59  ;;  %v1165_v10 = vmax.f32 %v4654_v54, %v1160_v61  ;;  %v3489_v12 = vunpack.i.h.bf16 %v4696_v2 }
 0x281   : > { %v1197_v60 = vsel %vm385_vm0, %v3549_v51, %v3553_v45  ;;  %v1233_v3 = vsel %vm385_vm0, %v3554_v53, %v3488_v58  ;;  %v1203_v5 = vmax.f32 %v3553_v45, 0.0  ;;  %v3568_v13 = vunpack.i.l.bf16 %v3567_v4 }
 0x282   : > { %3606 = vrot.lane.b32.xlu0 %v3605_v16, %s5562_s24  ;;  %v3557_v47 = vpop.permute.xlu1 %3556  ;;  %v1202_v8 = vmax.f32 %v4662_v57, %v1197_v60  ;;  %v1238_v11 = vmax.f32 %v4662_v57, %v1233_v3  ;;  %v1239_v16 = vmax.f32 %v3488_v58, 0.0  ;;  %v3569_v18 = vunpack.i.h.bf16 %v3567_v4  ;;  %v3572_v2 = vpop.permute.xlu0 %3571 }
 0x283   : > { %v3559_v9 = vunpack.i.h.bf16 %v3557_v47  ;;  %v3558_v14 = vunpack.i.l.bf16 %v3557_v47  ;;  %v1196_v19 = vsel %vm385_vm0, %v3489_v12, %v3549_v51  ;;  %v1275_v26 = vmax.f32 %v3568_v13, 0.0 }
 0x284   : > { %3611 = vrot.lane.b32.xlu1 %v3610_v21, %s4369_s29  ;;  %v3635_v17 = vpack.i.bf16 %v1203_v5, %v1202_v8  ;;  %v3640_v21 = vpack.i.bf16 %v1239_v16, %v1238_v11  ;;  %v1201_v23 = vmax.f32 %v4654_v54, %v1196_v19  ;;  %v3573_v30 = vunpack.i.l.bf16 %v3572_v2 }
 0x285   : > { %v1269_v20 = vsel %vm385_vm0, %v3559_v9, %v3568_v13  ;;  %v1232_v22 = vsel %vm385_vm0, %v3558_v14, %v3554_v53  ;;  %v3574_v41 = vunpack.i.h.bf16 %v3572_v2 }
 0x286   : > { %993 = vrot.lane.b32.xlu0 %v987_v25, %s5562_s24  ;;  %v3562_v6 = vpop.permute.xlu1 %3561  ;;  %v1274_v24 = vmax.f32 %v4662_v57, %v1269_v20  ;;  %v1304_v34 = vsel %vm385_vm0, %v3573_v30, %v3569_v18 }
 0x287   : > { %v3563_v15 = vunpack.i.l.bf16 %v3562_v6  ;;  %v3564_v25 = vunpack.i.h.bf16 %v3562_v6 }
 0x288   : > { %1028 = vrot.lane.b32.xlu1 %v1022_v28, %s4369_s29  ;;  %v1237_v28 = vmax.f32 %v4654_v54, %v1232_v22  ;;  %v3645_v31 = vpack.i.bf16 %v1275_v26, %v1274_v24  ;;  %s4376_s29 = smov 100  }
 0x289   : > { %v1305_v1 = vsel %vm385_vm0, %v3569_v18, %v3563_v15  ;;  %v1311_v27 = vmax.f32 %v3563_v15, 0.0  ;;  %v1268_v32 = vsel %vm385_vm0, %v3564_v25, %v3559_v9 }
 0x28a   : > { %3616 = vrot.lane.b32.xlu0 %v3615_v36, %s5560_s18  ;;  %v1310_v29 = vmax.f32 %v4662_v57, %v1305_v1  ;;  %v1273_v35 = vmax.f32 %v4654_v54, %v1268_v32  ;;  %v1309_v36 = vmax.f32 %v4654_v54, %v1304_v34  ;;  %v3577_v39 = vpop.permute.xlu1 %3576 }
 0x28b   : > { %v3578_v63 = vunpack.i.l.bf16 %v3577_v39 }
 0x28c   : > { %3621 = vrot.lane.b32.xlu1 %v3620_v40, %s4371_s19  ;;  %v3650_v33 = vpack.i.bf16 %v1311_v27, %v1310_v29  ;;  %v3579_v40 = vunpack.i.h.bf16 %v3577_v39 }
 0x28e   : > { %1063 = vrot.lane.b32.xlu0 %v1057_v43, %s5560_s18  ;;  %v787_v42 = vsel %vm385_vm0, %v3579_v40, %v3574_v41  ;;  %v788_v43 = vsel %vm385_vm0, %v3574_v41, %v3578_v63  ;;  %vm1105_vm0 = vcmask 900096  }
 0x28f   : > { %v791_v47 = vmax.f32 %v4654_v54, %v787_v42  ;;  %v792_v49 = vmax.f32 %v4662_v57, %v788_v43 }
 0x290   : > { %1099 = vrot.lane.b32.xlu1 %v1093_v48, %s4371_s19  ;;  %s4381_s19 = smov 80  }
 0x292   : > { %3626 = vrot.lane.b32.xlu0 %v3625_v56, %s5553_s14 }
 0x294   : > { %3631 = vrot.lane.b32.xlu1 %v3630_v62, %s4373_s28 }
 0x296   : > { %1135 = vrot.lane.b32.xlu0 %v1129_v7, %s5553_s14  ;;  %s5555_s14 = smov 88  }
 0x298   : > { %1171 = vrot.lane.b32.xlu1 %v1165_v10, %s4373_s28  ;;  %s4382_s28 = smov 84  }
 0x29a   : > { %3636 = vrot.lane.b32.xlu0 %v3635_v17, %s4374_s15 }
 0x29c   : > { %3641 = vrot.lane.b32.xlu1 %v3640_v21, %s4375_s26 }
 0x29e   : > { %1207 = vrot.lane.b32.xlu0 %v1201_v23, %s4374_s15 }
 0x2a0   : > { %1243 = vrot.lane.b32.xlu1 %v1237_v28, %s4375_s26  ;;  %s4378_s26 = smov 96  }
 0x2a2   : > { %3646 = vrot.lane.b32.xlu0 %v3645_v31, %s4376_s29 }
 0x2a4   : > { %3651 = vrot.lane.b32.xlu1 %v3650_v33, %s4377_s23 }
 0x2a6   : > { %1279 = vrot.lane.b32.xlu0 %v1273_v35, %s4376_s29 }
 0x2a8   : > { %1315 = vrot.lane.b32.xlu1 %v1309_v36, %s4377_s23  ;;  %s5557_s23 = smov 92  }
 0x2aa   : > { %1366 = vperm.xlu0 %3459, %v1362_v37  }
 0x2ac   : > { %1371 = vperm.xlu1 %3655, %v1363_v38  }
 0x2e0   : > { %v3582_v44 = vpop.permute.xlu0 %3581 }
 0x2e1   : > { %v3584_v45 = vunpack.i.h.bf16 %v3582_v44  ;;  %v3583_v46 = vunpack.i.l.bf16 %v3582_v44 }
 0x2e2   : > { %v819_v48 = vpop.permute.xlu1 %818 }
 0x2e3   : > { %v824_v50 = vsel %vm404_vm2, %v819_v48, %v3583_v46  ;;  %v825_v51 = vsel %vm404_vm2, %v3583_v46, %v3584_v45 }
 0x2e4   : > { %v3190_v52 = vpack.c.bf16 %v824_v50, %v791_v47  ;;  %v3587_v53 = vpop.permute.xlu0 %3586  ;;  %v3188_v55 = vpack.c.bf16 %v825_v51, %v792_v49 }
 0x2e5   : > { %v3589_v56 = vunpack.i.h.bf16 %v3587_v53  ;;  %v3588_v58 = vunpack.i.l.bf16 %v3587_v53 }
 0x2e6   : > { %3189 = vmatprep.subr.bf16.mxu1 %v3188_v55  ;;  %v3592_v59 = vpop.permute.xlu1 %3591 }
 0x2e7   : > { %v3594_v60 = vunpack.i.h.bf16 %v3592_v59  ;;  %v3593_v62 = vunpack.i.l.bf16 %v3592_v59  ;;  %3191 = vmatpush1.bf16.msra.mxu1 %v3190_v52  ;;  %v860_v54 = vsel %vm442_vm4, %v3588_v58, %v3589_v56 }
 0x2e8   : > { %v854_v61 = vpop.permute.xlu0 %853 }
 0x2e9   : > { %v895_v3 = vsel %vm480_vm6, %v3593_v62, %v3594_v60  ;;  %v859_v5 = vsel %vm442_vm4, %v854_v61, %v3588_v58 }
 0x2ea   : > { %v889_v57 = vpop.permute.xlu1 %888  ;;  %v3192_v4 = vpack.c.bf16 %v895_v3, %v860_v54 }
 0x2eb   : > { %v894_v6 = vsel %vm480_vm6, %v889_v57, %v3593_v62  ;;  %vm1249_vm6 = vcmask 834560  }
 0x2ec   : > { %v3194_v7 = vpack.c.bf16 %v894_v6, %v859_v5  ;;  %v3597_v8 = vpop.permute.xlu0 %3596  ;;  %3193 = vmatprep.subr.bf16.mxu1 %v3192_v4 }
 0x2ed   : > { %v3599_v9 = vunpack.i.h.bf16 %v3597_v8  ;;  %v3598_v10 = vunpack.i.l.bf16 %v3597_v8 }
 0x2ee   : > { %v3602_v11 = vpop.permute.xlu1 %3601  ;;  %3195 = vmatpush1.bf16.msra.mxu1 %v3194_v7 }
 0x2ef   : > { %v3604_v12 = vunpack.i.h.bf16 %v3602_v11  ;;  %v3603_v13 = vunpack.i.l.bf16 %v3602_v11  ;;  %v930_v15 = vsel %vm518_vm8, %v3598_v10, %v3599_v9 }
 0x2f0   : > { %v924_v14 = vpop.permute.xlu0 %923 }
 0x2f1   : > { %v965_v16 = vsel %vm556_vm10, %v3603_v13, %v3604_v12  ;;  %v929_v19 = vsel %vm518_vm8, %v924_v14, %v3598_v10 }
 0x2f2   : > { %v959_v17 = vpop.permute.xlu1 %958  ;;  %v3196_v18 = vpack.c.bf16 %v965_v16, %v930_v15 }
 0x2f3   : > { %v964_v20 = vsel %vm556_vm10, %v959_v17, %v3603_v13  ;;  %vm2124_vm10 = vcmask 752640  }
 0x2f4   : > { %v3198_v21 = vpack.c.bf16 %v964_v20, %v929_v19  ;;  %v3607_v22 = vpop.permute.xlu0 %3606  ;;  %3197 = vmatprep.subr.bf16.mxu1 %v3196_v18 }
 0x2f5   : > { %v3609_v1 = vunpack.i.h.bf16 %v3607_v22  ;;  %v3608_v2 = vunpack.i.l.bf16 %v3607_v22 }
 0x2f6   : > { %v3612_v23 = vpop.permute.xlu1 %3611  ;;  %3199 = vmatpush1.bf16.msra.mxu1 %v3198_v21 }
 0x2f7   : > { %v3614_v24 = vunpack.i.h.bf16 %v3612_v23  ;;  %v3613_v25 = vunpack.i.l.bf16 %v3612_v23  ;;  %v1000_v27 = vsel %vm594_vm12, %v3608_v2, %v3609_v1 }
 0x2f8   : > { %v994_v26 = vpop.permute.xlu0 %993 }
 0x2f9   : > { %v1035_v28 = vsel %vm632_vm14, %v3613_v25, %v3614_v24  ;;  %v999_v31 = vsel %vm594_vm12, %v994_v26, %v3608_v2 }
 0x2fa   : > { %v1029_v29 = vpop.permute.xlu1 %1028  ;;  %v3200_v30 = vpack.c.bf16 %v1035_v28, %v1000_v27  ;;  %v1328_v27 = vld [vmem:[%s5542_s3] sm:$0xff]  ;;  %v1329_v28 = vld [vmem:[%s5542_s3 + $0x8] sm:$0xff] }
 0x2fb   : > { %v1034_v32 = vsel %vm632_vm14, %v1029_v29, %v3613_v25  ;;  %vm2337_vm14 = vcmask 654336  }
 0x2fc   : > { %v3202_v33 = vpack.c.bf16 %v1034_v32, %v999_v31  ;;  %v3617_v34 = vpop.permute.xlu0 %3616  ;;  %3201 = vmatprep.subr.bf16.mxu1 %v3200_v30 }
 0x2fd   : > { %v3619_v35 = vunpack.i.h.bf16 %v3617_v34  ;;  %v3618_v36 = vunpack.i.l.bf16 %v3617_v34 }
 0x2fe   : > { %v3622_v37 = vpop.permute.xlu1 %3621  ;;  %3203 = vmatpush1.bf16.msra.mxu1 %v3202_v33 }
 0x2ff   : > { %v3624_v38 = vunpack.i.h.bf16 %v3622_v37  ;;  %v3623_v39 = vunpack.i.l.bf16 %v3622_v37  ;;  %v1071_v63 = vsel %vm1069_vm15, %v3618_v36, %v3619_v35 }
 0x300   : > { %v1064_v40 = vpop.permute.xlu0 %1063 }
 0x301   : > { %v1107_v41 = vsel %vm1105_vm0, %v3623_v39, %v3624_v38  ;;  %v1070_v44 = vsel %vm1069_vm15, %v1064_v40, %v3618_v36 }
 0x302   : > { %v1100_v42 = vpop.permute.xlu1 %1099  ;;  %v3204_v43 = vpack.c.bf16 %v1107_v41, %v1071_v63 }
 0x303   : > { %v1106_v45 = vsel %vm1105_vm0, %v1100_v42, %v3623_v39  ;;  %vm2408_vm0 = vcmask 621568  }
 0x304   : > { %v3206_v46 = vpack.c.bf16 %v1106_v45, %v1070_v44  ;;  %v3627_v47 = vpop.permute.xlu0 %3626  ;;  %3205 = vmatprep.subr.bf16.mxu1 %v3204_v43 }
 0x305   : > { %v3629_v48 = vunpack.i.h.bf16 %v3627_v47  ;;  %v3628_v49 = vunpack.i.l.bf16 %v3627_v47 }
 0x306   : > { %v3632_v50 = vpop.permute.xlu1 %3631  ;;  %3207 = vmatpush1.bf16.msra.mxu1 %v3206_v46 }
 0x307   : > { %v3634_v51 = vunpack.i.h.bf16 %v3632_v50  ;;  %v3633_v52 = vunpack.i.l.bf16 %v3632_v50  ;;  %v1143_v55 = vsel %vm1141_vm1, %v3628_v49, %v3629_v48 }
 0x308   : > { %v1136_v53 = vpop.permute.xlu0 %1135 }
 0x309   : > { %v1179_v56 = vsel %vm1177_vm3, %v3633_v52, %v3634_v51  ;;  %v1142_v60 = vsel %vm1141_vm1, %v1136_v53, %v3628_v49 }
 0x30a   : > { %v1172_v58 = vpop.permute.xlu1 %1171  ;;  %v3208_v59 = vpack.c.bf16 %v1179_v56, %v1143_v55 }
 0x30b   : > { %v1178_v62 = vsel %vm1177_vm3, %v1172_v58, %v3633_v52  ;;  %vm2479_vm3 = vcmask 588800  }
 0x30c   : > { %v3210_v61 = vpack.c.bf16 %v1178_v62, %v1142_v60  ;;  %v3637_v54 = vpop.permute.xlu0 %3636  ;;  %3209 = vmatprep.subr.bf16.mxu1 %v3208_v59 }
 0x30d   : > { %v3639_v3 = vunpack.i.h.bf16 %v3637_v54  ;;  %v3638_v57 = vunpack.i.l.bf16 %v3637_v54 }
 0x30e   : > { %v3642_v4 = vpop.permute.xlu1 %3641  ;;  %3211 = vmatpush1.bf16.msra.mxu1 %v3210_v61 }
 0x30f   : > { %v3644_v5 = vunpack.i.h.bf16 %v3642_v4  ;;  %v3643_v6 = vunpack.i.l.bf16 %v3642_v4  ;;  %v1215_v8 = vsel %vm1213_vm5, %v3638_v57, %v3639_v3 }
 0x310   : > { %v1208_v7 = vpop.permute.xlu0 %1207 }
 0x311   : > { %v1251_v9 = vsel %vm1249_vm6, %v3643_v6, %v3644_v5  ;;  %v1214_v12 = vsel %vm1213_vm5, %v1208_v7, %v3638_v57 }
 0x312   : > { %v1244_v10 = vpop.permute.xlu1 %1243  ;;  %v3212_v11 = vpack.c.bf16 %v1251_v9, %v1215_v8 }
 0x313   : > { %v1250_v13 = vsel %vm1249_vm6, %v1244_v10, %v3643_v6  ;;  %vm2938_vm6 = vcmask 261120  }
 0x314   : > { %v3214_v14 = vpack.c.bf16 %v1250_v13, %v1214_v12  ;;  %v3647_v15 = vpop.permute.xlu0 %3646  ;;  %3213 = vmatprep.subr.bf16.mxu1 %v3212_v11 }
 0x315   : > { %v3649_v16 = vunpack.i.h.bf16 %v3647_v15  ;;  %v3648_v17 = vunpack.i.l.bf16 %v3647_v15 }
 0x316   : > { %v3652_v18 = vpop.permute.xlu1 %3651  ;;  %3215 = vmatpush1.bf16.msra.mxu1 %v3214_v14 }
 0x317   : > { %v3654_v19 = vunpack.i.h.bf16 %v3652_v18  ;;  %v3653_v20 = vunpack.i.l.bf16 %v3652_v18  ;;  %v1287_v22 = vsel %vm1285_vm7, %v3648_v17, %v3649_v16 }
 0x318   : > { %v1280_v21 = vpop.permute.xlu0 %1279 }
 0x319   : > { %v1323_v1 = vsel %vm1321_vm9, %v3653_v20, %v3654_v19  ;;  %v1286_v24 = vsel %vm1285_vm7, %v1280_v21, %v3648_v17 }
 0x31a   : > { %v1316_v2 = vpop.permute.xlu1 %1315  ;;  %v3216_v23 = vpack.c.bf16 %v1323_v1, %v1287_v22 }
 0x31b   : > { %v1322_v25 = vsel %vm1321_vm9, %v1316_v2, %v3653_v20 }
 0x31c   : > { %v3218_v26 = vpack.c.bf16 %v1322_v25, %v1286_v24  ;;  %3217 = vmatprep.subr.bf16.mxu1 %v3216_v23 }
 0x31e   : > { %3219 = vmatpush1.bf16.msra.mxu1 %v3218_v26 }
 0x321   : > { %1439 = vmatmul.mubr.f32.vlgmr.msra.gmra.mrb[2].mxu1 %v1328_v27 }
 0x322   : > { %1444 = vmatprep.mubr.f32.mxu1 %v4353_v0 }
 0x325   : > { %1445 = vmatmul.mubr.f32.gmra.mrb[4].mxu1 %v1329_v28 }
 0x329   : > { %v1367_v30 = vpop.permute.xlu0 %1366 }
 0x32b   : > { %v1372_v37 = vpop.permute.xlu1 %1371 }
 0x3f4   : > { %v1440_v29 = vpop.f32.mrb[2].mxu1 }
 0x3f5   : > { %v1442_v31 = vpop.f32.mrb[3].mxu1  ;;  %v1441_v39 = vadd.f32 %v1440_v29, %v1367_v30 }
 0x3f6   : > { %v1443_v32 = vadd.f32 %v1442_v31, %v1367_v30 }
 0x3f7   : > { %v4855_v63 = vmax.f32 %v1441_v39, 0.0 }
 0x3f8   : > { %v4835_v33 = vmax.f32 %v1443_v32, 0.0  ;;  %v1446_v34 = vpop.f32.mrb[4].mxu1 }
 0x3f9   : > { %v1448_v35 = vpop.f32.mrb[5].mxu1  ;;  %v1447_v38 = vadd.f32 %v1446_v34, %v1372_v37 }
 0x3fa   : > { %v3661_v36 = vpack.i.bf16 %v4353_v0, %v4835_v33  ;;  %v1449_v42 = vadd.f32 %v1448_v35, %v1372_v37 }
 0x3fb   : > { %v4853_v40 = vmax.f32 %v1447_v38, 0.0 }
 0x3fc   : > { %3662 = vrot.lane.b32.xlu1 %v3661_v36, %s4354_s17  ;;  %3657 = vrot.lane.b32.xlu0 %v3661_v36, %s4354_s17  ;;  %v4873_v43 = vmax.f32 %v1449_v42, 0.0 }
 0x3fd   : > { %v3741_v41 = vpack.i.bf16 %v4853_v40, %v4855_v63 }
 0x3fe   : > { %v3811_v44 = vpack.i.bf16 %v4353_v0, %v4873_v43 }
 0x400   : > { %3672 = vrot.lane.b32.xlu1 %v3661_v36, %s4354_s17  ;;  %3667 = vrot.lane.b32.xlu0 %v3661_v36, %s4354_s17 }
 0x404   : > { %3682 = vrot.lane.b32.xlu1 %v3661_v36, %s4354_s17  ;;  %3677 = vrot.lane.b32.xlu0 %v3661_v36, %s4354_s17 }
 0x408   : > { %3692 = vrot.lane.b32.xlu1 %v3661_v36, %s4354_s17  ;;  %3687 = vrot.lane.b32.xlu0 %v3661_v36, %s4354_s17 }
 0x40c   : > { %3702 = vrot.lane.b32.xlu1 %v3661_v36, %s4354_s17  ;;  %3697 = vrot.lane.b32.xlu0 %v3661_v36, %s4354_s17 }
 0x410   : > { %3712 = vrot.lane.b32.xlu1 %v3661_v36, %s4354_s17  ;;  %3707 = vrot.lane.b32.xlu0 %v3661_v36, %s4354_s17 }
 0x414   : > { %3722 = vrot.lane.b32.xlu1 %v3661_v36, %s4354_s17  ;;  %3717 = vrot.lane.b32.xlu0 %v3661_v36, %s4354_s17 }
 0x418   : > { %3732 = vrot.lane.b32.xlu1 %v3661_v36, %s4354_s17  ;;  %3727 = vrot.lane.b32.xlu0 %v3661_v36, %s4354_s17 }
 0x41c   : > { %3742 = vrot.lane.b32.xlu1 %v3741_v41, %s4354_s17  ;;  %3737 = vrot.lane.b32.xlu0 %v3741_v41, %s4354_s17 }
 0x420   : > { %3752 = vrot.lane.b32.xlu1 %v3741_v41, %s4354_s17  ;;  %3747 = vrot.lane.b32.xlu0 %v3741_v41, %s4354_s17 }
 0x424   : > { %3762 = vrot.lane.b32.xlu1 %v3741_v41, %s4354_s17  ;;  %3757 = vrot.lane.b32.xlu0 %v3741_v41, %s4354_s17 }
 0x428   : > { %3772 = vrot.lane.b32.xlu1 %v3741_v41, %s4354_s17  ;;  %3767 = vrot.lane.b32.xlu0 %v3741_v41, %s4354_s17 }
 0x42c   : > { %3782 = vrot.lane.b32.xlu1 %v3741_v41, %s4354_s17  ;;  %3777 = vrot.lane.b32.xlu0 %v3741_v41, %s4354_s17 }
 0x430   : > { %3792 = vrot.lane.b32.xlu1 %v3741_v41, %s4354_s17  ;;  %3787 = vrot.lane.b32.xlu0 %v3741_v41, %s4354_s17 }
 0x434   : > { %3802 = vrot.lane.b32.xlu1 %v3741_v41, %s4354_s17  ;;  %3797 = vrot.lane.b32.xlu0 %v3741_v41, %s4354_s17 }
 0x438   : > { %3812 = vrot.lane.b32.xlu1 %v3811_v44, %s4354_s17  ;;  %3807 = vrot.lane.b32.xlu0 %v3741_v41, %s4354_s17 }
 0x43c   : > { %3817 = vrot.lane.b32.xlu1 %v3741_v41, %s4354_s17  ;;  %3822 = vrot.lane.b32.xlu0 %v3811_v44, %s4354_s17 }
 0x440   : > { %3827 = vrot.lane.b32.xlu1 %v3811_v44, %s4354_s17  ;;  %3832 = vrot.lane.b32.xlu0 %v3811_v44, %s4354_s17 }
 0x444   : > { %3837 = vrot.lane.b32.xlu1 %v3811_v44, %s4354_s17  ;;  %3842 = vrot.lane.b32.xlu0 %v3811_v44, %s4354_s17 }
 0x448   : > { %3847 = vrot.lane.b32.xlu1 %v3811_v44, %s4354_s17  ;;  %3852 = vrot.lane.b32.xlu0 %v3811_v44, %s4354_s17 }
 0x44c   : > { %3857 = vrot.lane.b32.xlu1 %v3811_v44, %s4354_s17  ;;  %3862 = vrot.lane.b32.xlu0 %v3811_v44, %s4354_s17 }
 0x450   : > { %3867 = vrot.lane.b32.xlu1 %v3811_v44, %s4354_s17  ;;  %3872 = vrot.lane.b32.xlu0 %v3811_v44, %s4354_s17 }
 0x454   : > { %3877 = vrot.lane.b32.xlu1 %v3811_v44, %s4354_s17  ;;  %3882 = vrot.lane.b32.xlu0 %v3811_v44, %s4354_s17 }
 0x458   : > { %3887 = vrot.lane.b32.xlu1 %v3811_v44, %s4354_s17  ;;  %3892 = vrot.lane.b32.xlu0 %v3811_v44, %s4354_s17  ;;  %s5583_s17 = smov 108  }
 0x46e   : > { %v4897_v0 = vpop.permute.xlu1 %3662  ;;  %v4899_v45 = vpop.permute.xlu0 %3657 }
 0x46f   : > { %v3665_v46 = vunpack.i.h.bf16 %v4897_v0  ;;  %v3664_v47 = vunpack.i.l.bf16 %v4897_v0  ;;  %v3660_v48 = vunpack.i.h.bf16 %v4899_v45  ;;  %v3659_v49 = vunpack.i.l.bf16 %v4899_v45 }
 0x471   : > { %v1611_v50 = vmax.f32 %v3665_v46, 0.0  ;;  %v1600_v51 = vsel %vm404_vm2, %v3664_v47, %v3665_v46  ;;  %v1541_v52 = vmax.f32 %v3660_v48, 0.0  ;;  %v1530_v53 = vsel %vm404_vm2, %v3659_v49, %v3660_v48 }
 0x472   : > { %v1610_v55 = vmax.f32 %v4835_v33, %v1600_v51  ;;  %v1540_v56 = vmax.f32 %v4835_v33, %v1530_v53  ;;  %v4913_v58 = vpop.permute.xlu1 %3672  ;;  %v4915_v59 = vpop.permute.xlu0 %3667 }
 0x473   : > { %v3675_v60 = vunpack.i.h.bf16 %v4913_v58  ;;  %v3674_v62 = vunpack.i.l.bf16 %v4913_v58  ;;  %v3670_v61 = vunpack.i.h.bf16 %v4915_v59  ;;  %v3669_v54 = vunpack.i.l.bf16 %v4915_v59 }
 0x474   : > { %v3901_v3 = vpack.i.bf16 %v1611_v50, %v1610_v55  ;;  %v3896_v57 = vpack.i.bf16 %v1541_v52, %v1540_v56 }
 0x475   : > { %v1751_v4 = vmax.f32 %v3675_v60, 0.0  ;;  %v1740_v5 = vsel %vm404_vm2, %v3674_v62, %v3675_v60  ;;  %v1681_v6 = vmax.f32 %v3670_v61, 0.0  ;;  %v1670_v7 = vsel %vm404_vm2, %v3669_v54, %v3670_v61 }
 0x476   : > { %v1750_v8 = vmax.f32 %v4835_v33, %v1740_v5  ;;  %v1680_v9 = vmax.f32 %v4835_v33, %v1670_v7  ;;  %v4929_v10 = vpop.permute.xlu1 %3682  ;;  %v4931_v11 = vpop.permute.xlu0 %3677  ;;  %3902 = vrot.lane.b32.xlu1 %v3901_v3, %s5564_s22  ;;  %3897 = vrot.lane.b32.xlu0 %v3896_v57, %s4358_s25 }
 0x477   : > { %v3685_v12 = vunpack.i.h.bf16 %v4929_v10  ;;  %v3684_v13 = vunpack.i.l.bf16 %v4929_v10  ;;  %v3680_v14 = vunpack.i.h.bf16 %v4931_v11  ;;  %v3679_v15 = vunpack.i.l.bf16 %v4931_v11 }
 0x478   : > { %v3911_v16 = vpack.i.bf16 %v1751_v4, %v1750_v8  ;;  %v3906_v17 = vpack.i.bf16 %v1681_v6, %v1680_v9 }
 0x479   : > { %v1891_v18 = vmax.f32 %v3685_v12, 0.0  ;;  %v1880_v19 = vsel %vm404_vm2, %v3684_v13, %v3685_v12  ;;  %v1821_v20 = vmax.f32 %v3680_v14, 0.0  ;;  %v1810_v21 = vsel %vm404_vm2, %v3679_v15, %v3680_v14 }
 0x47a   : > { %v1890_v22 = vmax.f32 %v4835_v33, %v1880_v19  ;;  %v1820_v1 = vmax.f32 %v4835_v33, %v1810_v21  ;;  %v4947_v2 = vpop.permute.xlu1 %3692  ;;  %v4949_v23 = vpop.permute.xlu0 %3687  ;;  %3912 = vrot.lane.b32.xlu1 %v3911_v16, %s5560_s18  ;;  %3907 = vrot.lane.b32.xlu0 %v3906_v17, %s5562_s24 }
 0x47b   : > { %v3695_v24 = vunpack.i.h.bf16 %v4947_v2  ;;  %v3694_v25 = vunpack.i.l.bf16 %v4947_v2  ;;  %v3690_v26 = vunpack.i.h.bf16 %v4949_v23  ;;  %v3689_v27 = vunpack.i.l.bf16 %v4949_v23 }
 0x47c   : > { %v3921_v28 = vpack.i.bf16 %v1891_v18, %v1890_v22  ;;  %v3916_v29 = vpack.i.bf16 %v1821_v20, %v1820_v1 }
 0x47d   : > { %v2031_v30 = vmax.f32 %v3695_v24, 0.0  ;;  %v2020_v31 = vsel %vm404_vm2, %v3694_v25, %v3695_v24  ;;  %v1961_v32 = vmax.f32 %v3690_v26, 0.0  ;;  %v1950_v34 = vsel %vm404_vm2, %v3689_v27, %v3690_v26 }
 0x47e   : > { %v2030_v35 = vmax.f32 %v4835_v33, %v2020_v31  ;;  %v1960_v36 = vmax.f32 %v4835_v33, %v1950_v34  ;;  %v4965_v37 = vpop.permute.xlu1 %3702  ;;  %v4967_v38 = vpop.permute.xlu0 %3697  ;;  %3922 = vrot.lane.b32.xlu1 %v3921_v28, %s4374_s15  ;;  %3917 = vrot.lane.b32.xlu0 %v3916_v29, %s5583_s17 }
 0x47f   : > { %v3705_v39 = vunpack.i.h.bf16 %v4965_v37  ;;  %v3704_v41 = vunpack.i.l.bf16 %v4965_v37  ;;  %v3700_v42 = vunpack.i.h.bf16 %v4967_v38  ;;  %v3699_v44 = vunpack.i.l.bf16 %v4967_v38 }
 0x480   : > { %v3931_v46 = vpack.i.bf16 %v2031_v30, %v2030_v35  ;;  %v3926_v48 = vpack.i.bf16 %v1961_v32, %v1960_v36 }
 0x481   : > { %v2173_v50 = vmax.f32 %v3705_v39, 0.0  ;;  %v2162_v51 = vsel %vm404_vm2, %v3704_v41, %v3705_v39  ;;  %v2102_v52 = vmax.f32 %v3700_v42, 0.0  ;;  %v2091_v53 = vsel %vm404_vm2, %v3699_v44, %v3700_v42 }
 0x482   : > { %v2172_v55 = vmax.f32 %v4835_v33, %v2162_v51  ;;  %v2101_v56 = vmax.f32 %v4835_v33, %v2091_v53  ;;  %v4983_v60 = vpop.permute.xlu1 %3712  ;;  %v4985_v61 = vpop.permute.xlu0 %3707  ;;  %3932 = vrot.lane.b32.xlu1 %v3931_v46, %s4378_s26  ;;  %3927 = vrot.lane.b32.xlu0 %v3926_v48, %s4376_s29 }
 0x483   : > { %v3715_v3 = vunpack.i.h.bf16 %v4983_v60  ;;  %v3714_v57 = vunpack.i.l.bf16 %v4983_v60  ;;  %v3710_v4 = vunpack.i.h.bf16 %v4985_v61  ;;  %v3709_v5 = vunpack.i.l.bf16 %v4985_v61 }
 0x484   : > { %v3941_v6 = vpack.i.bf16 %v2173_v50, %v2172_v55  ;;  %v3936_v7 = vpack.i.bf16 %v2102_v52, %v2101_v56 }
 0x485   : > { %v2315_v8 = vmax.f32 %v3715_v3, 0.0  ;;  %v2304_v9 = vsel %vm404_vm2, %v3714_v57, %v3715_v3  ;;  %v2244_v12 = vmax.f32 %v3710_v4, 0.0  ;;  %v2233_v14 = vsel %vm404_vm2, %v3709_v5, %v3710_v4 }
 0x486   : > { %v2314_v16 = vmax.f32 %v4835_v33, %v2304_v9  ;;  %v2243_v17 = vmax.f32 %v4835_v33, %v2233_v14  ;;  %v5001_v18 = vpop.permute.xlu1 %3722  ;;  %v5003_v19 = vpop.permute.xlu0 %3717  ;;  %3942 = vrot.lane.b32.xlu1 %v3941_v6, %s5555_s14  ;;  %3937 = vrot.lane.b32.xlu0 %v3936_v7, %s5557_s23  ;;  %s4383_s14 = smov 72   ;;  %s4384_s23 = smov 76  }
 0x487   : > { %v3725_v20 = vunpack.i.h.bf16 %v5001_v18  ;;  %v5559_v21 = vunpack.i.l.bf16 %v5001_v18  ;;  %v3720_v22 = vunpack.i.h.bf16 %v5003_v19  ;;  %v3719_v1 = vunpack.i.l.bf16 %v5003_v19 }
 0x488   : > { %v3951_v24 = vpack.i.bf16 %v2315_v8, %v2314_v16  ;;  %v3946_v26 = vpack.i.bf16 %v2244_v12, %v2243_v17 }
 0x489   : > { %v2457_v28 = vmax.f32 %v3725_v20, 0.0  ;;  %v2446_v29 = vsel %vm404_vm2, %v5559_v21, %v3725_v20  ;;  %v2386_v30 = vmax.f32 %v3720_v22, 0.0  ;;  %v2375_v31 = vsel %vm404_vm2, %v3719_v1, %v3720_v22 }
 0x48a   : > { %v2456_v32 = vmax.f32 %v4835_v33, %v2446_v29  ;;  %v2385_v34 = vmax.f32 %v4835_v33, %v2375_v31  ;;  %v5019_v35 = vpop.permute.xlu1 %3732  ;;  %v5021_v36 = vpop.permute.xlu0 %3727  ;;  %3952 = vrot.lane.b32.xlu1 %v3951_v24, %s4381_s19  ;;  %3947 = vrot.lane.b32.xlu0 %v3946_v26, %s4382_s28 }
 0x48c   : > { %v3961_v39 = vpack.i.bf16 %v2457_v28, %v2456_v32  ;;  %v3956_v42 = vpack.i.bf16 %v2386_v30, %v2385_v34 }
 0x48e   : > { %3962 = vrot.lane.b32.xlu1 %v3961_v39, %s4383_s14  ;;  %v3743_v46 = vpop.permute.xlu1 %3742  ;;  %3957 = vrot.lane.b32.xlu0 %v3956_v42, %s4384_s23  ;;  %v3738_v48 = vpop.permute.xlu0 %3737 }
 0x48f   : > { %v3739_v12 = vunpack.i.l.bf16 %v3738_v48  ;;  %v3744_v14 = vunpack.i.l.bf16 %v3743_v46  ;;  %v3740_v20 = vunpack.i.h.bf16 %v3738_v48  ;;  %v3745_v48 = vunpack.i.h.bf16 %v3743_v46 }
 0x491   : > { %v1529_v22 = vsel %vm404_vm2, %v3739_v12, %v3659_v49  ;;  %v1599_v28 = vsel %vm404_vm2, %v3744_v14, %v3664_v47 }
 0x492   : > { %v5027_v50 = vpop.permute.xlu1 %3752  ;;  %v3748_v51 = vpop.permute.xlu0 %3747  ;;  %v1539_v32 = vmax.f32 %v4855_v63, %v1529_v22  ;;  %v1609_v14 = vmax.f32 %v4855_v63, %v1599_v28 }
 0x493   : > { %v3749_v34 = vunpack.i.l.bf16 %v3748_v51 }
 0x496   : > { %v5029_v52 = vpop.permute.xlu1 %3762  ;;  %v5031_v53 = vpop.permute.xlu0 %3757 }
 0x49a   : > { %v5033_v55 = vpop.permute.xlu1 %3772  ;;  %v5035_v56 = vpop.permute.xlu0 %3767 }
 0x49b   : > { %v3775_v23 = vunpack.i.h.bf16 %v5033_v55 }
 0x49e   : > { %v5037_v3 = vpop.permute.xlu1 %3782  ;;  %v5039_v4 = vpop.permute.xlu0 %3777 }
 0x4a2   : > { %v5041_v6 = vpop.permute.xlu1 %3792  ;;  %v5043_v7 = vpop.permute.xlu0 %3787 }
 0x4a6   : > { %v5045_v8 = vpop.permute.xlu1 %3802  ;;  %v5047_v9 = vpop.permute.xlu0 %3797 }
 0x4a7   : > { %v3804_v19 = vunpack.i.l.bf16 %v5045_v8 }
 0x4aa   : > { %v3813_v16 = vpop.permute.xlu1 %3812  ;;  %v5049_v17 = vpop.permute.xlu0 %3807 }
 0x4ab   : > { %v3815_v24 = vunpack.i.h.bf16 %v3813_v16  ;;  %v3814_v26 = vunpack.i.l.bf16 %v3813_v16 }
 0x4ad   : > { %v1544_v29 = vmax.f32 %v3815_v24, 0.0  ;;  %v1532_v30 = vsel %vm404_vm2, %v3814_v26, %v3815_v24  ;;  %v1531_v31 = vsel %vm404_vm2, %v3740_v20, %v3814_v26  ;;  %v3750_v26 = vunpack.i.h.bf16 %v3748_v51 }
 0x4ae   : > { %v1543_v39 = vmax.f32 %v4873_v43, %v1532_v30  ;;  %v1542_v45 = vmax.f32 %v4853_v40, %v1531_v31  ;;  %v5062_v42 = vpop.permute.xlu1 %3817  ;;  %v3823_v49 = vpop.permute.xlu0 %3822  ;;  %v1669_v30 = vsel %vm404_vm2, %v3749_v34, %v3669_v54 }
 0x4af   : > { %v3825_v12 = vunpack.i.h.bf16 %v3823_v49  ;;  %v3824_v0 = vunpack.i.l.bf16 %v3823_v49  ;;  %v1679_v34 = vmax.f32 %v4855_v63, %v1669_v30 }
 0x4b0   : > { %v3966_v16 = vpack.i.bf16 %v1544_v29, %v1543_v39  ;;  %v3971_v47 = vpack.i.bf16 %v1542_v45, %v1539_v32 }
 0x4b1   : > { %v1614_v24 = vmax.f32 %v3825_v12, 0.0  ;;  %v1602_v20 = vsel %vm404_vm2, %v3824_v0, %v3825_v12  ;;  %v1601_v22 = vsel %vm404_vm2, %v3745_v48, %v3824_v0 }
 0x4b2   : > { %v1613_v31 = vmax.f32 %v4873_v43, %v1602_v20  ;;  %v1612_v46 = vmax.f32 %v4853_v40, %v1601_v22  ;;  %v3828_v21 = vpop.permute.xlu1 %3827  ;;  %3967 = vrot.lane.b32.xlu1 %v3966_v16, %s4358_s25  ;;  %v3833_v29 = vpop.permute.xlu0 %3832  ;;  %3972 = vrot.lane.b32.xlu0 %v3971_v47, %s4358_s25  ;;  %v3755_v22 = vunpack.i.h.bf16 %v5027_v50 }
 0x4b3   : > { %v3830_v28 = vunpack.i.h.bf16 %v3828_v21  ;;  %v3829_v32 = vunpack.i.l.bf16 %v3828_v21  ;;  %v3835_v39 = vunpack.i.h.bf16 %v3833_v29  ;;  %v3834_v45 = vunpack.i.l.bf16 %v3833_v29 }
 0x4b4   : > { %v3976_v49 = vpack.i.bf16 %v1614_v24, %v1613_v31  ;;  %v3981_v51 = vpack.i.bf16 %v1612_v46, %v1609_v14  ;;  %v3760_v29 = vunpack.i.h.bf16 %v5031_v53 }
 0x4b5   : > { %v1684_v48 = vmax.f32 %v3830_v28, 0.0  ;;  %v1672_v59 = vsel %vm404_vm2, %v3829_v32, %v3830_v28  ;;  %v1671_v54 = vsel %vm404_vm2, %v3750_v26, %v3829_v32  ;;  %v1742_v16 = vsel %vm404_vm2, %v3834_v45, %v3835_v39 }
 0x4b6   : > { %v1683_v12 = vmax.f32 %v4873_v43, %v1672_v59  ;;  %v1682_v0 = vmax.f32 %v4853_v40, %v1671_v54  ;;  %v3838_v47 = vpop.permute.xlu1 %3837  ;;  %3982 = vrot.lane.b32.xlu1 %v3981_v51, %s5564_s22  ;;  %3977 = vrot.lane.b32.xlu0 %v3976_v49, %s5564_s22  ;;  %v1754_v24 = vmax.f32 %v3835_v39, 0.0  ;;  %v1753_v20 = vmax.f32 %v4873_v43, %v1742_v16  ;;  %v3843_v46 = vpop.permute.xlu0 %3842  ;;  %s5587_s22 = smov 120  }
 0x4b7   : > { %v3754_v26 = vunpack.i.l.bf16 %v5027_v50  ;;  %v3839_v30 = vunpack.i.l.bf16 %v3838_v47  ;;  %v3759_v28 = vunpack.i.l.bf16 %v5031_v53  ;;  %v1741_v32 = vsel %vm404_vm2, %v3755_v22, %v3834_v45 }
 0x4b8   : > { %v3986_v21 = vpack.i.bf16 %v1684_v48, %v1683_v12  ;;  %v3991_v14 = vpack.i.bf16 %v1682_v0, %v1679_v34  ;;  %v3840_v39 = vunpack.i.h.bf16 %v3838_v47  ;;  %v3730_v49 = vunpack.i.h.bf16 %v5021_v36 }
 0x4b9   : > { %v3729_v51 = vunpack.i.l.bf16 %v5021_v36  ;;  %v3996_v50 = vpack.i.bf16 %v1754_v24, %v1753_v20  ;;  %v1739_v48 = vsel %vm404_vm2, %v3754_v26, %v3674_v62  ;;  %v1811_v59 = vsel %vm404_vm2, %v3760_v29, %v3839_v30 }
 0x4ba   : > { %v5085_v31 = vpop.permute.xlu1 %3847  ;;  %3987 = vrot.lane.b32.xlu1 %v3986_v21, %s5562_s24  ;;  %3992 = vrot.lane.b32.xlu0 %v3991_v14, %s5562_s24  ;;  %v3845_v54 = vunpack.i.h.bf16 %v3843_v46  ;;  %v3844_v34 = vunpack.i.l.bf16 %v3843_v46  ;;  %v1752_v53 = vmax.f32 %v4853_v40, %v1741_v32  ;;  %v3764_v45 = vunpack.i.l.bf16 %v5029_v52  ;;  %v3853_v46 = vpop.permute.xlu0 %3852  ;;  %s4386_s24 = smov [#allocation12]  }
 0x4bb   : > { %v1809_v0 = vsel %vm404_vm2, %v3759_v28, %v3679_v15  ;;  %v1812_v58 = vsel %vm404_vm2, %v3839_v30, %v3840_v39  ;;  %v1749_v62 = vmax.f32 %v4855_v63, %v1739_v48  ;;  %v3774_v16 = vunpack.i.l.bf16 %v5033_v55 }
 0x4bc   : > { %v1822_v47 = vmax.f32 %v4853_v40, %v1811_v59  ;;  %v5113_v21 = vsel %vm404_vm2, %v3729_v51, %v3730_v49  ;;  %v3765_v14 = vunpack.i.h.bf16 %v5029_v52  ;;  %v3769_v24 = vunpack.i.l.bf16 %v5035_v56 }
 0x4bd   : > { %v1882_v11 = vsel %vm404_vm2, %v3844_v34, %v3845_v54  ;;  %v3849_v15 = vunpack.i.l.bf16 %v5085_v31  ;;  %v1819_v22 = vmax.f32 %v4855_v63, %v1809_v0  ;;  %v1824_v26 = vmax.f32 %v3840_v39, 0.0 }
 0x4be   : > { %v5098_v12 = vpop.permute.xlu1 %3857  ;;  %3997 = vrot.lane.b32.xlu0 %v3996_v50, %s5560_s18  ;;  %v1823_v30 = vmax.f32 %v4873_v43, %v1812_v58  ;;  %v4001_v29 = vpack.i.bf16 %v1752_v53, %v1749_v62  ;;  %v1879_v28 = vsel %vm404_vm2, %v3764_v45, %v3684_v13  ;;  %v3770_v52 = vunpack.i.h.bf16 %v5035_v56 }
 0x4bf   : > { %v1881_v32 = vsel %vm404_vm2, %v3765_v14, %v3844_v34  ;;  %v3850_v49 = vunpack.i.h.bf16 %v5085_v31  ;;  %v5132_v50 = vsel %vm404_vm2, %v3774_v16, %v3694_v25  ;;  %v1894_v39 = vmax.f32 %v3845_v54, 0.0 }
 0x4c0   : > { %v1893_v48 = vmax.f32 %v4873_v43, %v1882_v11  ;;  %4002 = vrot.lane.b32.xlu1 %v4001_v29, %s5560_s18  ;;  %v4011_v59 = vpack.i.bf16 %v1822_v47, %v1819_v22  ;;  %v1949_v10 = vsel %vm404_vm2, %v3769_v24, %v3689_v27  ;;  %v1951_v13 = vsel %vm404_vm2, %v3770_v52, %v3849_v15  ;;  %s4283_s18 = sshll.u32 %s4386_s24, 4  ;;  %s4284_s18 = int_to_ptr.vmem [resolvable:$false] %s4283_s18 }
 0x4c1   : > { %v3855_v56 = vunpack.i.h.bf16 %v3853_v46  ;;  %v3854_v34 = vunpack.i.l.bf16 %v3853_v46  ;;  %v4006_v2 = vpack.i.bf16 %v1824_v26, %v1823_v30  ;;  %v1892_v25 = vmax.f32 %v4853_v40, %v1881_v32  ;;  %v3863_v26 = vpop.permute.xlu0 %3862 }
 0x4c2   : > { %v5119_v20 = vpop.permute.xlu1 %3867  ;;  %4012 = vrot.lane.b32.xlu0 %v4011_v59, %s5583_s17  ;;  %v1498_v54 = vmax.f32 %v4835_v33, %v5113_v21  ;;  %v1889_v53 = vmax.f32 %v4855_v63, %v1879_v28  ;;  %v2029_v27 = vmax.f32 %v4855_v63, %v5132_v50  ;;  %v1952_v45 = vsel %vm404_vm2, %v3849_v15, %v3850_v49 }
 0x4c3   : > { %v1959_v0 = vmax.f32 %v4855_v63, %v1949_v10  ;;  %v3809_v58 = vunpack.i.l.bf16 %v5049_v17  ;;  %v4016_v62 = vpack.i.bf16 %v1894_v39, %v1893_v48  ;;  %v1962_v16 = vmax.f32 %v4853_v40, %v1951_v13 }
 0x4c4   : > { %4007 = vrot.lane.b32.xlu1 %v4006_v2, %s5583_s17  ;;  %v3780_v47 = vunpack.i.h.bf16 %v5039_v4  ;;  %v3779_v21 = vunpack.i.l.bf16 %v5039_v4  ;;  %v2022_v55 = vsel %vm404_vm2, %v3854_v34, %v3855_v56  ;;  %v3859_v14 = vunpack.i.l.bf16 %v5098_v12 }
 0x4c5   : > { %v3810_v11 = vunpack.i.h.bf16 %v5049_v17  ;;  %v1964_v15 = vmax.f32 %v3850_v49, 0.0  ;;  %v1963_v22 = vmax.f32 %v4873_v43, %v1952_v45  ;;  %v4021_v30 = vpack.i.bf16 %v1892_v25, %v1889_v53 }
 0x4c6   : > { %v5140_v31 = vpop.permute.xlu1 %3877  ;;  %4017 = vrot.lane.b32.xlu0 %v4016_v62, %s4374_s15  ;;  %v2021_v46 = vsel %vm404_vm2, %v3775_v23, %v3854_v34  ;;  %v3860_v29 = vunpack.i.h.bf16 %v5098_v12  ;;  %v2034_v52 = vmax.f32 %v3855_v56, 0.0  ;;  %v2033_v32 = vmax.f32 %v4873_v43, %v2022_v55 }
 0x4c7   : > { %v4031_v50 = vpack.i.bf16 %v1962_v16, %v1959_v0  ;;  %v1489_v17 = vsel %vm404_vm2, %v3809_v58, %v3729_v51  ;;  %v2092_v49 = vsel %vm404_vm2, %v3780_v47, %v3859_v14  ;;  %v3865_v39 = vunpack.i.h.bf16 %v3863_v26  ;;  %v3873_v47 = vpop.permute.xlu0 %3872 }
 0x4c8   : > { %4022 = vrot.lane.b32.xlu1 %v4021_v30, %s4374_s15  ;;  %v3864_v48 = vunpack.i.l.bf16 %v3863_v26  ;;  %v2090_v12 = vsel %vm404_vm2, %v3779_v21, %v3699_v44  ;;  %v4026_v10 = vpack.i.bf16 %v1964_v15, %v1963_v22  ;;  %v2032_v13 = vmax.f32 %v4853_v40, %v2021_v46  ;;  %s5584_s15 = smov 92  }
 0x4c9   : > { %v3785_v36 = vunpack.i.h.bf16 %v5037_v3  ;;  %v2093_v51 = vsel %vm404_vm2, %v3859_v14, %v3860_v29  ;;  %v1497_v2 = vmax.f32 %v4855_v63, %v1489_v17  ;;  %v4036_v25 = vpack.i.bf16 %v2034_v52, %v2033_v32 }
 0x4ca   : > { %v3888_v24 = vpop.permute.xlu1 %3887  ;;  %4032 = vrot.lane.b32.xlu0 %v4031_v50, %s4376_s29  ;;  %v2103_v38 = vmax.f32 %v4853_v40, %v2092_v49  ;;  %v3784_v23 = vunpack.i.l.bf16 %v5037_v3  ;;  %v2100_v45 = vmax.f32 %v4855_v63, %v2090_v12  ;;  %v2164_v0 = vsel %vm404_vm2, %v3864_v48, %v3865_v39 }
 0x4cb   : > { %v3890_v28 = vunpack.i.h.bf16 %v3888_v24  ;;  %v3889_v4 = vunpack.i.l.bf16 %v3888_v24  ;;  %v3869_v58 = vunpack.i.l.bf16 %v5119_v20  ;;  %v2105_v62 = vmax.f32 %v3860_v29, 0.0 }
 0x4cc   : > { %4027 = vrot.lane.b32.xlu1 %v4026_v10, %s4376_s29  ;;  %v2104_v16 = vmax.f32 %v4873_v43, %v2093_v51  ;;  %v4041_v21 = vpack.i.bf16 %v2032_v13, %v2029_v27  ;;  %v3789_v14 = vunpack.i.l.bf16 %v5043_v7  ;;  %v2163_v3 = vsel %vm404_vm2, %v3785_v36, %v3864_v48  ;;  %s5585_s29 = smov 88  }
 0x4cd   : > { %v1492_v59 = vsel %vm404_vm2, %v3889_v4, %v3890_v28  ;;  %v1491_v34 = vsel %vm404_vm2, %v3810_v11, %v3889_v4  ;;  %v3870_v24 = vunpack.i.h.bf16 %v5119_v20  ;;  %v2176_v11 = vmax.f32 %v3865_v39, 0.0  ;;  %v3883_v39 = vpop.permute.xlu0 %3882 }
 0x4ce   : > { %v1500_v56 = vmax.f32 %v4873_v43, %v1492_v59  ;;  %v1499_v53 = vmax.f32 %v4853_v40, %v1491_v34  ;;  %4037 = vrot.lane.b32.xlu0 %v4036_v25, %s4378_s26  ;;  %v2175_v15 = vmax.f32 %v4873_v43, %v2164_v0  ;;  %v4051_v22 = vpack.i.bf16 %v2103_v38, %v2100_v45 }
 0x4cf   : > { %v2161_v27 = vsel %vm404_vm2, %v3784_v23, %v3704_v41  ;;  %v3875_v30 = vunpack.i.h.bf16 %v3873_v47  ;;  %v3874_v46 = vunpack.i.l.bf16 %v3873_v47  ;;  %v2174_v29 = vmax.f32 %v4853_v40, %v2163_v3 }
 0x4d0   : > { %v3220_v44 = vpack.c.bf16 %v1500_v56, %v1498_v54  ;;  %v3222_v55 = vpack.c.bf16 %v1499_v53, %v1497_v2  ;;  %v3790_v54 = vunpack.i.h.bf16 %v5043_v7  ;;  %4042 = vrot.lane.b32.xlu1 %v4041_v21, %s4378_s26  ;;  %v4046_v7 = vpack.i.bf16 %v2105_v62, %v2104_v16 }
 0x4d1   : > { %v2232_v20 = vsel %vm404_vm2, %v3789_v14, %v3709_v5  ;;  %v2235_v28 = vsel %vm404_vm2, %v3869_v58, %v3870_v24  ;;  %v2171_v4 = vmax.f32 %v4855_v63, %v2161_v27  ;;  %v4056_v37 = vpack.i.bf16 %v2176_v11, %v2175_v15  ;;  %v3893_v45 = vpop.permute.xlu0 %3892 }
 0x4d2   : > { %3221 = vmatprep.subr.bf16.mxu0 %v3220_v44  ;;  %v2234_v26 = vsel %vm404_vm2, %v3790_v54, %v3869_v58  ;;  %4052 = vrot.lane.b32.xlu0 %v4051_v22, %s5584_s15  ;;  %v3795_v52 = vunpack.i.h.bf16 %v5041_v6  ;;  %v3794_v32 = vunpack.i.l.bf16 %v5041_v6  ;;  %v2306_v50 = vsel %vm404_vm2, %v3874_v46, %v3875_v30 }
 0x4d3   : > { %3223 = vmatpush1.bf16.msra.mxu0 %v3222_v55  ;;  %v2245_v41 = vmax.f32 %v4853_v40, %v2234_v26  ;;  %v3879_v17 = vunpack.i.l.bf16 %v5140_v31  ;;  %v2242_v61 = vmax.f32 %v4855_v63, %v2232_v20  ;;  %v2247_v5 = vmax.f32 %v3870_v24, 0.0 }
 0x4d4   : > { %4047 = vrot.lane.b32.xlu1 %v4046_v7, %s5584_s15  ;;  %v2246_v49 = vmax.f32 %v4873_v43, %v2235_v28  ;;  %v4061_v48 = vpack.i.bf16 %v2174_v29, %v2171_v4  ;;  %v3800_v59 = vunpack.i.h.bf16 %v5047_v9  ;;  %v3799_v12 = vunpack.i.l.bf16 %v5047_v9  ;;  %s5588_s15 = smov 116  }
 0x4d5   : > { %v2305_v10 = vsel %vm404_vm2, %v3795_v52, %v3874_v46  ;;  %v3880_v6 = vunpack.i.h.bf16 %v5140_v31  ;;  %v2318_v13 = vmax.f32 %v3875_v30, 0.0  ;;  %v2317_v56 = vmax.f32 %v4873_v43, %v2306_v50 }
 0x4d6   : > { %4057 = vrot.lane.b32.xlu0 %v4056_v37, %s5585_s29  ;;  %v4071_v36 = vpack.i.bf16 %v2245_v41, %v2242_v61  ;;  %v2303_v51 = vsel %vm404_vm2, %v3794_v32, %v3714_v57  ;;  %v2376_v34 = vsel %vm404_vm2, %v3800_v59, %v3879_v17  ;;  %v3885_v2 = vunpack.i.h.bf16 %v3883_v39  ;;  %v2635_v61 = vld [vmem:[%s5545_s6] sm:$0xff] }
 0x4d7   : > { %v3884_v25 = vunpack.i.l.bf16 %v3883_v39  ;;  %v4066_v38 = vpack.i.bf16 %v2247_v5, %v2246_v49  ;;  %v2316_v9 = vmax.f32 %v4853_v40, %v2305_v10  ;;  %v2374_v31 = vsel %vm404_vm2, %v3799_v12, %v3719_v1  ;;  %v2636_v5 = vld [vmem:[%s5545_s6 + $0x8] sm:$0xff] }
 0x4d8   : > { %4062 = vrot.lane.b32.xlu1 %v4061_v48, %s5585_s29  ;;  %v2377_v44 = vsel %vm404_vm2, %v3879_v17, %v3880_v6  ;;  %v3735_v53 = vunpack.i.h.bf16 %v5019_v35  ;;  %v2313_v60 = vmax.f32 %v4855_v63, %v2303_v51  ;;  %v4076_v57 = vpack.i.bf16 %v2318_v13, %v2317_v56  ;;  %s5589_s29 = smov 112  }
 0x4d9   : > { %v2387_v23 = vmax.f32 %v4853_v40, %v2376_v34  ;;  %v3734_v0 = vunpack.i.l.bf16 %v5019_v35  ;;  %v3805_v58 = vunpack.i.h.bf16 %v5045_v8  ;;  %v2448_v1 = vsel %vm404_vm2, %v3884_v25, %v3885_v2 }
 0x4da   : > { %4072 = vrot.lane.b32.xlu0 %v4071_v36, %s4382_s28  ;;  %v2384_v62 = vmax.f32 %v4855_v63, %v2374_v31  ;;  %v2389_v16 = vmax.f32 %v3880_v6, 0.0  ;;  %v2388_v47 = vmax.f32 %v4873_v43, %v2377_v44  ;;  %v4081_v21 = vpack.i.bf16 %v2316_v9, %v2313_v60 }
 0x4db   : > { %v2447_v55 = vsel %vm404_vm2, %v3805_v58, %v3884_v25  ;;  %v3895_v54 = vunpack.i.h.bf16 %v3893_v45  ;;  %v3894_v14 = vunpack.i.l.bf16 %v3893_v45  ;;  %v2460_v3 = vmax.f32 %v3885_v2, 0.0 }
 0x4dc   : > { %4067 = vrot.lane.b32.xlu1 %v4066_v38, %s4382_s28  ;;  %v2459_v35 = vmax.f32 %v4873_v43, %v2448_v1  ;;  %v4091_v8 = vpack.i.bf16 %v2387_v23, %v2384_v62  ;;  %v2517_v24 = vsel %vm404_vm2, %v3734_v0, %v3735_v53  ;;  %v5586_v11 = vunpack.i.l.bf16 %v5001_v18  ;;  %s5590_s28 = sshll.u32 %s4580_s1, 4 }
 0x4dd   : > { %v4086_v22 = vpack.i.bf16 %v2389_v16, %v2388_v47  ;;  %v2458_v27 = vmax.f32 %v4853_v40, %v2447_v55  ;;  %v3820_v26 = vunpack.i.h.bf16 %v5062_v42  ;;  %v3819_v30 = vunpack.i.l.bf16 %v5062_v42  ;;  %v2564_v42 = vld [vmem:[%s5544_s5 + $0x8] sm:$0xff] }
 0x4de   : > { %4077 = vrot.lane.b32.xlu0 %v4076_v57, %s4381_s19  ;;  %v2445_v15 = vsel %vm404_vm2, %v3804_v19, %v5586_v11  ;;  %v2519_v46 = vsel %vm404_vm2, %v3894_v14, %v3895_v54  ;;  %v2528_v7 = vmax.f32 %v3735_v53, 0.0  ;;  %v2527_v29 = vmax.f32 %v4835_v33, %v2517_v24  ;;  %2723 = vmatprep.mubr.f32.mxu0 %v2564_v42 }
 0x4df   : > { %v2455_v20 = vmax.f32 %v4855_v63, %v2445_v15  ;;  %v4096_v28 = vpack.i.bf16 %v2460_v3, %v2459_v35  ;;  %v2518_v18 = vsel %vm404_vm2, %v3820_v26, %v3894_v14  ;;  %v2531_v4 = vmax.f32 %v3895_v54, 0.0 }
 0x4e0   : > { %4082 = vrot.lane.b32.xlu1 %v4081_v21, %s4381_s19  ;;  %v2530_v37 = vmax.f32 %v4873_v43, %v2519_v46  ;;  %v2516_v52 = vsel %vm404_vm2, %v3819_v30, %v3734_v0  ;;  %v2529_v33 = vmax.f32 %v4853_v40, %v2518_v18  ;;  %v4101_v32 = vpack.i.bf16 %v2528_v7, %v2527_v29  ;;  %v2637_v40 = vld [vmem:[%s5545_s6 + $0x10] sm:$0xff] }
 0x4e1   : > { %v4106_v41 = vpack.i.bf16 %v2458_v27, %v2455_v20  ;;  %v2526_v50 = vmax.f32 %v4855_v63, %v2516_v52  ;;  %v2638_v63 = vld [vmem:[%s5545_s6 + $0x18] sm:$0xff]  ;;  %vm2053_vm2 = vcmask 785408  }
 0x4e2   : > { %4092 = vrot.lane.b32.xlu0 %v4091_v8, %s4384_s23  ;;  %v4111_v17 = vpack.i.bf16 %v2531_v4, %v2530_v37 }
 0x4e3   : > { %v4116_v43 = vpack.i.bf16 %v2529_v33, %v2526_v50 }
 0x4e4   : > { %4087 = vrot.lane.b32.xlu1 %v4086_v22, %s4384_s23  ;;  %s4385_s23 = smov 68  }
 0x4e6   : > { %4097 = vrot.lane.b32.xlu0 %v4096_v28, %s4383_s14 }
 0x4e8   : > { %4107 = vrot.lane.b32.xlu1 %v4106_v41, %s4383_s14  ;;  %v3903_v49 = vpop.permute.xlu1 %3902  ;;  %v3898_v39 = vpop.permute.xlu0 %3897  ;;  %s3023_s14 = scalar_lea.sflag [#allocation9], %s4580_s1 }
 0x4e9   : > { %v3900_v38 = vunpack.i.h.bf16 %v3898_v39  ;;  %v3899_v9 = vunpack.i.l.bf16 %v3898_v39  ;;  %v3905_v1 = vunpack.i.h.bf16 %v3903_v49  ;;  %v3904_v62 = vunpack.i.l.bf16 %v3903_v49 }
 0x4ea   : > { %4102 = vrot.lane.b32.xlu0 %v4101_v32, %s4385_s23 }
 0x4eb   : > { %v1564_v45 = vsel %vm442_vm4, %v3899_v9, %v3900_v38  ;;  %v1634_v22 = vsel %vm518_vm8, %v3904_v62, %v3905_v1 }
 0x4ec   : > { %4112 = vrot.lane.b32.xlu1 %v4111_v17, %s4385_s23  ;;  %v5280_v48 = vpop.permute.xlu1 %3912  ;;  %v3908_v59 = vpop.permute.xlu0 %3907 }
 0x4ed   : > { %v3910_v8 = vunpack.i.h.bf16 %v3908_v59  ;;  %v3909_v24 = vunpack.i.l.bf16 %v3908_v59  ;;  %v3915_v4 = vunpack.i.h.bf16 %v5280_v48  ;;  %v3914_v42 = vunpack.i.l.bf16 %v5280_v48 }
 0x4ee   : > { %4117 = vrot.lane.b32.xlu0 %v4116_v43, %s4385_s23 }
 0x4ef   : > { %v1704_v37 = vsel %vm594_vm12, %v3909_v24, %v3910_v8 }
 0x4f0   : > { %2641 = vperm.xlu1 %3655, %v2635_v61   ;;  %v5282_v12 = vpop.permute.xlu1 %3922  ;;  %v5284_v10 = vpop.permute.xlu0 %3917 }
 0x4f1   : > { %v3920_v59 = vunpack.i.h.bf16 %v5284_v10  ;;  %v3919_v38 = vunpack.i.l.bf16 %v5284_v10 }
 0x4f2   : > { %2646 = vperm.xlu0 %3459, %v2636_v5   ;;  %v1774_v5 = vsel %vm1069_vm15, %v3914_v42, %v3915_v4 }
 0x4f3   : > { %v1844_v10 = vsel %vm1141_vm1, %v3919_v38, %v3920_v59 }
 0x4f4   : > { %2651 = vperm.xlu1 %3655, %v2637_v40   ;;  %v5286_v6 = vpop.permute.xlu1 %3932  ;;  %v5288_v13 = vpop.permute.xlu0 %3927 }
 0x4f6   : > { %2656 = vperm.xlu0 %3459, %v2638_v63  }
 0x4f8   : > { %v5290_v56 = vpop.permute.xlu1 %3942  ;;  %v5292_v36 = vpop.permute.xlu0 %3937 }
 0x4fc   : > { %v5294_v51 = vpop.permute.xlu1 %3952  ;;  %v5296_v34 = vpop.permute.xlu0 %3947 }
 0x500   : > { %v5298_v2 = vpop.permute.xlu1 %3962  ;;  %v5300_v25 = vpop.permute.xlu0 %3957 }
 0x524   : > { %v3968_v31 = vpop.permute.xlu1 %3967  ;;  %v3973_v44 = vpop.permute.xlu0 %3972 }
 0x525   : > { %v3970_v53 = vunpack.i.h.bf16 %v3968_v31  ;;  %v3969_v60 = vunpack.i.l.bf16 %v3968_v31  ;;  %v3975_v57 = vunpack.i.h.bf16 %v3973_v44  ;;  %v3974_v23 = vunpack.i.l.bf16 %v3973_v44 }
 0x527   : > { %v1566_v0 = vsel %vm442_vm4, %v3969_v60, %v3970_v53  ;;  %v1563_v58 = vsel %vm442_vm4, %v3974_v23, %v3899_v9  ;;  %v1565_v19 = vsel %vm442_vm4, %v3975_v57, %v3969_v60  ;;  %v3925_v57 = vunpack.i.h.bf16 %v5282_v12 }
 0x528   : > { %v3983_v16 = vpop.permute.xlu1 %3982  ;;  %v3224_v47 = vpack.c.bf16 %v1566_v0, %v1564_v45  ;;  %v3226_v21 = vpack.c.bf16 %v1565_v19, %v1563_v58  ;;  %v3978_v14 = vpop.permute.xlu0 %3977  ;;  %v3924_v0 = vunpack.i.l.bf16 %v5282_v12 }
 0x529   : > { %v3985_v55 = vunpack.i.h.bf16 %v3983_v16  ;;  %v3984_v54 = vunpack.i.l.bf16 %v3983_v16  ;;  %v3980_v3 = vunpack.i.h.bf16 %v3978_v14  ;;  %v3979_v35 = vunpack.i.l.bf16 %v3978_v14 }
 0x52a   : > { %3225 = vmatprep.subr.bf16.mxu0 %v3224_v47  ;;  %v1914_v12 = vsel %vm1213_vm5, %v3924_v0, %v3925_v57 }
 0x52b   : > { %3227 = vmatpush1.bf16.msra.mxu0 %v3226_v21  ;;  %v1633_v11 = vsel %vm518_vm8, %v3984_v54, %v3904_v62  ;;  %v1636_v27 = vsel %vm518_vm8, %v3979_v35, %v3980_v3  ;;  %v1635_v26 = vsel %vm518_vm8, %v3985_v55, %v3979_v35 }
 0x52c   : > { %v3988_v15 = vpop.permute.xlu1 %3987  ;;  %v3993_v7 = vpop.permute.xlu0 %3992  ;;  %v3228_v29 = vpack.c.bf16 %v1636_v27, %v1634_v22  ;;  %v3230_v20 = vpack.c.bf16 %v1635_v26, %v1633_v11  ;;  %v3930_v11 = vunpack.i.h.bf16 %v5288_v13 }
 0x52d   : > { %v3990_v30 = vunpack.i.h.bf16 %v3988_v15  ;;  %v3989_v46 = vunpack.i.l.bf16 %v3988_v15  ;;  %v3995_v28 = vunpack.i.h.bf16 %v3993_v7  ;;  %v3994_v18 = vunpack.i.l.bf16 %v3993_v7 }
 0x52e   : > { %3229 = vmatprep.subr.bf16.mxu0 %v3228_v29  ;;  %v3929_v15 = vunpack.i.l.bf16 %v5288_v13  ;;  %v3935_v29 = vunpack.i.h.bf16 %v5286_v6 }
 0x52f   : > { %v1706_v41 = vsel %vm594_vm12, %v3989_v46, %v3990_v30  ;;  %3231 = vmatpush1.bf16.msra.mxu0 %v3230_v20  ;;  %v1703_v33 = vsel %vm594_vm12, %v3994_v18, %v3909_v24  ;;  %v1705_v32 = vsel %vm594_vm12, %v3995_v28, %v3989_v46  ;;  %v3934_v18 = vunpack.i.l.bf16 %v5286_v6 }
 0x530   : > { %v3232_v52 = vpack.c.bf16 %v1706_v41, %v1704_v37  ;;  %v3998_v50 = vpop.permute.xlu0 %3997  ;;  %v3234_v17 = vpack.c.bf16 %v1705_v32, %v1703_v33 }
 0x531   : > { %v4000_v43 = vunpack.i.h.bf16 %v3998_v50  ;;  %v3999_v61 = vunpack.i.l.bf16 %v3998_v50 }
 0x532   : > { %3233 = vmatprep.subr.bf16.mxu0 %v3232_v52  ;;  %v4003_v49 = vpop.permute.xlu1 %4002 }
 0x533   : > { %3235 = vmatpush1.bf16.msra.mxu0 %v3234_v17  ;;  %v1776_v40 = vsel %vm1069_vm15, %v3999_v61, %v4000_v43  ;;  %v4005_v39 = vunpack.i.h.bf16 %v4003_v49  ;;  %v4004_v48 = vunpack.i.l.bf16 %v4003_v49  ;;  %v3940_v49 = vunpack.i.h.bf16 %v5292_v36 }
 0x534   : > { %v3236_v63 = vpack.c.bf16 %v1776_v40, %v1774_v5  ;;  %v4013_v9 = vpop.permute.xlu0 %4012  ;;  %v2055_v40 = vsel %vm2053_vm2, %v3934_v18, %v3935_v29 }
 0x535   : > { %v4015_v31 = vunpack.i.h.bf16 %v4013_v9  ;;  %v4014_v44 = vunpack.i.l.bf16 %v4013_v9  ;;  %v1773_v53 = vsel %vm1069_vm15, %v4004_v48, %v3914_v42  ;;  %v1775_v60 = vsel %vm1069_vm15, %v4005_v39, %v3999_v61 }
 0x536   : > { %3237 = vmatprep.subr.bf16.mxu0 %v3236_v63  ;;  %v4008_v23 = vpop.permute.xlu1 %4007  ;;  %v3238_v45 = vpack.c.bf16 %v1775_v60, %v1773_v53  ;;  %v1984_v42 = vsel %vm1285_vm7, %v3929_v15, %v3930_v11  ;;  %v3939_v39 = vunpack.i.l.bf16 %v5292_v36  ;;  %v3945_v53 = vunpack.i.h.bf16 %v5290_v56 }
 0x537   : > { %v4010_v58 = vunpack.i.h.bf16 %v4008_v23  ;;  %v4009_v19 = vunpack.i.l.bf16 %v4008_v23  ;;  %v1843_v1 = vsel %vm1141_vm1, %v4014_v44, %v3919_v38  ;;  %v3944_v23 = vunpack.i.l.bf16 %v5290_v56 }
 0x538   : > { %3239 = vmatpush1.bf16.msra.mxu0 %v3238_v45  ;;  %v4018_v62 = vpop.permute.xlu0 %4017 }
 0x539   : > { %v4020_v16 = vunpack.i.h.bf16 %v4018_v62  ;;  %v4019_v47 = vunpack.i.l.bf16 %v4018_v62  ;;  %v1846_v21 = vsel %vm1141_vm1, %v4009_v19, %v4010_v58  ;;  %v1845_v55 = vsel %vm1141_vm1, %v4015_v31, %v4009_v19 }
 0x53a   : > { %v4023_v54 = vpop.permute.xlu1 %4022  ;;  %v3240_v14 = vpack.c.bf16 %v1846_v21, %v1844_v10  ;;  %v3242_v3 = vpack.c.bf16 %v1845_v55, %v1843_v1  ;;  %v2126_v19 = vsel %vm2124_vm10, %v3939_v39, %v3940_v49 }
 0x53b   : > { %v4025_v35 = vunpack.i.h.bf16 %v4023_v54  ;;  %v4024_v8 = vunpack.i.l.bf16 %v4023_v54  ;;  %v1916_v24 = vsel %vm1213_vm5, %v4019_v47, %v4020_v16 }
 0x53c   : > { %3241 = vmatprep.subr.bf16.mxu0 %v3240_v14  ;;  %v4033_v22 = vpop.permute.xlu0 %4032  ;;  %v3244_v27 = vpack.c.bf16 %v1916_v24, %v1914_v12  ;;  %v2197_v14 = vsel %vm2195_vm11, %v3944_v23, %v3945_v53 }
 0x53d   : > { %3243 = vmatpush1.bf16.msra.mxu0 %v3242_v3  ;;  %v4035_v26 = vunpack.i.h.bf16 %v4033_v22  ;;  %v4034_v30 = vunpack.i.l.bf16 %v4033_v22  ;;  %v1913_v46 = vsel %vm1213_vm5, %v4024_v8, %v3924_v0  ;;  %v1915_v7 = vsel %vm1213_vm5, %v4025_v35, %v4019_v47 }
 0x53e   : > { %v4028_v20 = vpop.permute.xlu1 %4027  ;;  %3245 = vmatprep.subr.bf16.mxu0 %v3244_v27  ;;  %v3246_v28 = vpack.c.bf16 %v1915_v7, %v1913_v46  ;;  %v3950_v35 = vunpack.i.h.bf16 %v5296_v34  ;;  %v3949_v8 = vunpack.i.l.bf16 %v5296_v34  ;;  %v3954_v7 = vunpack.i.l.bf16 %v5294_v51 }
 0x53f   : > { %v4030_v4 = vunpack.i.h.bf16 %v4028_v20  ;;  %v4029_v37 = vunpack.i.l.bf16 %v4028_v20  ;;  %v1983_v13 = vsel %vm1285_vm7, %v4034_v30, %v3929_v15  ;;  %vm2550_vm5 = vcmask 556032  }
 0x540   : > { %v4038_v41 = vpop.permute.xlu0 %4037 }
 0x541   : > { %3247 = vmatpush1.bf16.msra.mxu0 %v3246_v28  ;;  %v4040_v52 = vunpack.i.h.bf16 %v4038_v41  ;;  %v4039_v33 = vunpack.i.l.bf16 %v4038_v41  ;;  %v1986_v32 = vsel %vm1285_vm7, %v4029_v37, %v4030_v4  ;;  %v1985_v50 = vsel %vm1285_vm7, %v4035_v26, %v4029_v37 }
 0x542   : > { %v4043_v17 = vpop.permute.xlu1 %4042  ;;  %v3248_v43 = vpack.c.bf16 %v1986_v32, %v1984_v42  ;;  %v3250_v61 = vpack.c.bf16 %v1985_v50, %v1983_v13  ;;  %v3955_v26 = vunpack.i.h.bf16 %v5294_v51 }
 0x543   : > { %v4045_v5 = vunpack.i.h.bf16 %v4043_v17  ;;  %v4044_v6 = vunpack.i.l.bf16 %v4043_v17  ;;  %v2057_v63 = vsel %vm2053_vm2, %v4039_v33, %v4040_v52 }
 0x544   : > { %3249 = vmatprep.subr.bf16.mxu0 %v3248_v43  ;;  %v4053_v48 = vpop.permute.xlu0 %4052  ;;  %v3252_v59 = vpack.c.bf16 %v2057_v63, %v2055_v40  ;;  %v2339_v50 = vsel %vm2337_vm14, %v3954_v7, %v3955_v26  ;;  %v3960_v43 = vunpack.i.h.bf16 %v5300_v25 }
 0x545   : > { %3251 = vmatpush1.bf16.msra.mxu0 %v3250_v61  ;;  %v4055_v38 = vunpack.i.h.bf16 %v4053_v48  ;;  %v4054_v9 = vunpack.i.l.bf16 %v4053_v48  ;;  %v2054_v31 = vsel %vm2053_vm2, %v4044_v6, %v3934_v18  ;;  %v2056_v44 = vsel %vm2053_vm2, %v4045_v5, %v4039_v33 }
 0x546   : > { %v4048_v60 = vpop.permute.xlu1 %4047  ;;  %3253 = vmatprep.subr.bf16.mxu0 %v3252_v59  ;;  %v3254_v57 = vpack.c.bf16 %v2056_v44, %v2054_v31  ;;  %v2268_v18 = vsel %vm2266_vm13, %v3949_v8, %v3950_v35  ;;  %v3959_v61 = vunpack.i.l.bf16 %v5300_v25  ;;  %v3965_v48 = vunpack.i.h.bf16 %v5298_v2 }
 0x547   : > { %v4050_v45 = vunpack.i.h.bf16 %v4048_v60  ;;  %v4049_v36 = vunpack.i.l.bf16 %v4048_v60  ;;  %v2125_v0 = vsel %vm2124_vm10, %v4054_v9, %v3939_v39  ;;  %v3964_v9 = vunpack.i.l.bf16 %v5298_v2 }
 0x548   : > { %v4058_v58 = vpop.permute.xlu0 %4057  ;;  %v2410_v60 = vsel %vm2408_vm0, %v3959_v61, %v3960_v43 }
 0x549   : > { %3255 = vmatpush1.bf16.msra.mxu0 %v3254_v57  ;;  %v4060_v1 = vunpack.i.h.bf16 %v4058_v58  ;;  %v4059_v62 = vunpack.i.l.bf16 %v4058_v58  ;;  %v2128_v10 = vsel %vm2124_vm10, %v4049_v36, %v4050_v45  ;;  %v2127_v16 = vsel %vm2124_vm10, %v4055_v38, %v4049_v36 }
 0x54a   : > { %v4063_v47 = vpop.permute.xlu1 %4062  ;;  %v3256_v21 = vpack.c.bf16 %v2128_v10, %v2126_v19  ;;  %v3258_v55 = vpack.c.bf16 %v2127_v16, %v2125_v0 }
 0x54b   : > { %v4065_v54 = vunpack.i.h.bf16 %v4063_v47  ;;  %v4064_v56 = vunpack.i.l.bf16 %v4063_v47  ;;  %v2199_v3 = vsel %vm2195_vm11, %v4059_v62, %v4060_v1 }
 0x54c   : > { %3257 = vmatprep.subr.bf16.mxu0 %v3256_v21  ;;  %v4073_v12 = vpop.permute.xlu0 %4072  ;;  %v3260_v24 = vpack.c.bf16 %v2199_v3, %v2197_v14 }
 0x54d   : > { %3259 = vmatpush1.bf16.msra.mxu0 %v3258_v55  ;;  %v4075_v11 = vunpack.i.h.bf16 %v4073_v12  ;;  %v4074_v15 = vunpack.i.l.bf16 %v4073_v12  ;;  %v2196_v22 = vsel %vm2195_vm11, %v4064_v56, %v3944_v23  ;;  %v2198_v27 = vsel %vm2195_vm11, %v4065_v54, %v4059_v62 }
 0x54e   : > { %v4068_v30 = vpop.permute.xlu1 %4067  ;;  %3261 = vmatprep.subr.bf16.mxu0 %v3260_v24  ;;  %v3262_v46 = vpack.c.bf16 %v2198_v27, %v2196_v22  ;;  %v2481_v62 = vsel %vm2479_vm3, %v3964_v9, %v3965_v48 }
 0x54f   : > { %v4070_v29 = vunpack.i.h.bf16 %v4068_v30  ;;  %v4069_v34 = vunpack.i.l.bf16 %v4068_v30  ;;  %v2267_v20 = vsel %vm2266_vm13, %v4074_v15, %v3949_v8 }
 0x550   : > { %v4078_v28 = vpop.permute.xlu0 %4077 }
 0x551   : > { %3263 = vmatpush1.bf16.msra.mxu0 %v3262_v46  ;;  %v4080_v4 = vunpack.i.h.bf16 %v4078_v28  ;;  %v4079_v37 = vunpack.i.l.bf16 %v4078_v28  ;;  %v2270_v13 = vsel %vm2266_vm13, %v4069_v34, %v4070_v29  ;;  %v2269_v41 = vsel %vm2266_vm13, %v4075_v11, %v4069_v34  ;;  %v2566_v29 = vld [vmem:[%s5544_s5 + $0x18] sm:$0xff]  ;;  %v2565_v34 = vld [vmem:[%s5544_s5 + $0x10] sm:$0xff]  ;;  %v2567_v28 = vld [vmem:[%s5544_s5 + $0x20] sm:$0xff] }
 0x552   : > { %v4083_v42 = vpop.permute.xlu1 %4082  ;;  %v3264_v52 = vpack.c.bf16 %v2270_v13, %v2268_v18  ;;  %v3266_v33 = vpack.c.bf16 %v2269_v41, %v2267_v20  ;;  %v2568_v20 = vld [vmem:[%s5544_s5 + $0x28] sm:$0xff]  ;;  %v2570_v18 = vld [vmem:[%s5544_s5 + $0x38] sm:$0xff] }
 0x553   : > { %v4085_v32 = vunpack.i.h.bf16 %v4083_v42  ;;  %v4084_v51 = vunpack.i.l.bf16 %v4083_v42  ;;  %v2341_v17 = vsel %vm2337_vm14, %v4079_v37, %v4080_v4  ;;  %v2569_v4 = vld [vmem:[%s5544_s5 + $0x30] sm:$0xff] }
 0x554   : > { %3265 = vmatprep.subr.bf16.mxu0 %v3264_v52  ;;  %v4093_v5 = vpop.permute.xlu0 %4092  ;;  %v3268_v6 = vpack.c.bf16 %v2341_v17, %v2339_v50 }
 0x555   : > { %3267 = vmatpush1.bf16.msra.mxu0 %v3266_v33  ;;  %v4095_v40 = vunpack.i.h.bf16 %v4093_v5  ;;  %v4094_v63 = vunpack.i.l.bf16 %v4093_v5  ;;  %v2338_v49 = vsel %vm2337_vm14, %v4084_v51, %v3954_v7  ;;  %v2340_v39 = vsel %vm2337_vm14, %v4085_v32, %v4079_v37  ;;  %v2563_v7 = vld [vmem:[%s5544_s5] sm:$0xff] }
 0x556   : > { %v4088_v59 = vpop.permute.xlu1 %4087  ;;  %3269 = vmatprep.subr.bf16.mxu0 %v3268_v6  ;;  %v3270_v38 = vpack.c.bf16 %v2340_v39, %v2338_v49 }
 0x557   : > { %v4090_v31 = vunpack.i.h.bf16 %v4088_v59  ;;  %v4089_v25 = vunpack.i.l.bf16 %v4088_v59  ;;  %v2409_v44 = vsel %vm2408_vm0, %v4094_v63, %v3959_v61 }
 0x558   : > { %v4098_v53 = vpop.permute.xlu0 %4097 }
 0x559   : > { %3271 = vmatpush1.bf16.msra.mxu0 %v3270_v38  ;;  %v4100_v57 = vunpack.i.h.bf16 %v4098_v53  ;;  %v4099_v23 = vunpack.i.l.bf16 %v4098_v53  ;;  %v2412_v45 = vsel %vm2408_vm0, %v4089_v25, %v4090_v31  ;;  %v2411_v36 = vsel %vm2408_vm0, %v4095_v40, %v4089_v25 }
 0x55a   : > { %v4108_v0 = vpop.permute.xlu1 %4107  ;;  %v3272_v58 = vpack.c.bf16 %v2412_v45, %v2410_v60  ;;  %v3274_v19 = vpack.c.bf16 %v2411_v36, %v2409_v44 }
 0x55b   : > { %v4110_v1 = vunpack.i.h.bf16 %v4108_v0  ;;  %v4109_v2 = vunpack.i.l.bf16 %v4108_v0  ;;  %v2483_v10 = vsel %vm2479_vm3, %v4099_v23, %v4100_v57 }
 0x55c   : > { %3273 = vmatprep.subr.bf16.mxu0 %v3272_v58  ;;  %v4103_v16 = vpop.permute.xlu0 %4102  ;;  %v3276_v47 = vpack.c.bf16 %v2483_v10, %v2481_v62  ;;  %v2924_v58 = vld [vmem:[%s5546_s7] sm:$0xff] }
 0x55d   : > { %3275 = vmatpush1.bf16.msra.mxu0 %v3274_v19  ;;  %v4105_v21 = vunpack.i.h.bf16 %v4103_v16  ;;  %v4104_v55 = vunpack.i.l.bf16 %v4103_v16  ;;  %v2480_v54 = vsel %vm2479_vm3, %v4109_v2, %v3964_v9  ;;  %v2482_v56 = vsel %vm2479_vm3, %v4110_v1, %v4099_v23  ;;  %v2926_v19 = vld [vmem:[%s5547_s8] sm:$0xff]  ;;  %3153 = vmatprep.mubr.msk.f32.mxu1 %vm2938_vm6, %v2924_v58  ;;  %v2927_v1 = vld [vmem:[%s5547_s8 + $0x8] sm:$0xff] }
 0x55e   : > { %v4113_v14 = vpop.permute.xlu1 %4112  ;;  %3277 = vmatprep.subr.bf16.mxu0 %v3276_v47  ;;  %v3278_v3 = vpack.c.bf16 %v2482_v56, %v2480_v54 }
 0x55f   : > { %v4115_v35 = vunpack.i.h.bf16 %v4113_v14  ;;  %v4114_v8 = vunpack.i.l.bf16 %v4113_v14  ;;  %v2552_v12 = vsel %vm2550_vm5, %v4104_v55, %v4105_v21 }
 0x560   : > { %v4118_v24 = vpop.permute.xlu0 %4117 }
 0x561   : > { %3279 = vmatpush1.bf16.msra.mxu0 %v3278_v3  ;;  %v4120_v11 = vunpack.i.h.bf16 %v4118_v24  ;;  %v4119_v15 = vunpack.i.l.bf16 %v4118_v24  ;;  %v2554_v22 = vsel %vm2550_vm5, %v4114_v8, %v4115_v35 }
 0x562   : > { %v3280_v27 = vpack.c.bf16 %v2554_v22, %v2552_v12 }
 0x563   : > { %v2551_v26 = vsel %vm2550_vm5, %v4119_v15, %v4104_v55  ;;  %v2553_v30 = vsel %vm2550_vm5, %v4120_v11, %v4114_v8 }
 0x564   : > { %3281 = vmatprep.subr.bf16.mxu0 %v3280_v27  ;;  %v3282_v46 = vpack.c.bf16 %v2553_v30, %v2551_v26 }
 0x566   : > { %3283 = vmatpush1.bf16.msra.mxu0 %v3282_v46 }
 0x569   : > { %2724 = vmatmul.mubr.f32.vlgmr.msra.gmra.mrb[0].mxu0 %v2563_v7 }
 0x56a   : > { %2729 = vmatprep.mubr.f32.mxu0 %v2566_v29 }
 0x56d   : > { %2730 = vmatmul.mubr.f32.gmra.mrb[2].mxu0 %v2565_v34 }
 0x56e   : > { %2735 = vmatprep.mubr.f32.mxu0 %v2568_v20 }
 0x56f   : > { %v2642_v37 = vpop.permute.xlu1 %2641 }
 0x571   : > { %2736 = vmatmul.mubr.f32.gmra.mrb[4].mxu0 %v2567_v28  ;;  %v2647_v32 = vpop.permute.xlu0 %2646 }
 0x572   : > { %2741 = vmatprep.mubr.f32.mxu0 %v2570_v18 }
 0x573   : > { %v2652_v38 = vpop.permute.xlu1 %2651 }
 0x575   : > { %2742 = vmatmul.mubr.f32.gmra.mrb[6].mxu0 %v2569_v4  ;;  %v2657_v25 = vpop.permute.xlu0 %2656 }
 0x63c   : > { %v2725_v13 = vpop.f32.mrb[0].mxu0 }
 0x63d   : > { %v5405_v41 = vadd.f32 %v2725_v13, %v2642_v37  ;;  %v2727_v42 = vpop.f32.mrb[1].mxu0 }
 0x63e   : > { %v2728_v52 = vadd.f32 %v2727_v42, %v2642_v37 }
 0x63f   : > { %v2748_v33 = vmax.f32 %v5405_v41, 0.0 }
 0x640   : > { %v2749_v51 = vmax.f32 %v2728_v52, 0.0  ;;  %v2731_v50 = vpop.f32.mrb[2].mxu0 }
 0x641   : > { %v5408_v17 = vadd.f32 %v2731_v50, %v2647_v32  ;;  %v2733_v43 = vpop.f32.mrb[3].mxu0 }
 0x642   : > { %v2734_v61 = vadd.f32 %v2733_v43, %v2647_v32  ;;  %v4121_v5 = vpack.i.bf16 %v2749_v51, %v2748_v33 }
 0x643   : > { %v2750_v6 = vmax.f32 %v5408_v17, 0.0 }
 0x644   : > { %v2751_v40 = vmax.f32 %v2734_v61, 0.0  ;;  %v2737_v63 = vpop.f32.mrb[4].mxu0  ;;  %4122 = vrot.lane.b32.xlu1 %v4121_v5, %s4358_s25 }
 0x645   : > { %v2739_v49 = vpop.f32.mrb[5].mxu0  ;;  %v5420_v9 = vadd.f32 %v2737_v63, %v2652_v38 }
 0x646   : > { %v4146_v39 = vpack.i.bf16 %v2751_v40, %v2750_v6  ;;  %v2740_v31 = vadd.f32 %v2739_v49, %v2652_v38 }
 0x647   : > { %v2752_v44 = vmax.f32 %v5420_v9, 0.0 }
 0x648   : > { %v2743_v48 = vpop.f32.mrb[6].mxu0  ;;  %4147 = vrot.lane.b32.xlu0 %v4146_v39, %s4358_s25  ;;  %4127 = vrot.lane.b32.xlu1 %v4121_v5, %s5587_s22  ;;  %v2753_v53 = vmax.f32 %v2740_v31, 0.0 }
 0x649   : > { %v2745_v59 = vpop.f32.mrb[7].mxu0  ;;  %v5425_v60 = vadd.f32 %v2743_v48, %v2657_v25 }
 0x64a   : > { %v2746_v57 = vadd.f32 %v2745_v59, %v2657_v25  ;;  %v4171_v36 = vpack.i.bf16 %v2753_v53, %v2752_v44 }
 0x64b   : > { %v2754_v23 = vmax.f32 %v5425_v60, 0.0 }
 0x64c   : > { %4152 = vrot.lane.b32.xlu0 %v4146_v39, %s5587_s22  ;;  %4132 = vrot.lane.b32.xlu1 %v4121_v5, %s5588_s15  ;;  %v2755_v45 = vmax.f32 %v2746_v57, 0.0 }
 0x64e   : > { %v4196_v0 = vpack.i.bf16 %v2755_v45, %v2754_v23 }
 0x650   : > { %4157 = vrot.lane.b32.xlu0 %v4146_v39, %s5588_s15  ;;  %4137 = vrot.lane.b32.xlu1 %v4121_v5, %s5589_s29 }
 0x654   : > { %4162 = vrot.lane.b32.xlu0 %v4146_v39, %s5589_s29  ;;  %4142 = vrot.lane.b32.xlu1 %v4121_v5, %s5583_s17 }
 0x658   : > { %4167 = vrot.lane.b32.xlu0 %v4146_v39, %s5583_s17  ;;  %4172 = vrot.lane.b32.xlu1 %v4171_v36, %s4358_s25 }
 0x65c   : > { %4197 = vrot.lane.b32.xlu0 %v4196_v0, %s4358_s25  ;;  %4177 = vrot.lane.b32.xlu1 %v4171_v36, %s5587_s22 }
 0x660   : > { %4202 = vrot.lane.b32.xlu0 %v4196_v0, %s5587_s22  ;;  %4182 = vrot.lane.b32.xlu1 %v4171_v36, %s5588_s15  ;;  %s361_s22 = scalar_lea.vmem [#allocation12], %s5590_s28 }
 0x664   : > { %4207 = vrot.lane.b32.xlu0 %v4196_v0, %s5588_s15  ;;  %4187 = vrot.lane.b32.xlu1 %v4171_v36, %s5589_s29  ;;  %s3036_s15 = sshll.u32 %s361_s22, 4  ;;  %s5490_s15 = int_to_ptr.vmem [resolvable:$true] %s3036_s15 }
 0x665   : > { %p4286_p13 = scmp.lt.s32.totalorder %s5490_s15, %s4284_s18 }
 0x668   : > { %4212 = vrot.lane.b32.xlu0 %v4196_v0, %s5589_s29  ;;  %4192 = vrot.lane.b32.xlu1 %v4171_v36, %s5583_s17  ;;  %s3138_s29 = sshll.u32 %s4460_s13, 8  ;;  %s4279_s13 = scalar_lea.vmem %s5490_s15, 256 }
 0x669   : > { %s5495_s25 = scalar_lea.hbm %s5548_s9, %s3138_s29  ;;  %p4280_p6 = scmp.ne.s32.totalorder %s5490_s15, %s4279_s13 }
 0x66b   : > { %p4281_p9 = pnand %p4280_p6, %p4531_p8 }
 0x66c   : > { %4217 = vrot.lane.b32.xlu0 %v4196_v0, %s5583_s17  ;;  %2930 = vperm.xlu1 %3655, %v2926_v19   ;;  %s4285_s17 = scalar_lea.vmem %s4284_s18, 512 }
 0x66d   : > { %p4282_p12 = pneg %p4281_p9  ;;  %p4287_p0 = scmp.lt.s32.totalorder %s4285_s17, %s4279_s13 }
 0x66f   : > { %p4288_p5 = por %p4287_p0, %p4286_p13 }
 0x670   : > { %2935 = vperm.xlu0 %3459, %v2927_v1  }
 0x671   : > { %p4289_p10 = pnand %p4288_p5, %p4282_p12 }
 0x6b6   : > { %v4123_v2 = vpop.permute.xlu1 %4122 }
 0x6b7   : > { %v4125_v21 = vunpack.i.h.bf16 %v4123_v2  ;;  %v4124_v55 = vunpack.i.l.bf16 %v4123_v2 }
 0x6b9   : > { %v2800_v22 = vsel %vm442_vm4, %v4124_v55, %v4125_v21 }
 0x6ba   : > { %v4148_v62 = vpop.permute.xlu0 %4147  ;;  %v4128_v10 = vpop.permute.xlu1 %4127  ;;  %v2808_v20 = vmax.f32 %v2748_v33, %v2800_v22 }
 0x6bb   : > { %v4150_v54 = vunpack.i.h.bf16 %v4148_v62  ;;  %v4149_v56 = vunpack.i.l.bf16 %v4148_v62  ;;  %v4130_v14 = vunpack.i.h.bf16 %v4128_v10  ;;  %v4129_v3 = vunpack.i.l.bf16 %v4128_v10 }
 0x6bd   : > { %v2801_v27 = vsel %vm442_vm4, %v4149_v56, %v4150_v54  ;;  %v2828_v46 = vsel %vm518_vm8, %v4129_v3, %v4130_v14 }
 0x6be   : > { %v4153_v16 = vpop.permute.xlu0 %4152  ;;  %v4133_v47 = vpop.permute.xlu1 %4132  ;;  %v2809_v28 = vmax.f32 %v2750_v6, %v2801_v27  ;;  %v2836_v50 = vmax.f32 %v2808_v20, %v2828_v46 }
 0x6bf   : > { %v4155_v35 = vunpack.i.h.bf16 %v4153_v16  ;;  %v4154_v8 = vunpack.i.l.bf16 %v4153_v16  ;;  %v4135_v12 = vunpack.i.h.bf16 %v4133_v47  ;;  %v4134_v24 = vunpack.i.l.bf16 %v4133_v47 }
 0x6c1   : > { %v2829_v7 = vsel %vm518_vm8, %v4154_v8, %v4155_v35  ;;  %v2856_v18 = vsel %vm594_vm12, %v4134_v24, %v4135_v12 }
 0x6c2   : > { %v4158_v11 = vpop.permute.xlu0 %4157  ;;  %v4138_v15 = vpop.permute.xlu1 %4137  ;;  %v2837_v43 = vmax.f32 %v2809_v28, %v2829_v7  ;;  %v2864_v33 = vmax.f32 %v2836_v50, %v2856_v18 }
 0x6c3   : > { %v4160_v26 = vunpack.i.h.bf16 %v4158_v11  ;;  %v4159_v30 = vunpack.i.l.bf16 %v4158_v11  ;;  %v4140_v29 = vunpack.i.h.bf16 %v4138_v15  ;;  %v4139_v34 = vunpack.i.l.bf16 %v4138_v15 }
 0x6c5   : > { %v2857_v4 = vsel %vm594_vm12, %v4159_v30, %v4160_v26  ;;  %v2884_v61 = vsel %vm1069_vm15, %v4139_v34, %v4140_v29 }
 0x6c6   : > { %v4163_v37 = vpop.permute.xlu0 %4162  ;;  %v4143_v13 = vpop.permute.xlu1 %4142  ;;  %v2865_v5 = vmax.f32 %v2837_v43, %v2857_v4  ;;  %v2892_v39 = vmax.f32 %v2864_v33, %v2884_v61 }
 0x6c7   : > { %v4165_v42 = vunpack.i.h.bf16 %v4163_v37  ;;  %v4164_v52 = vunpack.i.l.bf16 %v4163_v37  ;;  %v4145_v32 = vunpack.i.h.bf16 %v4143_v13  ;;  %v4144_v51 = vunpack.i.l.bf16 %v4143_v13 }
 0x6c9   : > { %v2885_v41 = vsel %vm1069_vm15, %v4164_v52, %v4165_v42  ;;  %v2912_v40 = vsel %vm1141_vm1, %v4144_v51, %v4145_v32 }
 0x6ca   : > { %v4168_v17 = vpop.permute.xlu0 %4167  ;;  %v4173_v6 = vpop.permute.xlu1 %4172  ;;  %v2893_v48 = vmax.f32 %v2865_v5, %v2885_v41  ;;  %v2920_v25 = vmax.f32 %v2892_v39, %v2912_v40  ;;  %v2925_v41 = vld [vmem:[%s5546_s7 + $0x8] sm:$0xff] }
 0x6cb   : > { %v4170_v63 = vunpack.i.h.bf16 %v4168_v17  ;;  %v4169_v49 = vunpack.i.l.bf16 %v4168_v17  ;;  %v4175_v0 = vunpack.i.h.bf16 %v4173_v6  ;;  %v4174_v58 = vunpack.i.l.bf16 %v4173_v6 }
 0x6cd   : > { %v2913_v59 = vsel %vm1141_vm1, %v4169_v49, %v4170_v63  ;;  %v2802_v56 = vsel %vm442_vm4, %v4174_v58, %v4175_v0 }
 0x6ce   : > { %v4198_v38 = vpop.permute.xlu0 %4197  ;;  %v4178_v31 = vpop.permute.xlu1 %4177  ;;  %v2921_v53 = vmax.f32 %v2893_v48, %v2913_v59  ;;  %v2810_v15 = vmax.f32 %v2752_v44, %v2802_v56 }
 0x6cf   : > { %v4200_v19 = vunpack.i.h.bf16 %v4198_v38  ;;  %v4199_v1 = vunpack.i.l.bf16 %v4198_v38  ;;  %v4180_v2 = vunpack.i.h.bf16 %v4178_v31  ;;  %v4179_v62 = vunpack.i.l.bf16 %v4178_v31 }
 0x6d0   : > { %v3284_v57 = vpack.c.bf16 %v2921_v53, %v2920_v25 }
 0x6d1   : > { %v2803_v14 = vsel %vm442_vm4, %v4199_v1, %v4200_v19  ;;  %v2830_v8 = vsel %vm518_vm8, %v4179_v62, %v4180_v2 }
 0x6d2   : > { %v4203_v45 = vpop.permute.xlu0 %4202  ;;  %v4183_v36 = vpop.permute.xlu1 %4182  ;;  %3285 = vmatprep.subr.bf16.mxu1 %v3284_v57  ;;  %v2811_v22 = vmax.f32 %v2754_v23, %v2803_v14  ;;  %v2838_v28 = vmax.f32 %v2810_v15, %v2830_v8 }
 0x6d3   : > { %3287 = vmatpush3.bf16.msra.mxu1 %v3284_v57  ;;  %v4205_v10 = vunpack.i.h.bf16 %v4203_v45  ;;  %v4204_v16 = vunpack.i.l.bf16 %v4203_v45  ;;  %v4185_v47 = vunpack.i.h.bf16 %v4183_v36  ;;  %v4184_v21 = vunpack.i.l.bf16 %v4183_v36 }
 0x6d5   : > { %v2831_v12 = vsel %vm518_vm8, %v4204_v16, %v4205_v10  ;;  %v2858_v27 = vsel %vm594_vm12, %v4184_v21, %v4185_v47 }
 0x6d6   : > { %v4208_v55 = vpop.permute.xlu0 %4207  ;;  %v4188_v54 = vpop.permute.xlu1 %4187  ;;  %v2839_v18 = vmax.f32 %v2811_v22, %v2831_v12  ;;  %v2866_v44 = vmax.f32 %v2838_v28, %v2858_v27 }
 0x6d7   : > { %v4210_v3 = vunpack.i.h.bf16 %v4208_v55  ;;  %v4209_v35 = vunpack.i.l.bf16 %v4208_v55  ;;  %v4190_v24 = vunpack.i.h.bf16 %v4188_v54  ;;  %v4189_v11 = vunpack.i.l.bf16 %v4188_v54 }
 0x6d9   : > { %v2859_v26 = vsel %vm594_vm12, %v4209_v35, %v4210_v3  ;;  %v2886_v4 = vsel %vm1069_vm15, %v4189_v11, %v4190_v24 }
 0x6da   : > { %v4213_v30 = vpop.permute.xlu0 %4212  ;;  %v4193_v46 = vpop.permute.xlu1 %4192  ;;  %v2867_v60 = vmax.f32 %v2839_v18, %v2859_v26  ;;  %v2894_v52 = vmax.f32 %v2866_v44, %v2886_v4 }
 0x6db   : > { %v4215_v7 = vunpack.i.h.bf16 %v4213_v30  ;;  %v4214_v29 = vunpack.i.l.bf16 %v4213_v30  ;;  %v4195_v34 = vunpack.i.h.bf16 %v4193_v46  ;;  %v4194_v20 = vunpack.i.l.bf16 %v4193_v46 }
 0x6dd   : > { %v2887_v9 = vsel %vm1069_vm15, %v4214_v29, %v4215_v7  ;;  %v2914_v37 = vsel %vm1141_vm1, %v4194_v20, %v4195_v34 }
 0x6de   : > { %v4218_v23 = vpop.permute.xlu0 %4217  ;;  %v2895_v32 = vmax.f32 %v2867_v60, %v2887_v9  ;;  %v2922_v50 = vmax.f32 %v2894_v52, %v2914_v37 }
 0x6df   : > { %v4220_v13 = vunpack.i.h.bf16 %v4218_v23  ;;  %v4219_v42 = vunpack.i.l.bf16 %v4218_v23 }
 0x6e1   : > { %v2915_v51 = vsel %vm1141_vm1, %v4219_v42, %v4220_v13 }
 0x6e2   : > { %v2923_v43 = vmax.f32 %v2895_v32, %v2915_v51 }
 0x6e4   : > { %v3288_v61 = vpack.c.bf16 %v2923_v43, %v2922_v50 }
 0x6e6   : > { %3289 = vmatprep.subr.bf16.mxu1 %v3288_v61 }
 0x6e7   : > { %3291 = vmatpush3.bf16.msra.mxu1 %v3288_v61 }
 0x6ea   : > { %3154 = vmatmul.mubr.msk.f32.vlgmr.msra.gmra.mrb[6].mxu1 %vm2938_vm6, %v2925_v41 }
 0x6eb   : > { %v2931_v17 = vpop.permute.xlu1 %2930 }
 0x6ef   : > { %v2936_v33 = vpop.permute.xlu0 %2935 }
 0x7bd   : > { %v3155_v5 = vpop.f32.mrb[6].mxu1 }
 0x7be   : > { %v3017_v6 = vadd.f32 %v3155_v5, %v2936_v33  ;;  %v3011_v40 = vpop.f32.mrb[7].mxu1 }
 0x7bf   : > { %v3012_v63 = vadd.f32 %v3011_v40, %v2931_v17 }
 0x7c0   : > { %3021 = vst [vmem:[%s361_s22 + $0x8] sm:$0xff] %v3017_v6 }
 0x7c1   : > { %3020 = vst [vmem:[%s361_s22] sm:$0xff] %v3012_v63 }
 0x7c2   : > { %4292 = shalt.err (!%p4289_p10)
}
 0x7c3   : > { %s4293_s23 = scalar_lea.hbm %s5495_s25, 256  ;;  %s4297_s29 = scalar_lea.hbm %s5548_s9, 512 }
 0x7c4   : > { %p4294_p1 = scmp.ne.s32.totalorder %s5495_s25, %s4293_s23  ;;  %p4298_p3 = scmp.lt.u32.totalorder %s5495_s25, %s5548_s9 }
 0x7c5   : > { %p4299_p11 = scmp.lt.u32.totalorder %s4297_s29, %s4293_s23  ;;  %p4301_p6 = scmp.lt.u32.totalorder %s4293_s23, %s5495_s25 }
 0x7c6   : > { %p4295_p2 = pnand %p4294_p1, %p4531_p8 }
 0x7c7   : > { %p4300_p4 = por %p4299_p11, %p4298_p3 }
 0x7c8   : > { %p4296_p7 = pneg %p4295_p2 }
 0x7c9   : > { %p4302_p9 = por %p4301_p6, %p4300_p4 }
 0x7cb   : > { %p4303_p12 = pnand %p4302_p9, %p4296_p7 }
 0x7cd   : > { %4306 = shalt.err (!%p4303_p12)
}
 0x7ce   : > { %s4387_s13 = smov 128   ;;  %s4388_s24 = smov 8  }
 0x7cf   : > { %3298 = dma.vmem_to_hbm [thread:$0]  (%p4531_p8), %s5490_s15, 256, %s5495_s25, %s3023_s14, %s4387_s13, %s4387_s13, %s4388_s24  }
 0x7d0 PF: > { %s3051_s18 = sand.u32 1, %s4337_s30   ;;  %p5591_p13 = scmp.ne.s32.totalorder %s5568_s16, 0 }
 0x7d1   : > { %p5592_p0 = scmp.ge.s32.totalorder %s4349_s12, 2  ;;  %s3052_s17 = scalar_lea.sflag [#allocation9], %s3051_s18 }
 0x7d3   : > { %p3309_p5 = pnand %p5592_p0, %p5591_p13 }
 0x7d5   : > { %4332 = dma.done.wait (!%p3309_p5), %s3052_s17, 256  }
 0x7d6   : > { %4334 = vsyncadd (!%p3309_p5), %s3052_s17, 4294967040  ;;  %p23_p10 = scmp.ge.s32.totalorder %s4487_s20, 4   ;;  %s5593_s30 = smov %s4341_s10 }
 0x7d7   : > { %s5594_s10 = smov %s4345_s11  ;;  %s5595_s11 = smov %s4523_s27 }
 0x7d8   : > { %s5596_s12 = smov %s4487_s20  ;;  %25 = sbr.rel (!%p23_p10) target bundleno = 8 (0x8), region = 105 }
 0x7df   :  { %3057 = vsyncpa [#allocation8], 1 }
 0x7e0   :  { %3059 = vsyncpa [#allocation8 + $0x1], 1 }
 0x7e1   :  { %3060 = vsyncpa [#allocation11], 1 }
 0x7e2   :  { %3061 = vsyncpa [#allocation9], 1 }
 0x7e3   :  { %3063 = vsyncpa [#allocation9 + $0x1], 1 }

</bundles_post_ra>
